<compile_context>
chip_gen: v7x
topology: tpu7x:2x2x1
jax: 0.10.0
libtpu: 0.0.40
codegen_flags: <defaults>
</compile_context>

<pallas_src>
import functools

import jax
import jax.numpy as jnp
from jax import lax
from jax.experimental import pallas as pl
from jax.experimental.pallas import tpu as pltpu


def _round_up(x, m):
    return (x + m - 1) // m * m


def _hidden_pad(h):
    # 128 lanes is exact/optimal for the v5e MXU and for small H; multiples of
    # 256 keep every push full on the 256-wide v6e/v7x MXU contraction dim.
    return _round_up(h, 128) if h <= 128 else _round_up(h, 256)


def _pick_chunk(length):
    """Largest divisor of `length` <= 32: LSTM timesteps per grid step."""
    for c in range(min(length, 32), 0, -1):
        if length % c == 0:
            return c
    return 1


# ---------------------------------------------------------------------------
# Tiled linear kernel:  o = x @ w + b   (bf16 MXU inputs, f32 accumulation)
# ---------------------------------------------------------------------------
def _linear_kernel(x_ref, w_ref, b_ref, o_ref):
    # Activation is cast to bf16 *in VMEM* (no wrapper-side HBM cast pass);
    # weights are already stored in bf16, accumulation stays f32 on the MXU.
    o_ref[...] = (
        jnp.dot(x_ref[...].astype(jnp.bfloat16), w_ref[...],
                preferred_element_type=jnp.float32)
        + b_ref[...]
    ).astype(o_ref.dtype)


def _m_tiling(M):
    tm = 256 if M > 512 else _round_up(M, 8)
    return tm, _round_up(M, tm)


def _n_tiling(N):
    # N is always a multiple of 128 here (vocab padded at init); cap the tile
    # at 512 lanes so weight blocks stay bounded (v7x has only 64 MiB VMEM).
    tn = min(512, N)
    while N % tn:
        tn -= 128
    return tn


def linear(x, w, b):
    """x:(M,K) @ w:(K,N) bf16 + b:(1,N) f32 -> (M,N) f32, tiled over M and N."""
    M, K = x.shape
    N = w.shape[1]
    assert N % 128 == 0, "pad the output dim to 128 lanes at init time"
    tm, Mp = _m_tiling(M)
    tn = _n_tiling(N)
    if Mp != M:
        x = jnp.pad(x, ((0, Mp - M), (0, 0)))
    out = pl.pallas_call(
        _linear_kernel,
        out_shape=jax.ShapeDtypeStruct((Mp, N), jnp.float32),
        grid=(Mp // tm, N // tn),
        in_specs=[
            pl.BlockSpec((tm, K), lambda i, j: (i, 0)),
            pl.BlockSpec((K, tn), lambda i, j: (0, j)),
            pl.BlockSpec((1, tn), lambda i, j: (0, j)),
        ],
        out_specs=pl.BlockSpec((tm, tn), lambda i, j: (i, j)),
        compiler_params=pltpu.CompilerParams(
            # Both axes independent -> shard across megacore / v7x's 2 TCs.
            dimension_semantics=("parallel", "parallel"),
            vmem_limit_bytes=32 * 1024 * 1024,
        ),
        cost_estimate=pl.CostEstimate(
            flops=2 * Mp * K * N,
            transcendentals=0,
            bytes_accessed=Mp * K * x.dtype.itemsize + K * N * 2 + Mp * N * 4,
        ),
    )(x, w, b)
    return out[:M] if Mp != M else out


# ---------------------------------------------------------------------------
# LSTM recurrence kernel, streamed over time chunks.
# Input gates x @ W_ih (+bias) are precomputed (hoisted matmul); only the
# recurrent h @ W_hh matmul + gate math runs per step.
# ---------------------------------------------------------------------------
def _lstm_chunk_kernel(valid_len, chunk, decoder,
                       gx_ref, aux_ref, whh_ref, o_ref, h_sc, c_sc):
    """One chunk of LSTM timesteps.

    gx_ref : (chunk, B, 4Hp) f32  hoisted input-projection gates (incl. bias)
    aux_ref: encoder -> (1, 4Hp) f32  LSTM-only bias used for padded steps
             decoder -> (chunk, B, 4Hp) f32  embedding gates, added for t >= L
    whh_ref: (Hp, 4Hp) bf16  recurrent weights (resident across the grid)
    o_ref  : (chunk, B, Hp) bf16  per-step hidden states
    h_sc/c_sc: (B, Hp) f32  state carried across grid steps
    Gates are packed [i, f, o, g]: one sigmoid over 3*Hp, one tanh over Hp.
    """
    hp = h_sc.shape[1]
    cix = pl.program_id(0)

    @pl.when(cix == 0)
    def _():
        h_sc[...] = jnp.zeros_like(h_sc)
        c_sc[...] = jnp.zeros_like(c_sc)

    whh = whh_ref[...]                     # hoisted: loaded once per chunk
    if not decoder:
        pad_bias = aux_ref[...]            # (1, 4Hp)
    base_t = cix * chunk

    def step(t, carry):
        h, c = carry
        g_t = base_t + t
        if decoder:
            gx = gx_ref[t] + jnp.where(g_t >= valid_len, aux_ref[t], 0.0)
        else:
            gx = jnp.where(g_t < valid_len, gx_ref[t], pad_bias)
        z = gx + jnp.dot(h.astype(jnp.bfloat16), whh,
                         preferred_element_type=jnp.float32)   # (B, 4Hp) f32
        # Gate math in f32 (v5e has no bf16 VPU/EUP); packed order [i,f,o | g].
        ifo = jax.nn.sigmoid(z[:, :3 * hp])
        g = jnp.tanh(z[:, 3 * hp:])
        c_new = ifo[:, hp:2 * hp] * c + ifo[:, :hp] * g
        h_new = ifo[:, 2 * hp:] * jnp.tanh(c_new)
        o_ref[t] = h_new.astype(o_ref.dtype)
        return h_new, c_new

    h, c = lax.fori_loop(0, chunk, step, (h_sc[...], c_sc[...]),
                         unroll=min(chunk, 8))
    h_sc[...] = h
    c_sc[...] = c


def lstm_scan(gx, aux, whh, *, valid_len, chunk, n_steps, decoder):
    """Run an LSTM over `n_steps` timesteps, streamed in chunks.

    gx : (Lg, B, 4Hp) f32 precomputed x@W_ih gates (Lg = valid_len for the
         encoder, n_steps for the decoder); `aux` as described in the kernel.
    Returns (n_steps, B, Hp) bf16 hidden states.
    """
    assert n_steps % chunk == 0 and valid_len % chunk == 0
    _, B, G4 = gx.shape
    Hp = G4 // 4
    n_chunks = n_steps // chunk
    lc = valid_len // chunk
    if decoder:
        gx_spec = pl.BlockSpec((chunk, B, G4), lambda c: (c, 0, 0))
        # emb gates: block (c - lc) holds the gates for global steps >= L;
        # clamp below L (data unused there).
        aux_spec = pl.BlockSpec((chunk, B, G4),
                                lambda c: (jnp.maximum(c - lc, 0), 0, 0))
    else:
        # clamp the gx index for padded steps (>= L); kernel selects the bias.
        gx_spec = pl.BlockSpec((chunk, B, G4),
                               lambda c: (jnp.minimum(c, lc - 1), 0, 0))
        aux_spec = pl.BlockSpec((1, G4), lambda c: (0, 0))
    kernel = functools.partial(_lstm_chunk_kernel, valid_len, chunk, decoder)
    # NOTE: on v7x a leading "parallel" batch-split grid axis would put both
    # TensorCores on the serial recurrence, but it needs per-core batch blocks
    # of >= 8 sublanes (B >= 16); at B=2 the tiled projections already use
    # both cores.  For large H the resident whh spec could additionally use
    # pipeline_mode=pl.Buffered(1) (constant index map) to drop its 2nd buffer.
    return pl.pallas_call(
        kernel,
        out_shape=jax.ShapeDtypeStruct((n_steps, B, Hp), jnp.bfloat16),
        grid=(n_chunks,),
        in_specs=[gx_spec, aux_spec,
                  pl.BlockSpec((Hp, G4), lambda c: (0, 0))],   # stays resident
        out_specs=pl.BlockSpec((chunk, B, Hp), lambda c: (c, 0, 0)),
        scratch_shapes=[
            pltpu.VMEM((B, Hp), jnp.float32),   # h state (persists over grid)
            pltpu.VMEM((B, Hp), jnp.float32),   # c state
        ],
        compiler_params=pltpu.CompilerParams(
            dimension_semantics=("arbitrary",),   # sequential time recurrence
            vmem_limit_bytes=32 * 1024 * 1024,
        ),
        cost_estimate=pl.CostEstimate(
            flops=int(n_steps * 2 * B * Hp * 4 * Hp),
            transcendentals=int(n_steps * B * 5 * Hp),
            bytes_accessed=int(gx.size * 4 + aux.size * 4
                               + n_steps * B * Hp * 2 + whh.size * 2),
        ),
    )(gx, aux, whh)


# ---------------------------------------------------------------------------
# Parameter construction (PyTorch-equivalent init; pre-transposed, gate-packed
# [i,f,o,g], lane-padded, fc1 folded into the encoder input projection, and
# matmul weights stored in bf16).
# ---------------------------------------------------------------------------
def init_params(key, vocab_size, feature_dim, hidden_dim, embedding_dim):
    H, F, E, V = hidden_dim, feature_dim, embedding_dim, vocab_size
    Hp = _hidden_pad(H)
    Vp = _round_up(V, 128)
    ks = jax.random.split(key, 14)

    def u(k, shape, bound):
        return jax.random.uniform(k, shape, jnp.float32, -bound, bound)

    kH = 1.0 / float(H) ** 0.5
    kF = 1.0 / float(F) ** 0.5

    def pack_gates(w):          # (..., 4H) [i,f,g,o] -> (..., 4Hp) [i,f,o,g]
        lead = w.shape[:-1]
        w4 = w.reshape(lead + (4, H))
        w4 = w4[..., jnp.array([0, 1, 3, 2]), :]
        w4 = jnp.pad(w4, [(0, 0)] * len(lead) + [(0, 0), (0, Hp - H)])
        return w4.reshape(lead + (4 * Hp,))

    def pad_rows(w):            # (H, X) -> (Hp, X), zero rows for padded lanes
        return jnp.pad(w, ((0, Hp - H), (0, 0)))

    bf = lambda x: x.astype(jnp.bfloat16)

    # fc1 / fc2 / embedding
    w1 = u(ks[0], (F, H), kF)
    b1 = u(ks[1], (1, H), kF)
    w2 = u(ks[2], (H, V), kH)
    b2 = u(ks[3], (1, V), kH)
    emb = jax.random.normal(ks[4], (V, E), jnp.float32)

    # encoder LSTM (input_size = H)
    enc_wih = u(ks[5], (H, 4 * H), kH)
    enc_whh = u(ks[6], (H, 4 * H), kH)
    enc_bih = u(ks[7], (1, 4 * H), kH)
    enc_bhh = u(ks[8], (1, 4 * H), kH)

    # decoder LSTM (input = [embedding (E) | enc_out (H)]), W_ih split in two
    dec_wih_emb = u(ks[9], (E, 4 * H), kH)
    dec_wih_enc = u(ks[10], (H, 4 * H), kH)
    dec_whh = u(ks[11], (H, 4 * H), kH)
    dec_b = u(ks[12], (1, 4 * H), kH) + u(ks[13], (1, 4 * H), kH)

    return dict(
        # fc1 folded into the encoder input projection:
        #   enc_gx = feats @ (w1 . W_ih) + (b1 . W_ih + b_ih + b_hh)
        enc_wih_t=bf(pack_gates(w1 @ enc_wih)),                      # (F, 4Hp)
        enc_gx_b=pack_gates(b1 @ enc_wih + enc_bih + enc_bhh),       # (1, 4Hp)
        # LSTM-only bias for zero-padded encoder steps (the PyTorch padding is
        # zeros *after* fc1, so b1 does not contribute there).
        enc_pad_b=pack_gates(enc_bih + enc_bhh),                     # (1, 4Hp)
        enc_whh_t=bf(pad_rows(pack_gates(enc_whh))),                 # (Hp, 4Hp)
        dec_wih_emb_t=bf(pack_gates(dec_wih_emb)),                   # (E, 4Hp)
        dec_wih_enc_t=bf(pad_rows(pack_gates(dec_wih_enc))),         # (Hp, 4Hp)
        dec_whh_t=bf(pad_rows(pack_gates(dec_whh))),                 # (Hp, 4Hp)
        dec_b=pack_gates(dec_b),                                     # (1, 4Hp)
        w2_t=bf(jnp.pad(pad_rows(w2), ((0, 0), (0, Vp - V)))),       # (Hp, Vp)
        b2=jnp.pad(b2, ((0, 0), (0, Vp - V))),                       # (1, Vp)
        emb=emb,                                                     # (V, E)
    )


# ---------------------------------------------------------------------------
# Forward pass (train mode)
# ---------------------------------------------------------------------------
@functools.partial(jax.jit, static_argnames=("length", "hidden_dim",
                                             "embedding_dim", "vocab_size"))
def s2vt_forward(params, features, mask_labels, *, length, hidden_dim,
                 embedding_dim, vocab_size):
    B, L, F = features.shape
    assert L == length
    V = vocab_size
    Hp = params["enc_whh_t"].shape[0]
    Vp = params["b2"].shape[1]
    assert Hp == _hidden_pad(hidden_dim) and params["emb"].shape[1] == embedding_dim
    chunk = _pick_chunk(L)
    T = 2 * L - 1                 # real encoder/decoder sequence length
    Tp = 2 * L                    # padded length (multiple of chunk); the one
                                  # extra step is finite and discarded

    # ---- encoder input gates: fc1 folded into W_ih (time-major once) ------
    feats_t = jnp.transpose(features, (1, 0, 2)).reshape(L * B, F)
    enc_gx = linear(feats_t, params["enc_wih_t"],
                    params["enc_gx_b"]).reshape(L, B, 4 * Hp)

    # ---- encoder: padded steps (t >= L) use the LSTM-only bias in-kernel ---
    enc_out = lstm_scan(enc_gx, params["enc_pad_b"], params["enc_whh_t"],
                        valid_len=L, chunk=chunk, n_steps=Tp, decoder=False)
    # (Tp, B, Hp) bf16; step Tp-1 is padding (finite, never used downstream)

    # ---- decoder gates, enc_out side over all Tp steps (no pad / concat) ---
    dec_gx = linear(enc_out.reshape(Tp * B, Hp), params["dec_wih_enc_t"],
                    params["dec_b"]).reshape(Tp, B, 4 * Hp)

    # embedding side: (L, B, 4Hp); the last row is a dummy for the discarded
    # padding step, so no HBM pad pass over the gate tensor is needed.
    idx = jnp.concatenate([mask_labels.T.astype(jnp.int32),
                           jnp.zeros((1, B), jnp.int32)], axis=0)    # (L, B)
    label_emb = params["emb"][idx]                                   # (L, B, E)
    emb_gx = linear(label_emb.reshape(L * B, -1), params["dec_wih_emb_t"],
                    jnp.zeros((1, 4 * Hp), jnp.float32)).reshape(L, B, 4 * Hp)

    # ---- decoder: emb gates added in-kernel for steps >= L -----------------
    dec_out = lstm_scan(dec_gx, emb_gx, params["dec_whh_t"],
                        valid_len=L, chunk=chunk, n_steps=Tp, decoder=True)

    # ---- take the L-1 decoding steps, dropout (identity), fc2 --------------
    result = jnp.transpose(dec_out[L:T], (1, 0, 2))                  # (B,L-1,Hp)
    # TODO(synk): nn.Dropout(p=0.3) is stochastic in train mode; applied as identity.
    logits = linear(result.reshape(B * (L - 1), Hp),
                    params["w2_t"], params["b2"]).reshape(B, L - 1, Vp)
    return logits[..., :V] if Vp != V else logits


# ---------------------------------------------------------------------------
# Demo
# ---------------------------------------------------------------------------
if __name__ == "__main__":
    VOCAB = 128
    FEATURE_DIM = 64
    LENGTH = 8
    HIDDEN = 32
    EMBED = 32
    BATCH = 2

    key = jax.random.PRNGKey(0)
    k_param, k_feat, k_lab = jax.random.split(key, 3)

    params = init_params(k_param, VOCAB, FEATURE_DIM, HIDDEN, EMBED)
    features = jax.random.normal(k_feat, (BATCH, LENGTH, FEATURE_DIM), jnp.float32)
    mask_labels = jax.random.randint(k_lab, (BATCH, LENGTH - 1), 0, VOCAB, jnp.int32)

    out = s2vt_forward(params, features, mask_labels,
                       length=LENGTH, hidden_dim=HIDDEN,
                       embedding_dim=EMBED, vocab_size=VOCAB)
    out = jax.block_until_ready(out)

    assert out.shape == (BATCH, LENGTH - 1, VOCAB), out.shape
    assert bool(jnp.all(jnp.isfinite(out)))
    print("KERNEL_OK")
</pallas_src>

<mosaic_0001>
module attributes {stable_mosaic.version = 11 : i64} {
  func.func @_linear_kernel(%arg0: i32, %arg1: i32, %arg2: memref<16x64xf32, #tpu.memory_space<vmem>>, %arg3: memref<64x512xbf16, #tpu.memory_space<vmem>>, %arg4: memref<1x512xf32, #tpu.memory_space<vmem>>, %arg5: memref<16x512xf32, #tpu.memory_space<vmem>>) attributes {dimension_semantics = [#tpu.dimension_semantics<parallel>, #tpu.dimension_semantics<parallel>], iteration_bounds = array<i64: 1, 1>, scalar_prefetch = 0 : i64, scratch_operands = 0 : i64, tpu.core_type = #tpu.core_type<tc>, window_params = [{transform_indices = @transform_0, window_bounds = array<i64: 16, 64>}, {transform_indices = @transform_1, window_bounds = array<i64: 64, 512>}, {transform_indices = @transform_2, window_bounds = array<i64: 1, 512>}, {transform_indices = @transform_3, window_bounds = array<i64: 16, 512>}]} {
    %c0 = arith.constant 0 : index
    %c0_0 = arith.constant 0 : index
    %0 = vector.load %arg2[%c0, %c0_0] : memref<16x64xf32, #tpu.memory_space<vmem>>, vector<16x64xf32>
    %1 = arith.truncf %0 : vector<16x64xf32> to vector<16x64xbf16>
    %c0_1 = arith.constant 0 : index
    %c0_2 = arith.constant 0 : index
    %2 = vector.load %arg3[%c0_1, %c0_2] : memref<64x512xbf16, #tpu.memory_space<vmem>>, vector<64x512xbf16>
    %cst = arith.constant dense<0.000000e+00> : vector<16x512xf32>
    %3 = tpu.matmul %1, %2, %cst {dimension_numbers = #tpu.dot_dimension_numbers<[1], [0], [0], [1], [0, 0, 1, 1], [], []>} : vector<16x64xbf16>, vector<64x512xbf16>, vector<16x512xf32> -> vector<16x512xf32>
    %c0_3 = arith.constant 0 : index
    %c0_4 = arith.constant 0 : index
    %4 = vector.load %arg4[%c0_3, %c0_4] : memref<1x512xf32, #tpu.memory_space<vmem>>, vector<1x512xf32>
    %5 = vector.broadcast %4 : vector<1x512xf32> to vector<16x512xf32>
    %6 = arith.addf %3, %5 : vector<16x512xf32>
    %c0_5 = arith.constant 0 : index
    %c0_6 = arith.constant 0 : index
    %7 = vector.load %arg5[%c0_5, %c0_6] : memref<16x512xf32, #tpu.memory_space<vmem>>, vector<16x512xf32>
    tpu.vector_store %arg5[%c0_5, %c0_6], %6 {strides = array<i32>} : memref<16x512xf32, #tpu.memory_space<vmem>>, vector<16x512xf32>,
    return
  }
  func.func @transform_0(%arg0: i32, %arg1: i32) -> (i32, i32) {
    %c0_i32 = arith.constant 0 : i32
    %c0_i32_0 = arith.constant 0 : i32
    return %arg0, %c0_i32 : i32, i32
  }
  func.func @transform_1(%arg0: i32, %arg1: i32) -> (i32, i32) {
    %c0_i32 = arith.constant 0 : i32
    %c0_i32_0 = arith.constant 0 : i32
    return %c0_i32, %arg1 : i32, i32
  }
  func.func @transform_2(%arg0: i32, %arg1: i32) -> (i32, i32) {
    %c0_i32 = arith.constant 0 : i32
    %c0_i32_0 = arith.constant 0 : i32
    return %c0_i32, %arg1 : i32, i32
  }
  func.func @transform_3(%arg0: i32, %arg1: i32) -> (i32, i32) {
    %c0_i32 = arith.constant 0 : i32
    return %arg0, %arg1 : i32, i32
  }
}

module attributes {stable_mosaic.version = 11 : i64} {
  func.func @_lstm_chunk_kernel(%arg0: i32, %arg1: memref<8x2x512xf32, #tpu.memory_space<vmem>>, %arg2: memref<1x512xf32, #tpu.memory_space<vmem>>, %arg3: memref<128x512xbf16, #tpu.memory_space<vmem>>, %arg4: memref<8x2x128xbf16, #tpu.memory_space<vmem>>, %arg5: memref<2x128xf32, #tpu.memory_space<vmem>>, %arg6: memref<2x128xf32, #tpu.memory_space<vmem>>) attributes {dimension_semantics = [#tpu.dimension_semantics<arbitrary>], iteration_bounds = array<i64: 2>, scalar_prefetch = 0 : i64, scratch_operands = 2 : i64, tpu.core_type = #tpu.core_type<tc>, window_params = [{transform_indices = @transform_0, window_bounds = array<i64: 8, 2, 512>}, {pipeline_mode = #tpu.pipeline_mode<synchronous>, transform_indices = @transform_1, window_bounds = array<i64: 1, 512>}, {pipeline_mode = #tpu.pipeline_mode<synchronous>, transform_indices = @transform_2, window_bounds = array<i64: 128, 512>}, {transform_indices = @transform_3, window_bounds = array<i64: 8, 2, 128>}]} {
    %c0_i32 = arith.constant 0 : i32
    %0 = arith.cmpi eq, %arg0, %c0_i32 : i32
    %1 = arith.extui %0 : i1 to i32
    %c0_i32_0 = arith.constant 0 : i32
    %2 = arith.cmpi ne, %1, %c0_i32_0 : i32
    scf.if %2 {
      %cst_69 = arith.constant 0.000000e+00 : f32
      %266 = vector.broadcast %cst_69 : f32 to vector<2x128xf32>
      %c0_70 = arith.constant 0 : index
      %c0_71 = arith.constant 0 : index
      %267 = vector.load %arg5[%c0_70, %c0_71] : memref<2x128xf32, #tpu.memory_space<vmem>>, vector<2x128xf32>
      tpu.vector_store %arg5[%c0_70, %c0_71], %266 {strides = array<i32>} : memref<2x128xf32, #tpu.memory_space<vmem>>, vector<2x128xf32>,
      %cst_72 = arith.constant 0.000000e+00 : f32
      %268 = vector.broadcast %cst_72 : f32 to vector<2x128xf32>
      %c0_73 = arith.constant 0 : index
      %c0_74 = arith.constant 0 : index
      %269 = vector.load %arg6[%c0_73, %c0_74] : memref<2x128xf32, #tpu.memory_space<vmem>>, vector<2x128xf32>
      tpu.vector_store %arg6[%c0_73, %c0_74], %268 {strides = array<i32>} : memref<2x128xf32, #tpu.memory_space<vmem>>, vector<2x128xf32>,
    } else {
    }
    %c0 = arith.constant 0 : index
    %c0_1 = arith.constant 0 : index
    %3 = vector.load %arg3[%c0, %c0_1] : memref<128x512xbf16, #tpu.memory_space<vmem>>, vector<128x512xbf16>
    %c0_2 = arith.constant 0 : index
    %c0_3 = arith.constant 0 : index
    %4 = vector.load %arg2[%c0_2, %c0_3] : memref<1x512xf32, #tpu.memory_space<vmem>>, vector<1x512xf32>
    %c8_i32 = arith.constant 8 : i32
    %5 = arith.muli %arg0, %c8_i32 : i32
    %c0_4 = arith.constant 0 : index
    %c0_5 = arith.constant 0 : index
    %6 = vector.load %arg5[%c0_4, %c0_5] : memref<2x128xf32, #tpu.memory_space<vmem>>, vector<2x128xf32>
    %c0_6 = arith.constant 0 : index
    %c0_7 = arith.constant 0 : index
    %7 = vector.load %arg6[%c0_6, %c0_7] : memref<2x128xf32, #tpu.memory_space<vmem>>, vector<2x128xf32>
    %c0_i32_8 = arith.constant 0 : i32
    %8 = arith.addi %5, %c0_i32_8 : i32
    %c8_i32_9 = arith.constant 8 : i32
    %9 = arith.cmpi slt, %8, %c8_i32_9 : i32
    %10 = arith.index_cast %c0_i32_8 : i32 to index
    %c0_10 = arith.constant 0 : index
    %c0_11 = arith.constant 0 : index
    %11 = vector.load %arg1[%10, %c0_10, %c0_11] : memref<8x2x512xf32, #tpu.memory_space<vmem>>, vector<1x2x512xf32>
    %12 = vector.shape_cast %11 : vector<1x2x512xf32> to vector<2x512xf32>
    %13 = vector.shape_cast %4 : vector<1x512xf32> to vector<1x512xf32>
    %14 = vector.broadcast %13 : vector<1x512xf32> to vector<2x512xf32>
    %15 = arith.select %9, %12, %14 : vector<2x512xf32>
    %16 = arith.truncf %6 : vector<2x128xf32> to vector<2x128xbf16>
    %cst = arith.constant dense<0.000000e+00> : vector<2x512xf32>
    %17 = tpu.matmul %16, %3, %cst {dimension_numbers = #tpu.dot_dimension_numbers<[1], [0], [0], [1], [0, 0, 1, 1], [], []>} : vector<2x128xbf16>, vector<128x512xbf16>, vector<2x512xf32> -> vector<2x512xf32>
    %18 = arith.addf %15, %17 : vector<2x512xf32>
    %19 = vector.extract_strided_slice %18 {offsets = [0, 0], sizes = [2, 384], strides = [1, 1]} : vector<2x512xf32> to vector<2x384xf32>
    %20 = arith.negf %19 : vector<2x384xf32>
    %21 = math.exp %20 : vector<2x384xf32>
    %cst_12 = arith.constant 1.000000e+00 : f32
    %22 = vector.broadcast %cst_12 : f32 to vector<2x384xf32>
    %23 = arith.addf %22, %21 : vector<2x384xf32>
    %24 = arith.divf %22, %23 : vector<2x384xf32>
    %25 = vector.extract_strided_slice %18 {offsets = [0, 384], sizes = [2, 128], strides = [1, 1]} : vector<2x512xf32> to vector<2x128xf32>
    %26 = math.tanh %25 : vector<2x128xf32>
    %27 = vector.extract_strided_slice %24 {offsets = [0, 128], sizes = [2, 128], strides = [1, 1]} : vector<2x384xf32> to vector<2x128xf32>
    %28 = arith.mulf %27, %7 : vector<2x128xf32>
    %29 = vector.extract_strided_slice %24 {offsets = [0, 0], sizes = [2, 128], strides = [1, 1]} : vector<2x384xf32> to vector<2x128xf32>
    %30 = arith.mulf %29, %26 : vector<2x128xf32>
    %31 = arith.addf %28, %30 : vector<2x128xf32>
    %32 = vector.extract_strided_slice %24 {offsets = [0, 256], sizes = [2, 128], strides = [1, 1]} : vector<2x384xf32> to vector<2x128xf32>
    %33 = math.tanh %31 : vector<2x128xf32>
    %34 = arith.mulf %32, %33 : vector<2x128xf32>
    %35 = arith.truncf %34 : vector<2x128xf32> to vector<2x128xbf16>
    %36 = arith.index_cast %c0_i32_8 : i32 to index
    %c0_13 = arith.constant 0 : index
    %c0_14 = arith.constant 0 : index
    %37 = vector.load %arg4[%36, %c0_13, %c0_14] : memref<8x2x128xbf16, #tpu.memory_space<vmem>>, vector<1x2x128xbf16>
    %38 = vector.shape_cast %37 : vector<1x2x128xbf16> to vector<2x128xbf16>
    %39 = vector.shape_cast %35 : vector<2x128xbf16> to vector<1x2x128xbf16>
    tpu.vector_store %arg4[%36, %c0_13, %c0_14], %39 {strides = array<i32>} : memref<8x2x128xbf16, #tpu.memory_space<vmem>>, vector<1x2x128xbf16>,
    %c1_i32 = arith.constant 1 : i32
    %40 = arith.addi %5, %c1_i32 : i32
    %c8_i32_15 = arith.constant 8 : i32
    %41 = arith.cmpi slt, %40, %c8_i32_15 : i32
    %42 = arith.index_cast %c1_i32 : i32 to index
    %c0_16 = arith.constant 0 : index
    %c0_17 = arith.constant 0 : index
    %43 = vector.load %arg1[%42, %c0_16, %c0_17] : memref<8x2x512xf32, #tpu.memory_space<vmem>>, vector<1x2x512xf32>
    %44 = vector.shape_cast %43 : vector<1x2x512xf32> to vector<2x512xf32>
    %45 = vector.shape_cast %4 : vector<1x512xf32> to vector<1x512xf32>
    %46 = vector.broadcast %45 : vector<1x512xf32> to vector<2x512xf32>
    %47 = arith.select %41, %44, %46 : vector<2x512xf32>
    %48 = arith.truncf %34 : vector<2x128xf32> to vector<2x128xbf16>
    %cst_18 = arith.constant dense<0.000000e+00> : vector<2x512xf32>
    %49 = tpu.matmul %48, %3, %cst_18 {dimension_numbers = #tpu.dot_dimension_numbers<[1], [0], [0], [1], [0, 0, 1, 1], [], []>} : vector<2x128xbf16>, vector<128x512xbf16>, vector<2x512xf32> -> vector<2x512xf32>
    %50 = arith.addf %47, %49 : vector<2x512xf32>
    %51 = vector.extract_strided_slice %50 {offsets = [0, 0], sizes = [2, 384], strides = [1, 1]} : vector<2x512xf32> to vector<2x384xf32>
    %52 = arith.negf %51 : vector<2x384xf32>
    %53 = math.exp %52 : vector<2x384xf32>
    %cst_19 = arith.constant 1.000000e+00 : f32
    %54 = vector.broadcast %cst_19 : f32 to vector<2x384xf32>
    %55 = arith.addf %54, %53 : vector<2x384xf32>
    %56 = arith.divf %54, %55 : vector<2x384xf32>
    %57 = vector.extract_strided_slice %50 {offsets = [0, 384], sizes = [2, 128], strides = [1, 1]} : vector<2x512xf32> to vector<2x128xf32>
    %58 = math.tanh %57 : vector<2x128xf32>
    %59 = vector.extract_strided_slice %56 {offsets = [0, 128], sizes = [2, 128], strides = [1, 1]} : vector<2x384xf32> to vector<2x128xf32>
    %60 = arith.mulf %59, %31 : vector<2x128xf32>
    %61 = vector.extract_strided_slice %56 {offsets = [0, 0], sizes = [2, 128], strides = [1, 1]} : vector<2x384xf32> to vector<2x128xf32>
    %62 = arith.mulf %61, %58 : vector<2x128xf32>
    %63 = arith.addf %60, %62 : vector<2x128xf32>
    %64 = vector.extract_strided_slice %56 {offsets = [0, 256], sizes = [2, 128], strides = [1, 1]} : vector<2x384xf32> to vector<2x128xf32>
    %65 = math.tanh %63 : vector<2x128xf32>
    %66 = arith.mulf %64, %65 : vector<2x128xf32>
    %67 = arith.truncf %66 : vector<2x128xf32> to vector<2x128xbf16>
    %68 = arith.index_cast %c1_i32 : i32 to index
    %c0_20 = arith.constant 0 : index
    %c0_21 = arith.constant 0 : index
    %69 = vector.load %arg4[%68, %c0_20, %c0_21] : memref<8x2x128xbf16, #tpu.memory_space<vmem>>, vector<1x2x128xbf16>
    %70 = vector.shape_cast %69 : vector<1x2x128xbf16> to vector<2x128xbf16>
    %71 = vector.shape_cast %67 : vector<2x128xbf16> to vector<1x2x128xbf16>
    tpu.vector_store %arg4[%68, %c0_20, %c0_21], %71 {strides = array<i32>} : memref<8x2x128xbf16, #tpu.memory_space<vmem>>, vector<1x2x128xbf16>,
    %c2_i32 = arith.constant 2 : i32
    %72 = arith.addi %5, %c2_i32 : i32
    %c8_i32_22 = arith.constant 8 : i32
    %73 = arith.cmpi slt, %72, %c8_i32_22 : i32
    %74 = arith.index_cast %c2_i32 : i32 to index
    %c0_23 = arith.constant 0 : index
    %c0_24 = arith.constant 0 : index
    %75 = vector.load %arg1[%74, %c0_23, %c0_24] : memref<8x2x512xf32, #tpu.memory_space<vmem>>, vector<1x2x512xf32>
    %76 = vector.shape_cast %75 : vector<1x2x512xf32> to vector<2x512xf32>
    %77 = vector.shape_cast %4 : vector<1x512xf32> to vector<1x512xf32>
    %78 = vector.broadcast %77 : vector<1x512xf32> to vector<2x512xf32>
    %79 = arith.select %73, %76, %78 : vector<2x512xf32>
    %80 = arith.truncf %66 : vector<2x128xf32> to vector<2x128xbf16>
    %cst_25 = arith.constant dense<0.000000e+00> : vector<2x512xf32>
    %81 = tpu.matmul %80, %3, %cst_25 {dimension_numbers = #tpu.dot_dimension_numbers<[1], [0], [0], [1], [0, 0, 1, 1], [], []>} : vector<2x128xbf16>, vector<128x512xbf16>, vector<2x512xf32> -> vector<2x512xf32>
    %82 = arith.addf %79, %81 : vector<2x512xf32>
    %83 = vector.extract_strided_slice %82 {offsets = [0, 0], sizes = [2, 384], strides = [1, 1]} : vector<2x512xf32> to vector<2x384xf32>
    %84 = arith.negf %83 : vector<2x384xf32>
    %85 = math.exp %84 : vector<2x384xf32>
    %cst_26 = arith.constant 1.000000e+00 : f32
    %86 = vector.broadcast %cst_26 : f32 to vector<2x384xf32>
    %87 = arith.addf %86, %85 : vector<2x384xf32>
    %88 = arith.divf %86, %87 : vector<2x384xf32>
    %89 = vector.extract_strided_slice %82 {offsets = [0, 384], sizes = [2, 128], strides = [1, 1]} : vector<2x512xf32> to vector<2x128xf32>
    %90 = math.tanh %89 : vector<2x128xf32>
    %91 = vector.extract_strided_slice %88 {offsets = [0, 128], sizes = [2, 128], strides = [1, 1]} : vector<2x384xf32> to vector<2x128xf32>
    %92 = arith.mulf %91, %63 : vector<2x128xf32>
    %93 = vector.extract_strided_slice %88 {offsets = [0, 0], sizes = [2, 128], strides = [1, 1]} : vector<2x384xf32> to vector<2x128xf32>
    %94 = arith.mulf %93, %90 : vector<2x128xf32>
    %95 = arith.addf %92, %94 : vector<2x128xf32>
    %96 = vector.extract_strided_slice %88 {offsets = [0, 256], sizes = [2, 128], strides = [1, 1]} : vector<2x384xf32> to vector<2x128xf32>
    %97 = math.tanh %95 : vector<2x128xf32>
    %98 = arith.mulf %96, %97 : vector<2x128xf32>
    %99 = arith.truncf %98 : vector<2x128xf32> to vector<2x128xbf16>
    %100 = arith.index_cast %c2_i32 : i32 to index
    %c0_27 = arith.constant 0 : index
    %c0_28 = arith.constant 0 : index
    %101 = vector.load %arg4[%100, %c0_27, %c0_28] : memref<8x2x128xbf16, #tpu.memory_space<vmem>>, vector<1x2x128xbf16>
    %102 = vector.shape_cast %101 : vector<1x2x128xbf16> to vector<2x128xbf16>
    %103 = vector.shape_cast %99 : vector<2x128xbf16> to vector<1x2x128xbf16>
    tpu.vector_store %arg4[%100, %c0_27, %c0_28], %103 {strides = array<i32>} : memref<8x2x128xbf16, #tpu.memory_space<vmem>>, vector<1x2x128xbf16>,
    %c3_i32 = arith.constant 3 : i32
    %104 = arith.addi %5, %c3_i32 : i32
    %c8_i32_29 = arith.constant 8 : i32
    %105 = arith.cmpi slt, %104, %c8_i32_29 : i32
    %106 = arith.index_cast %c3_i32 : i32 to index
    %c0_30 = arith.constant 0 : index
    %c0_31 = arith.constant 0 : index
    %107 = vector.load %arg1[%106, %c0_30, %c0_31] : memref<8x2x512xf32, #tpu.memory_space<vmem>>, vector<1x2x512xf32>
    %108 = vector.shape_cast %107 : vector<1x2x512xf32> to vector<2x512xf32>
    %109 = vector.shape_cast %4 : vector<1x512xf32> to vector<1x512xf32>
    %110 = vector.broadcast %109 : vector<1x512xf32> to vector<2x512xf32>
    %111 = arith.select %105, %108, %110 : vector<2x512xf32>
    %112 = arith.truncf %98 : vector<2x128xf32> to vector<2x128xbf16>
    %cst_32 = arith.constant dense<0.000000e+00> : vector<2x512xf32>
    %113 = tpu.matmul %112, %3, %cst_32 {dimension_numbers = #tpu.dot_dimension_numbers<[1], [0], [0], [1], [0, 0, 1, 1], [], []>} : vector<2x128xbf16>, vector<128x512xbf16>, vector<2x512xf32> -> vector<2x512xf32>
    %114 = arith.addf %111, %113 : vector<2x512xf32>
    %115 = vector.extract_strided_slice %114 {offsets = [0, 0], sizes = [2, 384], strides = [1, 1]} : vector<2x512xf32> to vector<2x384xf32>
    %116 = arith.negf %115 : vector<2x384xf32>
    %117 = math.exp %116 : vector<2x384xf32>
    %cst_33 = arith.constant 1.000000e+00 : f32
    %118 = vector.broadcast %cst_33 : f32 to vector<2x384xf32>
    %119 = arith.addf %118, %117 : vector<2x384xf32>
    %120 = arith.divf %118, %119 : vector<2x384xf32>
    %121 = vector.extract_strided_slice %114 {offsets = [0, 384], sizes = [2, 128], strides = [1, 1]} : vector<2x512xf32> to vector<2x128xf32>
    %122 = math.tanh %121 : vector<2x128xf32>
    %123 = vector.extract_strided_slice %120 {offsets = [0, 128], sizes = [2, 128], strides = [1, 1]} : vector<2x384xf32> to vector<2x128xf32>
    %124 = arith.mulf %123, %95 : vector<2x128xf32>
    %125 = vector.extract_strided_slice %120 {offsets = [0, 0], sizes = [2, 128], strides = [1, 1]} : vector<2x384xf32> to vector<2x128xf32>
    %126 = arith.mulf %125, %122 : vector<2x128xf32>
    %127 = arith.addf %124, %126 : vector<2x128xf32>
    %128 = vector.extract_strided_slice %120 {offsets = [0, 256], sizes = [2, 128], strides = [1, 1]} : vector<2x384xf32> to vector<2x128xf32>
    %129 = math.tanh %127 : vector<2x128xf32>
    %130 = arith.mulf %128, %129 : vector<2x128xf32>
    %131 = arith.truncf %130 : vector<2x128xf32> to vector<2x128xbf16>
    %132 = arith.index_cast %c3_i32 : i32 to index
    %c0_34 = arith.constant 0 : index
    %c0_35 = arith.constant 0 : index
    %133 = vector.load %arg4[%132, %c0_34, %c0_35] : memref<8x2x128xbf16, #tpu.memory_space<vmem>>, vector<1x2x128xbf16>
    %134 = vector.shape_cast %133 : vector<1x2x128xbf16> to vector<2x128xbf16>
    %135 = vector.shape_cast %131 : vector<2x128xbf16> to vector<1x2x128xbf16>
    tpu.vector_store %arg4[%132, %c0_34, %c0_35], %135 {strides = array<i32>} : memref<8x2x128xbf16, #tpu.memory_space<vmem>>, vector<1x2x128xbf16>,
    %c4_i32 = arith.constant 4 : i32
    %136 = arith.addi %5, %c4_i32 : i32
    %c8_i32_36 = arith.constant 8 : i32
    %137 = arith.cmpi slt, %136, %c8_i32_36 : i32
    %138 = arith.index_cast %c4_i32 : i32 to index
    %c0_37 = arith.constant 0 : index
    %c0_38 = arith.constant 0 : index
    %139 = vector.load %arg1[%138, %c0_37, %c0_38] : memref<8x2x512xf32, #tpu.memory_space<vmem>>, vector<1x2x512xf32>
    %140 = vector.shape_cast %139 : vector<1x2x512xf32> to vector<2x512xf32>
    %141 = vector.shape_cast %4 : vector<1x512xf32> to vector<1x512xf32>
    %142 = vector.broadcast %141 : vector<1x512xf32> to vector<2x512xf32>
    %143 = arith.select %137, %140, %142 : vector<2x512xf32>
    %144 = arith.truncf %130 : vector<2x128xf32> to vector<2x128xbf16>
    %cst_39 = arith.constant dense<0.000000e+00> : vector<2x512xf32>
    %145 = tpu.matmul %144, %3, %cst_39 {dimension_numbers = #tpu.dot_dimension_numbers<[1], [0], [0], [1], [0, 0, 1, 1], [], []>} : vector<2x128xbf16>, vector<128x512xbf16>, vector<2x512xf32> -> vector<2x512xf32>
    %146 = arith.addf %143, %145 : vector<2x512xf32>
    %147 = vector.extract_strided_slice %146 {offsets = [0, 0], sizes = [2, 384], strides = [1, 1]} : vector<2x512xf32> to vector<2x384xf32>
    %148 = arith.negf %147 : vector<2x384xf32>
    %149 = math.exp %148 : vector<2x384xf32>
    %cst_40 = arith.constant 1.000000e+00 : f32
    %150 = vector.broadcast %cst_40 : f32 to vector<2x384xf32>
    %151 = arith.addf %150, %149 : vector<2x384xf32>
    %152 = arith.divf %150, %151 : vector<2x384xf32>
    %153 = vector.extract_strided_slice %146 {offsets = [0, 384], sizes = [2, 128], strides = [1, 1]} : vector<2x512xf32> to vector<2x128xf32>
    %154 = math.tanh %153 : vector<2x128xf32>
    %155 = vector.extract_strided_slice %152 {offsets = [0, 128], sizes = [2, 128], strides = [1, 1]} : vector<2x384xf32> to vector<2x128xf32>
    %156 = arith.mulf %155, %127 : vector<2x128xf32>
    %157 = vector.extract_strided_slice %152 {offsets = [0, 0], sizes = [2, 128], strides = [1, 1]} : vector<2x384xf32> to vector<2x128xf32>
    %158 = arith.mulf %157, %154 : vector<2x128xf32>
    %159 = arith.addf %156, %158 : vector<2x128xf32>
    %160 = vector.extract_strided_slice %152 {offsets = [0, 256], sizes = [2, 128], strides = [1, 1]} : vector<2x384xf32> to vector<2x128xf32>
    %161 = math.tanh %159 : vector<2x128xf32>
    %162 = arith.mulf %160, %161 : vector<2x128xf32>
    %163 = arith.truncf %162 : vector<2x128xf32> to vector<2x128xbf16>
    %164 = arith.index_cast %c4_i32 : i32 to index
    %c0_41 = arith.constant 0 : index
    %c0_42 = arith.constant 0 : index
    %165 = vector.load %arg4[%164, %c0_41, %c0_42] : memref<8x2x128xbf16, #tpu.memory_space<vmem>>, vector<1x2x128xbf16>
    %166 = vector.shape_cast %165 : vector<1x2x128xbf16> to vector<2x128xbf16>
    %167 = vector.shape_cast %163 : vector<2x128xbf16> to vector<1x2x128xbf16>
    tpu.vector_store %arg4[%164, %c0_41, %c0_42], %167 {strides = array<i32>} : memref<8x2x128xbf16, #tpu.memory_space<vmem>>, vector<1x2x128xbf16>,
    %c5_i32 = arith.constant 5 : i32
    %168 = arith.addi %5, %c5_i32 : i32
    %c8_i32_43 = arith.constant 8 : i32
    %169 = arith.cmpi slt, %168, %c8_i32_43 : i32
    %170 = arith.index_cast %c5_i32 : i32 to index
    %c0_44 = arith.constant 0 : index
    %c0_45 = arith.constant 0 : index
    %171 = vector.load %arg1[%170, %c0_44, %c0_45] : memref<8x2x512xf32, #tpu.memory_space<vmem>>, vector<1x2x512xf32>
    %172 = vector.shape_cast %171 : vector<1x2x512xf32> to vector<2x512xf32>
    %173 = vector.shape_cast %4 : vector<1x512xf32> to vector<1x512xf32>
    %174 = vector.broadcast %173 : vector<1x512xf32> to vector<2x512xf32>
    %175 = arith.select %169, %172, %174 : vector<2x512xf32>
    %176 = arith.truncf %162 : vector<2x128xf32> to vector<2x128xbf16>
    %cst_46 = arith.constant dense<0.000000e+00> : vector<2x512xf32>
    %177 = tpu.matmul %176, %3, %cst_46 {dimension_numbers = #tpu.dot_dimension_numbers<[1], [0], [0], [1], [0, 0, 1, 1], [], []>} : vector<2x128xbf16>, vector<128x512xbf16>, vector<2x512xf32> -> vector<2x512xf32>
    %178 = arith.addf %175, %177 : vector<2x512xf32>
    %179 = vector.extract_strided_slice %178 {offsets = [0, 0], sizes = [2, 384], strides = [1, 1]} : vector<2x512xf32> to vector<2x384xf32>
    %180 = arith.negf %179 : vector<2x384xf32>
    %181 = math.exp %180 : vector<2x384xf32>
    %cst_47 = arith.constant 1.000000e+00 : f32
    %182 = vector.broadcast %cst_47 : f32 to vector<2x384xf32>
    %183 = arith.addf %182, %181 : vector<2x384xf32>
    %184 = arith.divf %182, %183 : vector<2x384xf32>
    %185 = vector.extract_strided_slice %178 {offsets = [0, 384], sizes = [2, 128], strides = [1, 1]} : vector<2x512xf32> to vector<2x128xf32>
    %186 = math.tanh %185 : vector<2x128xf32>
    %187 = vector.extract_strided_slice %184 {offsets = [0, 128], sizes = [2, 128], strides = [1, 1]} : vector<2x384xf32> to vector<2x128xf32>
    %188 = arith.mulf %187, %159 : vector<2x128xf32>
    %189 = vector.extract_strided_slice %184 {offsets = [0, 0], sizes = [2, 128], strides = [1, 1]} : vector<2x384xf32> to vector<2x128xf32>
    %190 = arith.mulf %189, %186 : vector<2x128xf32>
    %191 = arith.addf %188, %190 : vector<2x128xf32>
    %192 = vector.extract_strided_slice %184 {offsets = [0, 256], sizes = [2, 128], strides = [1, 1]} : vector<2x384xf32> to vector<2x128xf32>
    %193 = math.tanh %191 : vector<2x128xf32>
    %194 = arith.mulf %192, %193 : vector<2x128xf32>
    %195 = arith.truncf %194 : vector<2x128xf32> to vector<2x128xbf16>
    %196 = arith.index_cast %c5_i32 : i32 to index
    %c0_48 = arith.constant 0 : index
    %c0_49 = arith.constant 0 : index
    %197 = vector.load %arg4[%196, %c0_48, %c0_49] : memref<8x2x128xbf16, #tpu.memory_space<vmem>>, vector<1x2x128xbf16>
    %198 = vector.shape_cast %197 : vector<1x2x128xbf16> to vector<2x128xbf16>
    %199 = vector.shape_cast %195 : vector<2x128xbf16> to vector<1x2x128xbf16>
    tpu.vector_store %arg4[%196, %c0_48, %c0_49], %199 {strides = array<i32>} : memref<8x2x128xbf16, #tpu.memory_space<vmem>>, vector<1x2x128xbf16>,
    %c6_i32 = arith.constant 6 : i32
    %200 = arith.addi %5, %c6_i32 : i32
    %c8_i32_50 = arith.constant 8 : i32
    %201 = arith.cmpi slt, %200, %c8_i32_50 : i32
    %202 = arith.index_cast %c6_i32 : i32 to index
    %c0_51 = arith.constant 0 : index
    %c0_52 = arith.constant 0 : index
    %203 = vector.load %arg1[%202, %c0_51, %c0_52] : memref<8x2x512xf32, #tpu.memory_space<vmem>>, vector<1x2x512xf32>
    %204 = vector.shape_cast %203 : vector<1x2x512xf32> to vector<2x512xf32>
    %205 = vector.shape_cast %4 : vector<1x512xf32> to vector<1x512xf32>
    %206 = vector.broadcast %205 : vector<1x512xf32> to vector<2x512xf32>
    %207 = arith.select %201, %204, %206 : vector<2x512xf32>
    %208 = arith.truncf %194 : vector<2x128xf32> to vector<2x128xbf16>
    %cst_53 = arith.constant dense<0.000000e+00> : vector<2x512xf32>
    %209 = tpu.matmul %208, %3, %cst_53 {dimension_numbers = #tpu.dot_dimension_numbers<[1], [0], [0], [1], [0, 0, 1, 1], [], []>} : vector<2x128xbf16>, vector<128x512xbf16>, vector<2x512xf32> -> vector<2x512xf32>
    %210 = arith.addf %207, %209 : vector<2x512xf32>
    %211 = vector.extract_strided_slice %210 {offsets = [0, 0], sizes = [2, 384], strides = [1, 1]} : vector<2x512xf32> to vector<2x384xf32>
    %212 = arith.negf %211 : vector<2x384xf32>
    %213 = math.exp %212 : vector<2x384xf32>
    %cst_54 = arith.constant 1.000000e+00 : f32
    %214 = vector.broadcast %cst_54 : f32 to vector<2x384xf32>
    %215 = arith.addf %214, %213 : vector<2x384xf32>
    %216 = arith.divf %214, %215 : vector<2x384xf32>
    %217 = vector.extract_strided_slice %210 {offsets = [0, 384], sizes = [2, 128], strides = [1, 1]} : vector<2x512xf32> to vector<2x128xf32>
    %218 = math.tanh %217 : vector<2x128xf32>
    %219 = vector.extract_strided_slice %216 {offsets = [0, 128], sizes = [2, 128], strides = [1, 1]} : vector<2x384xf32> to vector<2x128xf32>
    %220 = arith.mulf %219, %191 : vector<2x128xf32>
    %221 = vector.extract_strided_slice %216 {offsets = [0, 0], sizes = [2, 128], strides = [1, 1]} : vector<2x384xf32> to vector<2x128xf32>
    %222 = arith.mulf %221, %218 : vector<2x128xf32>
    %223 = arith.addf %220, %222 : vector<2x128xf32>
    %224 = vector.extract_strided_slice %216 {offsets = [0, 256], sizes = [2, 128], strides = [1, 1]} : vector<2x384xf32> to vector<2x128xf32>
    %225 = math.tanh %223 : vector<2x128xf32>
    %226 = arith.mulf %224, %225 : vector<2x128xf32>
    %227 = arith.truncf %226 : vector<2x128xf32> to vector<2x128xbf16>
    %228 = arith.index_cast %c6_i32 : i32 to index
    %c0_55 = arith.constant 0 : index
    %c0_56 = arith.constant 0 : index
    %229 = vector.load %arg4[%228, %c0_55, %c0_56] : memref<8x2x128xbf16, #tpu.memory_space<vmem>>, vector<1x2x128xbf16>
    %230 = vector.shape_cast %229 : vector<1x2x128xbf16> to vector<2x128xbf16>
    %231 = vector.shape_cast %227 : vector<2x128xbf16> to vector<1x2x128xbf16>
    tpu.vector_store %arg4[%228, %c0_55, %c0_56], %231 {strides = array<i32>} : memref<8x2x128xbf16, #tpu.memory_space<vmem>>, vector<1x2x128xbf16>,
    %c7_i32 = arith.constant 7 : i32
    %232 = arith.addi %5, %c7_i32 : i32
    %c8_i32_57 = arith.constant 8 : i32
    %233 = arith.cmpi slt, %232, %c8_i32_57 : i32
    %234 = arith.index_cast %c7_i32 : i32 to index
    %c0_58 = arith.constant 0 : index
    %c0_59 = arith.constant 0 : index
    %235 = vector.load %arg1[%234, %c0_58, %c0_59] : memref<8x2x512xf32, #tpu.memory_space<vmem>>, vector<1x2x512xf32>
    %236 = vector.shape_cast %235 : vector<1x2x512xf32> to vector<2x512xf32>
    %237 = vector.shape_cast %4 : vector<1x512xf32> to vector<1x512xf32>
    %238 = vector.broadcast %237 : vector<1x512xf32> to vector<2x512xf32>
    %239 = arith.select %233, %236, %238 : vector<2x512xf32>
    %240 = arith.truncf %226 : vector<2x128xf32> to vector<2x128xbf16>
    %cst_60 = arith.constant dense<0.000000e+00> : vector<2x512xf32>
    %241 = tpu.matmul %240, %3, %cst_60 {dimension_numbers = #tpu.dot_dimension_numbers<[1], [0], [0], [1], [0, 0, 1, 1], [], []>} : vector<2x128xbf16>, vector<128x512xbf16>, vector<2x512xf32> -> vector<2x512xf32>
    %242 = arith.addf %239, %241 : vector<2x512xf32>
    %243 = vector.extract_strided_slice %242 {offsets = [0, 0], sizes = [2, 384], strides = [1, 1]} : vector<2x512xf32> to vector<2x384xf32>
    %244 = arith.negf %243 : vector<2x384xf32>
    %245 = math.exp %244 : vector<2x384xf32>
    %cst_61 = arith.constant 1.000000e+00 : f32
    %246 = vector.broadcast %cst_61 : f32 to vector<2x384xf32>
    %247 = arith.addf %246, %245 : vector<2x384xf32>
    %248 = arith.divf %246, %247 : vector<2x384xf32>
    %249 = vector.extract_strided_slice %242 {offsets = [0, 384], sizes = [2, 128], strides = [1, 1]} : vector<2x512xf32> to vector<2x128xf32>
    %250 = math.tanh %249 : vector<2x128xf32>
    %251 = vector.extract_strided_slice %248 {offsets = [0, 128], sizes = [2, 128], strides = [1, 1]} : vector<2x384xf32> to vector<2x128xf32>
    %252 = arith.mulf %251, %223 : vector<2x128xf32>
    %253 = vector.extract_strided_slice %248 {offsets = [0, 0], sizes = [2, 128], strides = [1, 1]} : vector<2x384xf32> to vector<2x128xf32>
    %254 = arith.mulf %253, %250 : vector<2x128xf32>
    %255 = arith.addf %252, %254 : vector<2x128xf32>
    %256 = vector.extract_strided_slice %248 {offsets = [0, 256], sizes = [2, 128], strides = [1, 1]} : vector<2x384xf32> to vector<2x128xf32>
    %257 = math.tanh %255 : vector<2x128xf32>
    %258 = arith.mulf %256, %257 : vector<2x128xf32>
    %259 = arith.truncf %258 : vector<2x128xf32> to vector<2x128xbf16>
    %260 = arith.index_cast %c7_i32 : i32 to index
    %c0_62 = arith.constant 0 : index
    %c0_63 = arith.constant 0 : index
    %261 = vector.load %arg4[%260, %c0_62, %c0_63] : memref<8x2x128xbf16, #tpu.memory_space<vmem>>, vector<1x2x128xbf16>
    %262 = vector.shape_cast %261 : vector<1x2x128xbf16> to vector<2x128xbf16>
    %263 = vector.shape_cast %259 : vector<2x128xbf16> to vector<1x2x128xbf16>
    tpu.vector_store %arg4[%260, %c0_62, %c0_63], %263 {strides = array<i32>} : memref<8x2x128xbf16, #tpu.memory_space<vmem>>, vector<1x2x128xbf16>,
    %c8_i32_64 = arith.constant 8 : i32
    %c0_65 = arith.constant 0 : index
    %c0_66 = arith.constant 0 : index
    %264 = vector.load %arg5[%c0_65, %c0_66] : memref<2x128xf32, #tpu.memory_space<vmem>>, vector<2x128xf32>
    tpu.vector_store %arg5[%c0_65, %c0_66], %258 {strides = array<i32>} : memref<2x128xf32, #tpu.memory_space<vmem>>, vector<2x128xf32>,
    %c0_67 = arith.constant 0 : index
    %c0_68 = arith.constant 0 : index
    %265 = vector.load %arg6[%c0_67, %c0_68] : memref<2x128xf32, #tpu.memory_space<vmem>>, vector<2x128xf32>
    tpu.vector_store %arg6[%c0_67, %c0_68], %255 {strides = array<i32>} : memref<2x128xf32, #tpu.memory_space<vmem>>, vector<2x128xf32>,
    return
  }
  func.func @transform_0(%arg0: i32) -> (i32, i32, i32) {
    %c0_i32 = arith.constant 0 : i32
    %0 = arith.minsi %arg0, %c0_i32 : i32
    %c0_i32_0 = arith.constant 0 : i32
    %c0_i32_1 = arith.constant 0 : i32
    %c0_i32_2 = arith.constant 0 : i32
    return %0, %c0_i32_0, %c0_i32_1 : i32, i32, i32
  }
  func.func @transform_1(%arg0: i32) -> (i32, i32) {
    %c0_i32 = arith.constant 0 : i32
    %c0_i32_0 = arith.constant 0 : i32
    %c0_i32_1 = arith.constant 0 : i32
    return %c0_i32, %c0_i32_0 : i32, i32
  }
  func.func @transform_2(%arg0: i32) -> (i32, i32) {
    %c0_i32 = arith.constant 0 : i32
    %c0_i32_0 = arith.constant 0 : i32
    %c0_i32_1 = arith.constant 0 : i32
    return %c0_i32, %c0_i32_0 : i32, i32
  }
  func.func @transform_3(%arg0: i32) -> (i32, i32, i32) {
    %c0_i32 = arith.constant 0 : i32
    %c0_i32_0 = arith.constant 0 : i32
    %c0_i32_1 = arith.constant 0 : i32
    return %arg0, %c0_i32, %c0_i32_0 : i32, i32, i32
  }
}

module attributes {stable_mosaic.version = 11 : i64} {
  func.func @_linear_kernel(%arg0: i32, %arg1: i32, %arg2: memref<32x128xbf16, #tpu.memory_space<vmem>>, %arg3: memref<128x512xbf16, #tpu.memory_space<vmem>>, %arg4: memref<1x512xf32, #tpu.memory_space<vmem>>, %arg5: memref<32x512xf32, #tpu.memory_space<vmem>>) attributes {dimension_semantics = [#tpu.dimension_semantics<parallel>, #tpu.dimension_semantics<parallel>], iteration_bounds = array<i64: 1, 1>, scalar_prefetch = 0 : i64, scratch_operands = 0 : i64, tpu.core_type = #tpu.core_type<tc>, window_params = [{transform_indices = @transform_0, window_bounds = array<i64: 32, 128>}, {transform_indices = @transform_1, window_bounds = array<i64: 128, 512>}, {transform_indices = @transform_2, window_bounds = array<i64: 1, 512>}, {transform_indices = @transform_3, window_bounds = array<i64: 32, 512>}]} {
    %c0 = arith.constant 0 : index
    %c0_0 = arith.constant 0 : index
    %0 = vector.load %arg2[%c0, %c0_0] : memref<32x128xbf16, #tpu.memory_space<vmem>>, vector<32x128xbf16>
    %c0_1 = arith.constant 0 : index
    %c0_2 = arith.constant 0 : index
    %1 = vector.load %arg3[%c0_1, %c0_2] : memref<128x512xbf16, #tpu.memory_space<vmem>>, vector<128x512xbf16>
    %cst = arith.constant dense<0.000000e+00> : vector<32x512xf32>
    %2 = tpu.matmul %0, %1, %cst {dimension_numbers = #tpu.dot_dimension_numbers<[1], [0], [0], [1], [0, 0, 1, 1], [], []>} : vector<32x128xbf16>, vector<128x512xbf16>, vector<32x512xf32> -> vector<32x512xf32>
    %c0_3 = arith.constant 0 : index
    %c0_4 = arith.constant 0 : index
    %3 = vector.load %arg4[%c0_3, %c0_4] : memref<1x512xf32, #tpu.memory_space<vmem>>, vector<1x512xf32>
    %4 = vector.broadcast %3 : vector<1x512xf32> to vector<32x512xf32>
    %5 = arith.addf %2, %4 : vector<32x512xf32>
    %c0_5 = arith.constant 0 : index
    %c0_6 = arith.constant 0 : index
    %6 = vector.load %arg5[%c0_5, %c0_6] : memref<32x512xf32, #tpu.memory_space<vmem>>, vector<32x512xf32>
    tpu.vector_store %arg5[%c0_5, %c0_6], %5 {strides = array<i32>} : memref<32x512xf32, #tpu.memory_space<vmem>>, vector<32x512xf32>,
    return
  }
  func.func @transform_0(%arg0: i32, %arg1: i32) -> (i32, i32) {
    %c0_i32 = arith.constant 0 : i32
    %c0_i32_0 = arith.constant 0 : i32
    return %arg0, %c0_i32 : i32, i32
  }
  func.func @transform_1(%arg0: i32, %arg1: i32) -> (i32, i32) {
    %c0_i32 = arith.constant 0 : i32
    %c0_i32_0 = arith.constant 0 : i32
    return %c0_i32, %arg1 : i32, i32
  }
  func.func @transform_2(%arg0: i32, %arg1: i32) -> (i32, i32) {
    %c0_i32 = arith.constant 0 : i32
    %c0_i32_0 = arith.constant 0 : i32
    return %c0_i32, %arg1 : i32, i32
  }
  func.func @transform_3(%arg0: i32, %arg1: i32) -> (i32, i32) {
    %c0_i32 = arith.constant 0 : i32
    return %arg0, %arg1 : i32, i32
  }
}

module attributes {stable_mosaic.version = 11 : i64} {
  func.func @_linear_kernel(%arg0: i32, %arg1: i32, %arg2: memref<16x32xf32, #tpu.memory_space<vmem>>, %arg3: memref<32x512xbf16, #tpu.memory_space<vmem>>, %arg4: memref<1x512xf32, #tpu.memory_space<vmem>>, %arg5: memref<16x512xf32, #tpu.memory_space<vmem>>) attributes {dimension_semantics = [#tpu.dimension_semantics<parallel>, #tpu.dimension_semantics<parallel>], iteration_bounds = array<i64: 1, 1>, scalar_prefetch = 0 : i64, scratch_operands = 0 : i64, tpu.core_type = #tpu.core_type<tc>, window_params = [{transform_indices = @transform_0, window_bounds = array<i64: 16, 32>}, {transform_indices = @transform_1, window_bounds = array<i64: 32, 512>}, {transform_indices = @transform_2, window_bounds = array<i64: 1, 512>}, {transform_indices = @transform_3, window_bounds = array<i64: 16, 512>}]} {
    %c0 = arith.constant 0 : index
    %c0_0 = arith.constant 0 : index
    %0 = vector.load %arg2[%c0, %c0_0] : memref<16x32xf32, #tpu.memory_space<vmem>>, vector<16x32xf32>
    %1 = arith.truncf %0 : vector<16x32xf32> to vector<16x32xbf16>
    %c0_1 = arith.constant 0 : index
    %c0_2 = arith.constant 0 : index
    %2 = vector.load %arg3[%c0_1, %c0_2] : memref<32x512xbf16, #tpu.memory_space<vmem>>, vector<32x512xbf16>
    %cst = arith.constant dense<0.000000e+00> : vector<16x512xf32>
    %3 = tpu.matmul %1, %2, %cst {dimension_numbers = #tpu.dot_dimension_numbers<[1], [0], [0], [1], [0, 0, 1, 1], [], []>} : vector<16x32xbf16>, vector<32x512xbf16>, vector<16x512xf32> -> vector<16x512xf32>
    %c0_3 = arith.constant 0 : index
    %c0_4 = arith.constant 0 : index
    %4 = vector.load %arg4[%c0_3, %c0_4] : memref<1x512xf32, #tpu.memory_space<vmem>>, vector<1x512xf32>
    %5 = vector.broadcast %4 : vector<1x512xf32> to vector<16x512xf32>
    %6 = arith.addf %3, %5 : vector<16x512xf32>
    %c0_5 = arith.constant 0 : index
    %c0_6 = arith.constant 0 : index
    %7 = vector.load %arg5[%c0_5, %c0_6] : memref<16x512xf32, #tpu.memory_space<vmem>>, vector<16x512xf32>
    tpu.vector_store %arg5[%c0_5, %c0_6], %6 {strides = array<i32>} : memref<16x512xf32, #tpu.memory_space<vmem>>, vector<16x512xf32>,
    return
  }
  func.func @transform_0(%arg0: i32, %arg1: i32) -> (i32, i32) {
    %c0_i32 = arith.constant 0 : i32
    %c0_i32_0 = arith.constant 0 : i32
    return %arg0, %c0_i32 : i32, i32
  }
  func.func @transform_1(%arg0: i32, %arg1: i32) -> (i32, i32) {
    %c0_i32 = arith.constant 0 : i32
    %c0_i32_0 = arith.constant 0 : i32
    return %c0_i32, %arg1 : i32, i32
  }
  func.func @transform_2(%arg0: i32, %arg1: i32) -> (i32, i32) {
    %c0_i32 = arith.constant 0 : i32
    %c0_i32_0 = arith.constant 0 : i32
    return %c0_i32, %arg1 : i32, i32
  }
  func.func @transform_3(%arg0: i32, %arg1: i32) -> (i32, i32) {
    %c0_i32 = arith.constant 0 : i32
    return %arg0, %arg1 : i32, i32
  }
}

module attributes {stable_mosaic.version = 11 : i64} {
  func.func @_lstm_chunk_kernel(%arg0: i32, %arg1: memref<8x2x512xf32, #tpu.memory_space<vmem>>, %arg2: memref<8x2x512xf32, #tpu.memory_space<vmem>>, %arg3: memref<128x512xbf16, #tpu.memory_space<vmem>>, %arg4: memref<8x2x128xbf16, #tpu.memory_space<vmem>>, %arg5: memref<2x128xf32, #tpu.memory_space<vmem>>, %arg6: memref<2x128xf32, #tpu.memory_space<vmem>>) attributes {dimension_semantics = [#tpu.dimension_semantics<arbitrary>], iteration_bounds = array<i64: 2>, scalar_prefetch = 0 : i64, scratch_operands = 2 : i64, tpu.core_type = #tpu.core_type<tc>, window_params = [{transform_indices = @transform_0, window_bounds = array<i64: 8, 2, 512>}, {transform_indices = @transform_1, window_bounds = array<i64: 8, 2, 512>}, {pipeline_mode = #tpu.pipeline_mode<synchronous>, transform_indices = @transform_2, window_bounds = array<i64: 128, 512>}, {transform_indices = @transform_3, window_bounds = array<i64: 8, 2, 128>}]} {
    %c0_i32 = arith.constant 0 : i32
    %0 = arith.cmpi eq, %arg0, %c0_i32 : i32
    %1 = arith.extui %0 : i1 to i32
    %c0_i32_0 = arith.constant 0 : i32
    %2 = arith.cmpi ne, %1, %c0_i32_0 : i32
    scf.if %2 {
      %cst_91 = arith.constant 0.000000e+00 : f32
      %289 = vector.broadcast %cst_91 : f32 to vector<2x128xf32>
      %c0_92 = arith.constant 0 : index
      %c0_93 = arith.constant 0 : index
      %290 = vector.load %arg5[%c0_92, %c0_93] : memref<2x128xf32, #tpu.memory_space<vmem>>, vector<2x128xf32>
      tpu.vector_store %arg5[%c0_92, %c0_93], %289 {strides = array<i32>} : memref<2x128xf32, #tpu.memory_space<vmem>>, vector<2x128xf32>,
      %cst_94 = arith.constant 0.000000e+00 : f32
      %291 = vector.broadcast %cst_94 : f32 to vector<2x128xf32>
      %c0_95 = arith.constant 0 : index
      %c0_96 = arith.constant 0 : index
      %292 = vector.load %arg6[%c0_95, %c0_96] : memref<2x128xf32, #tpu.memory_space<vmem>>, vector<2x128xf32>
      tpu.vector_store %arg6[%c0_95, %c0_96], %291 {strides = array<i32>} : memref<2x128xf32, #tpu.memory_space<vmem>>, vector<2x128xf32>,
    } else {
    }
    %c0 = arith.constant 0 : index
    %c0_1 = arith.constant 0 : index
    %3 = vector.load %arg3[%c0, %c0_1] : memref<128x512xbf16, #tpu.memory_space<vmem>>, vector<128x512xbf16>
    %c8_i32 = arith.constant 8 : i32
    %4 = arith.muli %arg0, %c8_i32 : i32
    %c0_2 = arith.constant 0 : index
    %c0_3 = arith.constant 0 : index
    %5 = vector.load %arg5[%c0_2, %c0_3] : memref<2x128xf32, #tpu.memory_space<vmem>>, vector<2x128xf32>
    %c0_4 = arith.constant 0 : index
    %c0_5 = arith.constant 0 : index
    %6 = vector.load %arg6[%c0_4, %c0_5] : memref<2x128xf32, #tpu.memory_space<vmem>>, vector<2x128xf32>
    %c0_i32_6 = arith.constant 0 : i32
    %7 = arith.addi %4, %c0_i32_6 : i32
    %8 = arith.index_cast %c0_i32_6 : i32 to index
    %c0_7 = arith.constant 0 : index
    %c0_8 = arith.constant 0 : index
    %9 = vector.load %arg1[%8, %c0_7, %c0_8] : memref<8x2x512xf32, #tpu.memory_space<vmem>>, vector<1x2x512xf32>
    %10 = vector.shape_cast %9 : vector<1x2x512xf32> to vector<2x512xf32>
    %c8_i32_9 = arith.constant 8 : i32
    %11 = arith.cmpi sge, %7, %c8_i32_9 : i32
    %12 = arith.index_cast %c0_i32_6 : i32 to index
    %c0_10 = arith.constant 0 : index
    %c0_11 = arith.constant 0 : index
    %13 = vector.load %arg2[%12, %c0_10, %c0_11] : memref<8x2x512xf32, #tpu.memory_space<vmem>>, vector<1x2x512xf32>
    %14 = vector.shape_cast %13 : vector<1x2x512xf32> to vector<2x512xf32>
    %cst = arith.constant 0.000000e+00 : f32
    %15 = vector.broadcast %cst : f32 to vector<2x512xf32>
    %16 = arith.select %11, %14, %15 : vector<2x512xf32>
    %17 = arith.addf %10, %16 : vector<2x512xf32>
    %18 = arith.truncf %5 : vector<2x128xf32> to vector<2x128xbf16>
    %cst_12 = arith.constant dense<0.000000e+00> : vector<2x512xf32>
    %19 = tpu.matmul %18, %3, %cst_12 {dimension_numbers = #tpu.dot_dimension_numbers<[1], [0], [0], [1], [0, 0, 1, 1], [], []>} : vector<2x128xbf16>, vector<128x512xbf16>, vector<2x512xf32> -> vector<2x512xf32>
    %20 = arith.addf %17, %19 : vector<2x512xf32>
    %21 = vector.extract_strided_slice %20 {offsets = [0, 0], sizes = [2, 384], strides = [1, 1]} : vector<2x512xf32> to vector<2x384xf32>
    %22 = arith.negf %21 : vector<2x384xf32>
    %23 = math.exp %22 : vector<2x384xf32>
    %cst_13 = arith.constant 1.000000e+00 : f32
    %24 = vector.broadcast %cst_13 : f32 to vector<2x384xf32>
    %25 = arith.addf %24, %23 : vector<2x384xf32>
    %26 = arith.divf %24, %25 : vector<2x384xf32>
    %27 = vector.extract_strided_slice %20 {offsets = [0, 384], sizes = [2, 128], strides = [1, 1]} : vector<2x512xf32> to vector<2x128xf32>
    %28 = math.tanh %27 : vector<2x128xf32>
    %29 = vector.extract_strided_slice %26 {offsets = [0, 128], sizes = [2, 128], strides = [1, 1]} : vector<2x384xf32> to vector<2x128xf32>
    %30 = arith.mulf %29, %6 : vector<2x128xf32>
    %31 = vector.extract_strided_slice %26 {offsets = [0, 0], sizes = [2, 128], strides = [1, 1]} : vector<2x384xf32> to vector<2x128xf32>
    %32 = arith.mulf %31, %28 : vector<2x128xf32>
    %33 = arith.addf %30, %32 : vector<2x128xf32>
    %34 = vector.extract_strided_slice %26 {offsets = [0, 256], sizes = [2, 128], strides = [1, 1]} : vector<2x384xf32> to vector<2x128xf32>
    %35 = math.tanh %33 : vector<2x128xf32>
    %36 = arith.mulf %34, %35 : vector<2x128xf32>
    %37 = arith.truncf %36 : vector<2x128xf32> to vector<2x128xbf16>
    %38 = arith.index_cast %c0_i32_6 : i32 to index
    %c0_14 = arith.constant 0 : index
    %c0_15 = arith.constant 0 : index
    %39 = vector.load %arg4[%38, %c0_14, %c0_15] : memref<8x2x128xbf16, #tpu.memory_space<vmem>>, vector<1x2x128xbf16>
    %40 = vector.shape_cast %39 : vector<1x2x128xbf16> to vector<2x128xbf16>
    %41 = vector.shape_cast %37 : vector<2x128xbf16> to vector<1x2x128xbf16>
    tpu.vector_store %arg4[%38, %c0_14, %c0_15], %41 {strides = array<i32>} : memref<8x2x128xbf16, #tpu.memory_space<vmem>>, vector<1x2x128xbf16>,
    %c1_i32 = arith.constant 1 : i32
    %42 = arith.addi %4, %c1_i32 : i32
    %43 = arith.index_cast %c1_i32 : i32 to index
    %c0_16 = arith.constant 0 : index
    %c0_17 = arith.constant 0 : index
    %44 = vector.load %arg1[%43, %c0_16, %c0_17] : memref<8x2x512xf32, #tpu.memory_space<vmem>>, vector<1x2x512xf32>
    %45 = vector.shape_cast %44 : vector<1x2x512xf32> to vector<2x512xf32>
    %c8_i32_18 = arith.constant 8 : i32
    %46 = arith.cmpi sge, %42, %c8_i32_18 : i32
    %47 = arith.index_cast %c1_i32 : i32 to index
    %c0_19 = arith.constant 0 : index
    %c0_20 = arith.constant 0 : index
    %48 = vector.load %arg2[%47, %c0_19, %c0_20] : memref<8x2x512xf32, #tpu.memory_space<vmem>>, vector<1x2x512xf32>
    %49 = vector.shape_cast %48 : vector<1x2x512xf32> to vector<2x512xf32>
    %cst_21 = arith.constant 0.000000e+00 : f32
    %50 = vector.broadcast %cst_21 : f32 to vector<2x512xf32>
    %51 = arith.select %46, %49, %50 : vector<2x512xf32>
    %52 = arith.addf %45, %51 : vector<2x512xf32>
    %53 = arith.truncf %36 : vector<2x128xf32> to vector<2x128xbf16>
    %cst_22 = arith.constant dense<0.000000e+00> : vector<2x512xf32>
    %54 = tpu.matmul %53, %3, %cst_22 {dimension_numbers = #tpu.dot_dimension_numbers<[1], [0], [0], [1], [0, 0, 1, 1], [], []>} : vector<2x128xbf16>, vector<128x512xbf16>, vector<2x512xf32> -> vector<2x512xf32>
    %55 = arith.addf %52, %54 : vector<2x512xf32>
    %56 = vector.extract_strided_slice %55 {offsets = [0, 0], sizes = [2, 384], strides = [1, 1]} : vector<2x512xf32> to vector<2x384xf32>
    %57 = arith.negf %56 : vector<2x384xf32>
    %58 = math.exp %57 : vector<2x384xf32>
    %cst_23 = arith.constant 1.000000e+00 : f32
    %59 = vector.broadcast %cst_23 : f32 to vector<2x384xf32>
    %60 = arith.addf %59, %58 : vector<2x384xf32>
    %61 = arith.divf %59, %60 : vector<2x384xf32>
    %62 = vector.extract_strided_slice %55 {offsets = [0, 384], sizes = [2, 128], strides = [1, 1]} : vector<2x512xf32> to vector<2x128xf32>
    %63 = math.tanh %62 : vector<2x128xf32>
    %64 = vector.extract_strided_slice %61 {offsets = [0, 128], sizes = [2, 128], strides = [1, 1]} : vector<2x384xf32> to vector<2x128xf32>
    %65 = arith.mulf %64, %33 : vector<2x128xf32>
    %66 = vector.extract_strided_slice %61 {offsets = [0, 0], sizes = [2, 128], strides = [1, 1]} : vector<2x384xf32> to vector<2x128xf32>
    %67 = arith.mulf %66, %63 : vector<2x128xf32>
    %68 = arith.addf %65, %67 : vector<2x128xf32>
    %69 = vector.extract_strided_slice %61 {offsets = [0, 256], sizes = [2, 128], strides = [1, 1]} : vector<2x384xf32> to vector<2x128xf32>
    %70 = math.tanh %68 : vector<2x128xf32>
    %71 = arith.mulf %69, %70 : vector<2x128xf32>
    %72 = arith.truncf %71 : vector<2x128xf32> to vector<2x128xbf16>
    %73 = arith.index_cast %c1_i32 : i32 to index
    %c0_24 = arith.constant 0 : index
    %c0_25 = arith.constant 0 : index
    %74 = vector.load %arg4[%73, %c0_24, %c0_25] : memref<8x2x128xbf16, #tpu.memory_space<vmem>>, vector<1x2x128xbf16>
    %75 = vector.shape_cast %74 : vector<1x2x128xbf16> to vector<2x128xbf16>
    %76 = vector.shape_cast %72 : vector<2x128xbf16> to vector<1x2x128xbf16>
    tpu.vector_store %arg4[%73, %c0_24, %c0_25], %76 {strides = array<i32>} : memref<8x2x128xbf16, #tpu.memory_space<vmem>>, vector<1x2x128xbf16>,
    %c2_i32 = arith.constant 2 : i32
    %77 = arith.addi %4, %c2_i32 : i32
    %78 = arith.index_cast %c2_i32 : i32 to index
    %c0_26 = arith.constant 0 : index
    %c0_27 = arith.constant 0 : index
    %79 = vector.load %arg1[%78, %c0_26, %c0_27] : memref<8x2x512xf32, #tpu.memory_space<vmem>>, vector<1x2x512xf32>
    %80 = vector.shape_cast %79 : vector<1x2x512xf32> to vector<2x512xf32>
    %c8_i32_28 = arith.constant 8 : i32
    %81 = arith.cmpi sge, %77, %c8_i32_28 : i32
    %82 = arith.index_cast %c2_i32 : i32 to index
    %c0_29 = arith.constant 0 : index
    %c0_30 = arith.constant 0 : index
    %83 = vector.load %arg2[%82, %c0_29, %c0_30] : memref<8x2x512xf32, #tpu.memory_space<vmem>>, vector<1x2x512xf32>
    %84 = vector.shape_cast %83 : vector<1x2x512xf32> to vector<2x512xf32>
    %cst_31 = arith.constant 0.000000e+00 : f32
    %85 = vector.broadcast %cst_31 : f32 to vector<2x512xf32>
    %86 = arith.select %81, %84, %85 : vector<2x512xf32>
    %87 = arith.addf %80, %86 : vector<2x512xf32>
    %88 = arith.truncf %71 : vector<2x128xf32> to vector<2x128xbf16>
    %cst_32 = arith.constant dense<0.000000e+00> : vector<2x512xf32>
    %89 = tpu.matmul %88, %3, %cst_32 {dimension_numbers = #tpu.dot_dimension_numbers<[1], [0], [0], [1], [0, 0, 1, 1], [], []>} : vector<2x128xbf16>, vector<128x512xbf16>, vector<2x512xf32> -> vector<2x512xf32>
    %90 = arith.addf %87, %89 : vector<2x512xf32>
    %91 = vector.extract_strided_slice %90 {offsets = [0, 0], sizes = [2, 384], strides = [1, 1]} : vector<2x512xf32> to vector<2x384xf32>
    %92 = arith.negf %91 : vector<2x384xf32>
    %93 = math.exp %92 : vector<2x384xf32>
    %cst_33 = arith.constant 1.000000e+00 : f32
    %94 = vector.broadcast %cst_33 : f32 to vector<2x384xf32>
    %95 = arith.addf %94, %93 : vector<2x384xf32>
    %96 = arith.divf %94, %95 : vector<2x384xf32>
    %97 = vector.extract_strided_slice %90 {offsets = [0, 384], sizes = [2, 128], strides = [1, 1]} : vector<2x512xf32> to vector<2x128xf32>
    %98 = math.tanh %97 : vector<2x128xf32>
    %99 = vector.extract_strided_slice %96 {offsets = [0, 128], sizes = [2, 128], strides = [1, 1]} : vector<2x384xf32> to vector<2x128xf32>
    %100 = arith.mulf %99, %68 : vector<2x128xf32>
    %101 = vector.extract_strided_slice %96 {offsets = [0, 0], sizes = [2, 128], strides = [1, 1]} : vector<2x384xf32> to vector<2x128xf32>
    %102 = arith.mulf %101, %98 : vector<2x128xf32>
    %103 = arith.addf %100, %102 : vector<2x128xf32>
    %104 = vector.extract_strided_slice %96 {offsets = [0, 256], sizes = [2, 128], strides = [1, 1]} : vector<2x384xf32> to vector<2x128xf32>
    %105 = math.tanh %103 : vector<2x128xf32>
    %106 = arith.mulf %104, %105 : vector<2x128xf32>
    %107 = arith.truncf %106 : vector<2x128xf32> to vector<2x128xbf16>
    %108 = arith.index_cast %c2_i32 : i32 to index
    %c0_34 = arith.constant 0 : index
    %c0_35 = arith.constant 0 : index
    %109 = vector.load %arg4[%108, %c0_34, %c0_35] : memref<8x2x128xbf16, #tpu.memory_space<vmem>>, vector<1x2x128xbf16>
    %110 = vector.shape_cast %109 : vector<1x2x128xbf16> to vector<2x128xbf16>
    %111 = vector.shape_cast %107 : vector<2x128xbf16> to vector<1x2x128xbf16>
    tpu.vector_store %arg4[%108, %c0_34, %c0_35], %111 {strides = array<i32>} : memref<8x2x128xbf16, #tpu.memory_space<vmem>>, vector<1x2x128xbf16>,
    %c3_i32 = arith.constant 3 : i32
    %112 = arith.addi %4, %c3_i32 : i32
    %113 = arith.index_cast %c3_i32 : i32 to index
    %c0_36 = arith.constant 0 : index
    %c0_37 = arith.constant 0 : index
    %114 = vector.load %arg1[%113, %c0_36, %c0_37] : memref<8x2x512xf32, #tpu.memory_space<vmem>>, vector<1x2x512xf32>
    %115 = vector.shape_cast %114 : vector<1x2x512xf32> to vector<2x512xf32>
    %c8_i32_38 = arith.constant 8 : i32
    %116 = arith.cmpi sge, %112, %c8_i32_38 : i32
    %117 = arith.index_cast %c3_i32 : i32 to index
    %c0_39 = arith.constant 0 : index
    %c0_40 = arith.constant 0 : index
    %118 = vector.load %arg2[%117, %c0_39, %c0_40] : memref<8x2x512xf32, #tpu.memory_space<vmem>>, vector<1x2x512xf32>
    %119 = vector.shape_cast %118 : vector<1x2x512xf32> to vector<2x512xf32>
    %cst_41 = arith.constant 0.000000e+00 : f32
    %120 = vector.broadcast %cst_41 : f32 to vector<2x512xf32>
    %121 = arith.select %116, %119, %120 : vector<2x512xf32>
    %122 = arith.addf %115, %121 : vector<2x512xf32>
    %123 = arith.truncf %106 : vector<2x128xf32> to vector<2x128xbf16>
    %cst_42 = arith.constant dense<0.000000e+00> : vector<2x512xf32>
    %124 = tpu.matmul %123, %3, %cst_42 {dimension_numbers = #tpu.dot_dimension_numbers<[1], [0], [0], [1], [0, 0, 1, 1], [], []>} : vector<2x128xbf16>, vector<128x512xbf16>, vector<2x512xf32> -> vector<2x512xf32>
    %125 = arith.addf %122, %124 : vector<2x512xf32>
    %126 = vector.extract_strided_slice %125 {offsets = [0, 0], sizes = [2, 384], strides = [1, 1]} : vector<2x512xf32> to vector<2x384xf32>
    %127 = arith.negf %126 : vector<2x384xf32>
    %128 = math.exp %127 : vector<2x384xf32>
    %cst_43 = arith.constant 1.000000e+00 : f32
    %129 = vector.broadcast %cst_43 : f32 to vector<2x384xf32>
    %130 = arith.addf %129, %128 : vector<2x384xf32>
    %131 = arith.divf %129, %130 : vector<2x384xf32>
    %132 = vector.extract_strided_slice %125 {offsets = [0, 384], sizes = [2, 128], strides = [1, 1]} : vector<2x512xf32> to vector<2x128xf32>
    %133 = math.tanh %132 : vector<2x128xf32>
    %134 = vector.extract_strided_slice %131 {offsets = [0, 128], sizes = [2, 128], strides = [1, 1]} : vector<2x384xf32> to vector<2x128xf32>
    %135 = arith.mulf %134, %103 : vector<2x128xf32>
    %136 = vector.extract_strided_slice %131 {offsets = [0, 0], sizes = [2, 128], strides = [1, 1]} : vector<2x384xf32> to vector<2x128xf32>
    %137 = arith.mulf %136, %133 : vector<2x128xf32>
    %138 = arith.addf %135, %137 : vector<2x128xf32>
    %139 = vector.extract_strided_slice %131 {offsets = [0, 256], sizes = [2, 128], strides = [1, 1]} : vector<2x384xf32> to vector<2x128xf32>
    %140 = math.tanh %138 : vector<2x128xf32>
    %141 = arith.mulf %139, %140 : vector<2x128xf32>
    %142 = arith.truncf %141 : vector<2x128xf32> to vector<2x128xbf16>
    %143 = arith.index_cast %c3_i32 : i32 to index
    %c0_44 = arith.constant 0 : index
    %c0_45 = arith.constant 0 : index
    %144 = vector.load %arg4[%143, %c0_44, %c0_45] : memref<8x2x128xbf16, #tpu.memory_space<vmem>>, vector<1x2x128xbf16>
    %145 = vector.shape_cast %144 : vector<1x2x128xbf16> to vector<2x128xbf16>
    %146 = vector.shape_cast %142 : vector<2x128xbf16> to vector<1x2x128xbf16>
    tpu.vector_store %arg4[%143, %c0_44, %c0_45], %146 {strides = array<i32>} : memref<8x2x128xbf16, #tpu.memory_space<vmem>>, vector<1x2x128xbf16>,
    %c4_i32 = arith.constant 4 : i32
    %147 = arith.addi %4, %c4_i32 : i32
    %148 = arith.index_cast %c4_i32 : i32 to index
    %c0_46 = arith.constant 0 : index
    %c0_47 = arith.constant 0 : index
    %149 = vector.load %arg1[%148, %c0_46, %c0_47] : memref<8x2x512xf32, #tpu.memory_space<vmem>>, vector<1x2x512xf32>
    %150 = vector.shape_cast %149 : vector<1x2x512xf32> to vector<2x512xf32>
    %c8_i32_48 = arith.constant 8 : i32
    %151 = arith.cmpi sge, %147, %c8_i32_48 : i32
    %152 = arith.index_cast %c4_i32 : i32 to index
    %c0_49 = arith.constant 0 : index
    %c0_50 = arith.constant 0 : index
    %153 = vector.load %arg2[%152, %c0_49, %c0_50] : memref<8x2x512xf32, #tpu.memory_space<vmem>>, vector<1x2x512xf32>
    %154 = vector.shape_cast %153 : vector<1x2x512xf32> to vector<2x512xf32>
    %cst_51 = arith.constant 0.000000e+00 : f32
    %155 = vector.broadcast %cst_51 : f32 to vector<2x512xf32>
    %156 = arith.select %151, %154, %155 : vector<2x512xf32>
    %157 = arith.addf %150, %156 : vector<2x512xf32>
    %158 = arith.truncf %141 : vector<2x128xf32> to vector<2x128xbf16>
    %cst_52 = arith.constant dense<0.000000e+00> : vector<2x512xf32>
    %159 = tpu.matmul %158, %3, %cst_52 {dimension_numbers = #tpu.dot_dimension_numbers<[1], [0], [0], [1], [0, 0, 1, 1], [], []>} : vector<2x128xbf16>, vector<128x512xbf16>, vector<2x512xf32> -> vector<2x512xf32>
    %160 = arith.addf %157, %159 : vector<2x512xf32>
    %161 = vector.extract_strided_slice %160 {offsets = [0, 0], sizes = [2, 384], strides = [1, 1]} : vector<2x512xf32> to vector<2x384xf32>
    %162 = arith.negf %161 : vector<2x384xf32>
    %163 = math.exp %162 : vector<2x384xf32>
    %cst_53 = arith.constant 1.000000e+00 : f32
    %164 = vector.broadcast %cst_53 : f32 to vector<2x384xf32>
    %165 = arith.addf %164, %163 : vector<2x384xf32>
    %166 = arith.divf %164, %165 : vector<2x384xf32>
    %167 = vector.extract_strided_slice %160 {offsets = [0, 384], sizes = [2, 128], strides = [1, 1]} : vector<2x512xf32> to vector<2x128xf32>
    %168 = math.tanh %167 : vector<2x128xf32>
    %169 = vector.extract_strided_slice %166 {offsets = [0, 128], sizes = [2, 128], strides = [1, 1]} : vector<2x384xf32> to vector<2x128xf32>
    %170 = arith.mulf %169, %138 : vector<2x128xf32>
    %171 = vector.extract_strided_slice %166 {offsets = [0, 0], sizes = [2, 128], strides = [1, 1]} : vector<2x384xf32> to vector<2x128xf32>
    %172 = arith.mulf %171, %168 : vector<2x128xf32>
    %173 = arith.addf %170, %172 : vector<2x128xf32>
    %174 = vector.extract_strided_slice %166 {offsets = [0, 256], sizes = [2, 128], strides = [1, 1]} : vector<2x384xf32> to vector<2x128xf32>
    %175 = math.tanh %173 : vector<2x128xf32>
    %176 = arith.mulf %174, %175 : vector<2x128xf32>
    %177 = arith.truncf %176 : vector<2x128xf32> to vector<2x128xbf16>
    %178 = arith.index_cast %c4_i32 : i32 to index
    %c0_54 = arith.constant 0 : index
    %c0_55 = arith.constant 0 : index
    %179 = vector.load %arg4[%178, %c0_54, %c0_55] : memref<8x2x128xbf16, #tpu.memory_space<vmem>>, vector<1x2x128xbf16>
    %180 = vector.shape_cast %179 : vector<1x2x128xbf16> to vector<2x128xbf16>
    %181 = vector.shape_cast %177 : vector<2x128xbf16> to vector<1x2x128xbf16>
    tpu.vector_store %arg4[%178, %c0_54, %c0_55], %181 {strides = array<i32>} : memref<8x2x128xbf16, #tpu.memory_space<vmem>>, vector<1x2x128xbf16>,
    %c5_i32 = arith.constant 5 : i32
    %182 = arith.addi %4, %c5_i32 : i32
    %183 = arith.index_cast %c5_i32 : i32 to index
    %c0_56 = arith.constant 0 : index
    %c0_57 = arith.constant 0 : index
    %184 = vector.load %arg1[%183, %c0_56, %c0_57] : memref<8x2x512xf32, #tpu.memory_space<vmem>>, vector<1x2x512xf32>
    %185 = vector.shape_cast %184 : vector<1x2x512xf32> to vector<2x512xf32>
    %c8_i32_58 = arith.constant 8 : i32
    %186 = arith.cmpi sge, %182, %c8_i32_58 : i32
    %187 = arith.index_cast %c5_i32 : i32 to index
    %c0_59 = arith.constant 0 : index
    %c0_60 = arith.constant 0 : index
    %188 = vector.load %arg2[%187, %c0_59, %c0_60] : memref<8x2x512xf32, #tpu.memory_space<vmem>>, vector<1x2x512xf32>
    %189 = vector.shape_cast %188 : vector<1x2x512xf32> to vector<2x512xf32>
    %cst_61 = arith.constant 0.000000e+00 : f32
    %190 = vector.broadcast %cst_61 : f32 to vector<2x512xf32>
    %191 = arith.select %186, %189, %190 : vector<2x512xf32>
    %192 = arith.addf %185, %191 : vector<2x512xf32>
    %193 = arith.truncf %176 : vector<2x128xf32> to vector<2x128xbf16>
    %cst_62 = arith.constant dense<0.000000e+00> : vector<2x512xf32>
    %194 = tpu.matmul %193, %3, %cst_62 {dimension_numbers = #tpu.dot_dimension_numbers<[1], [0], [0], [1], [0, 0, 1, 1], [], []>} : vector<2x128xbf16>, vector<128x512xbf16>, vector<2x512xf32> -> vector<2x512xf32>
    %195 = arith.addf %192, %194 : vector<2x512xf32>
    %196 = vector.extract_strided_slice %195 {offsets = [0, 0], sizes = [2, 384], strides = [1, 1]} : vector<2x512xf32> to vector<2x384xf32>
    %197 = arith.negf %196 : vector<2x384xf32>
    %198 = math.exp %197 : vector<2x384xf32>
    %cst_63 = arith.constant 1.000000e+00 : f32
    %199 = vector.broadcast %cst_63 : f32 to vector<2x384xf32>
    %200 = arith.addf %199, %198 : vector<2x384xf32>
    %201 = arith.divf %199, %200 : vector<2x384xf32>
    %202 = vector.extract_strided_slice %195 {offsets = [0, 384], sizes = [2, 128], strides = [1, 1]} : vector<2x512xf32> to vector<2x128xf32>
    %203 = math.tanh %202 : vector<2x128xf32>
    %204 = vector.extract_strided_slice %201 {offsets = [0, 128], sizes = [2, 128], strides = [1, 1]} : vector<2x384xf32> to vector<2x128xf32>
    %205 = arith.mulf %204, %173 : vector<2x128xf32>
    %206 = vector.extract_strided_slice %201 {offsets = [0, 0], sizes = [2, 128], strides = [1, 1]} : vector<2x384xf32> to vector<2x128xf32>
    %207 = arith.mulf %206, %203 : vector<2x128xf32>
    %208 = arith.addf %205, %207 : vector<2x128xf32>
    %209 = vector.extract_strided_slice %201 {offsets = [0, 256], sizes = [2, 128], strides = [1, 1]} : vector<2x384xf32> to vector<2x128xf32>
    %210 = math.tanh %208 : vector<2x128xf32>
    %211 = arith.mulf %209, %210 : vector<2x128xf32>
    %212 = arith.truncf %211 : vector<2x128xf32> to vector<2x128xbf16>
    %213 = arith.index_cast %c5_i32 : i32 to index
    %c0_64 = arith.constant 0 : index
    %c0_65 = arith.constant 0 : index
    %214 = vector.load %arg4[%213, %c0_64, %c0_65] : memref<8x2x128xbf16, #tpu.memory_space<vmem>>, vector<1x2x128xbf16>
    %215 = vector.shape_cast %214 : vector<1x2x128xbf16> to vector<2x128xbf16>
    %216 = vector.shape_cast %212 : vector<2x128xbf16> to vector<1x2x128xbf16>
    tpu.vector_store %arg4[%213, %c0_64, %c0_65], %216 {strides = array<i32>} : memref<8x2x128xbf16, #tpu.memory_space<vmem>>, vector<1x2x128xbf16>,
    %c6_i32 = arith.constant 6 : i32
    %217 = arith.addi %4, %c6_i32 : i32
    %218 = arith.index_cast %c6_i32 : i32 to index
    %c0_66 = arith.constant 0 : index
    %c0_67 = arith.constant 0 : index
    %219 = vector.load %arg1[%218, %c0_66, %c0_67] : memref<8x2x512xf32, #tpu.memory_space<vmem>>, vector<1x2x512xf32>
    %220 = vector.shape_cast %219 : vector<1x2x512xf32> to vector<2x512xf32>
    %c8_i32_68 = arith.constant 8 : i32
    %221 = arith.cmpi sge, %217, %c8_i32_68 : i32
    %222 = arith.index_cast %c6_i32 : i32 to index
    %c0_69 = arith.constant 0 : index
    %c0_70 = arith.constant 0 : index
    %223 = vector.load %arg2[%222, %c0_69, %c0_70] : memref<8x2x512xf32, #tpu.memory_space<vmem>>, vector<1x2x512xf32>
    %224 = vector.shape_cast %223 : vector<1x2x512xf32> to vector<2x512xf32>
    %cst_71 = arith.constant 0.000000e+00 : f32
    %225 = vector.broadcast %cst_71 : f32 to vector<2x512xf32>
    %226 = arith.select %221, %224, %225 : vector<2x512xf32>
    %227 = arith.addf %220, %226 : vector<2x512xf32>
    %228 = arith.truncf %211 : vector<2x128xf32> to vector<2x128xbf16>
    %cst_72 = arith.constant dense<0.000000e+00> : vector<2x512xf32>
    %229 = tpu.matmul %228, %3, %cst_72 {dimension_numbers = #tpu.dot_dimension_numbers<[1], [0], [0], [1], [0, 0, 1, 1], [], []>} : vector<2x128xbf16>, vector<128x512xbf16>, vector<2x512xf32> -> vector<2x512xf32>
    %230 = arith.addf %227, %229 : vector<2x512xf32>
    %231 = vector.extract_strided_slice %230 {offsets = [0, 0], sizes = [2, 384], strides = [1, 1]} : vector<2x512xf32> to vector<2x384xf32>
    %232 = arith.negf %231 : vector<2x384xf32>
    %233 = math.exp %232 : vector<2x384xf32>
    %cst_73 = arith.constant 1.000000e+00 : f32
    %234 = vector.broadcast %cst_73 : f32 to vector<2x384xf32>
    %235 = arith.addf %234, %233 : vector<2x384xf32>
    %236 = arith.divf %234, %235 : vector<2x384xf32>
    %237 = vector.extract_strided_slice %230 {offsets = [0, 384], sizes = [2, 128], strides = [1, 1]} : vector<2x512xf32> to vector<2x128xf32>
    %238 = math.tanh %237 : vector<2x128xf32>
    %239 = vector.extract_strided_slice %236 {offsets = [0, 128], sizes = [2, 128], strides = [1, 1]} : vector<2x384xf32> to vector<2x128xf32>
    %240 = arith.mulf %239, %208 : vector<2x128xf32>
    %241 = vector.extract_strided_slice %236 {offsets = [0, 0], sizes = [2, 128], strides = [1, 1]} : vector<2x384xf32> to vector<2x128xf32>
    %242 = arith.mulf %241, %238 : vector<2x128xf32>
    %243 = arith.addf %240, %242 : vector<2x128xf32>
    %244 = vector.extract_strided_slice %236 {offsets = [0, 256], sizes = [2, 128], strides = [1, 1]} : vector<2x384xf32> to vector<2x128xf32>
    %245 = math.tanh %243 : vector<2x128xf32>
    %246 = arith.mulf %244, %245 : vector<2x128xf32>
    %247 = arith.truncf %246 : vector<2x128xf32> to vector<2x128xbf16>
    %248 = arith.index_cast %c6_i32 : i32 to index
    %c0_74 = arith.constant 0 : index
    %c0_75 = arith.constant 0 : index
    %249 = vector.load %arg4[%248, %c0_74, %c0_75] : memref<8x2x128xbf16, #tpu.memory_space<vmem>>, vector<1x2x128xbf16>
    %250 = vector.shape_cast %249 : vector<1x2x128xbf16> to vector<2x128xbf16>
    %251 = vector.shape_cast %247 : vector<2x128xbf16> to vector<1x2x128xbf16>
    tpu.vector_store %arg4[%248, %c0_74, %c0_75], %251 {strides = array<i32>} : memref<8x2x128xbf16, #tpu.memory_space<vmem>>, vector<1x2x128xbf16>,
    %c7_i32 = arith.constant 7 : i32
    %252 = arith.addi %4, %c7_i32 : i32
    %253 = arith.index_cast %c7_i32 : i32 to index
    %c0_76 = arith.constant 0 : index
    %c0_77 = arith.constant 0 : index
    %254 = vector.load %arg1[%253, %c0_76, %c0_77] : memref<8x2x512xf32, #tpu.memory_space<vmem>>, vector<1x2x512xf32>
    %255 = vector.shape_cast %254 : vector<1x2x512xf32> to vector<2x512xf32>
    %c8_i32_78 = arith.constant 8 : i32
    %256 = arith.cmpi sge, %252, %c8_i32_78 : i32
    %257 = arith.index_cast %c7_i32 : i32 to index
    %c0_79 = arith.constant 0 : index
    %c0_80 = arith.constant 0 : index
    %258 = vector.load %arg2[%257, %c0_79, %c0_80] : memref<8x2x512xf32, #tpu.memory_space<vmem>>, vector<1x2x512xf32>
    %259 = vector.shape_cast %258 : vector<1x2x512xf32> to vector<2x512xf32>
    %cst_81 = arith.constant 0.000000e+00 : f32
    %260 = vector.broadcast %cst_81 : f32 to vector<2x512xf32>
    %261 = arith.select %256, %259, %260 : vector<2x512xf32>
    %262 = arith.addf %255, %261 : vector<2x512xf32>
    %263 = arith.truncf %246 : vector<2x128xf32> to vector<2x128xbf16>
    %cst_82 = arith.constant dense<0.000000e+00> : vector<2x512xf32>
    %264 = tpu.matmul %263, %3, %cst_82 {dimension_numbers = #tpu.dot_dimension_numbers<[1], [0], [0], [1], [0, 0, 1, 1], [], []>} : vector<2x128xbf16>, vector<128x512xbf16>, vector<2x512xf32> -> vector<2x512xf32>
    %265 = arith.addf %262, %264 : vector<2x512xf32>
    %266 = vector.extract_strided_slice %265 {offsets = [0, 0], sizes = [2, 384], strides = [1, 1]} : vector<2x512xf32> to vector<2x384xf32>
    %267 = arith.negf %266 : vector<2x384xf32>
    %268 = math.exp %267 : vector<2x384xf32>
    %cst_83 = arith.constant 1.000000e+00 : f32
    %269 = vector.broadcast %cst_83 : f32 to vector<2x384xf32>
    %270 = arith.addf %269, %268 : vector<2x384xf32>
    %271 = arith.divf %269, %270 : vector<2x384xf32>
    %272 = vector.extract_strided_slice %265 {offsets = [0, 384], sizes = [2, 128], strides = [1, 1]} : vector<2x512xf32> to vector<2x128xf32>
    %273 = math.tanh %272 : vector<2x128xf32>
    %274 = vector.extract_strided_slice %271 {offsets = [0, 128], sizes = [2, 128], strides = [1, 1]} : vector<2x384xf32> to vector<2x128xf32>
    %275 = arith.mulf %274, %243 : vector<2x128xf32>
    %276 = vector.extract_strided_slice %271 {offsets = [0, 0], sizes = [2, 128], strides = [1, 1]} : vector<2x384xf32> to vector<2x128xf32>
    %277 = arith.mulf %276, %273 : vector<2x128xf32>
    %278 = arith.addf %275, %277 : vector<2x128xf32>
    %279 = vector.extract_strided_slice %271 {offsets = [0, 256], sizes = [2, 128], strides = [1, 1]} : vector<2x384xf32> to vector<2x128xf32>
    %280 = math.tanh %278 : vector<2x128xf32>
    %281 = arith.mulf %279, %280 : vector<2x128xf32>
    %282 = arith.truncf %281 : vector<2x128xf32> to vector<2x128xbf16>
    %283 = arith.index_cast %c7_i32 : i32 to index
    %c0_84 = arith.constant 0 : index
    %c0_85 = arith.constant 0 : index
    %284 = vector.load %arg4[%283, %c0_84, %c0_85] : memref<8x2x128xbf16, #tpu.memory_space<vmem>>, vector<1x2x128xbf16>
    %285 = vector.shape_cast %284 : vector<1x2x128xbf16> to vector<2x128xbf16>
    %286 = vector.shape_cast %282 : vector<2x128xbf16> to vector<1x2x128xbf16>
    tpu.vector_store %arg4[%283, %c0_84, %c0_85], %286 {strides = array<i32>} : memref<8x2x128xbf16, #tpu.memory_space<vmem>>, vector<1x2x128xbf16>,
    %c8_i32_86 = arith.constant 8 : i32
    %c0_87 = arith.constant 0 : index
    %c0_88 = arith.constant 0 : index
    %287 = vector.load %arg5[%c0_87, %c0_88] : memref<2x128xf32, #tpu.memory_space<vmem>>, vector<2x128xf32>
    tpu.vector_store %arg5[%c0_87, %c0_88], %281 {strides = array<i32>} : memref<2x128xf32, #tpu.memory_space<vmem>>, vector<2x128xf32>,
    %c0_89 = arith.constant 0 : index
    %c0_90 = arith.constant 0 : index
    %288 = vector.load %arg6[%c0_89, %c0_90] : memref<2x128xf32, #tpu.memory_space<vmem>>, vector<2x128xf32>
    tpu.vector_store %arg6[%c0_89, %c0_90], %278 {strides = array<i32>} : memref<2x128xf32, #tpu.memory_space<vmem>>, vector<2x128xf32>,
    return
  }
  func.func @transform_0(%arg0: i32) -> (i32, i32, i32) {
    %c0_i32 = arith.constant 0 : i32
    %c0_i32_0 = arith.constant 0 : i32
    %c0_i32_1 = arith.constant 0 : i32
    return %arg0, %c0_i32, %c0_i32_0 : i32, i32, i32
  }
  func.func @transform_1(%arg0: i32) -> (i32, i32, i32) {
    %c1_i32 = arith.constant 1 : i32
    %0 = arith.subi %arg0, %c1_i32 : i32
    %c0_i32 = arith.constant 0 : i32
    %1 = arith.maxsi %0, %c0_i32 : i32
    %c0_i32_0 = arith.constant 0 : i32
    %c0_i32_1 = arith.constant 0 : i32
    %c0_i32_2 = arith.constant 0 : i32
    return %1, %c0_i32_0, %c0_i32_1 : i32, i32, i32
  }
  func.func @transform_2(%arg0: i32) -> (i32, i32) {
    %c0_i32 = arith.constant 0 : i32
    %c0_i32_0 = arith.constant 0 : i32
    %c0_i32_1 = arith.constant 0 : i32
    return %c0_i32, %c0_i32_0 : i32, i32
  }
  func.func @transform_3(%arg0: i32) -> (i32, i32, i32) {
    %c0_i32 = arith.constant 0 : i32
    %c0_i32_0 = arith.constant 0 : i32
    %c0_i32_1 = arith.constant 0 : i32
    return %arg0, %c0_i32, %c0_i32_0 : i32, i32, i32
  }
}

module attributes {stable_mosaic.version = 11 : i64} {
  func.func @_linear_kernel(%arg0: i32, %arg1: i32, %arg2: memref<16x128xbf16, #tpu.memory_space<vmem>>, %arg3: memref<128x128xbf16, #tpu.memory_space<vmem>>, %arg4: memref<1x128xf32, #tpu.memory_space<vmem>>, %arg5: memref<16x128xf32, #tpu.memory_space<vmem>>) attributes {dimension_semantics = [#tpu.dimension_semantics<parallel>, #tpu.dimension_semantics<parallel>], iteration_bounds = array<i64: 1, 1>, scalar_prefetch = 0 : i64, scratch_operands = 0 : i64, tpu.core_type = #tpu.core_type<tc>, window_params = [{transform_indices = @transform_0, window_bounds = array<i64: 16, 128>}, {transform_indices = @transform_1, window_bounds = array<i64: 128, 128>}, {transform_indices = @transform_2, window_bounds = array<i64: 1, 128>}, {transform_indices = @transform_3, window_bounds = array<i64: 16, 128>}]} {
    %c0 = arith.constant 0 : index
    %c0_0 = arith.constant 0 : index
    %0 = vector.load %arg2[%c0, %c0_0] : memref<16x128xbf16, #tpu.memory_space<vmem>>, vector<16x128xbf16>
    %c0_1 = arith.constant 0 : index
    %c0_2 = arith.constant 0 : index
    %1 = vector.load %arg3[%c0_1, %c0_2] : memref<128x128xbf16, #tpu.memory_space<vmem>>, vector<128x128xbf16>
    %cst = arith.constant dense<0.000000e+00> : vector<16x128xf32>
    %2 = tpu.matmul %0, %1, %cst {dimension_numbers = #tpu.dot_dimension_numbers<[1], [0], [0], [1], [0, 0, 1, 1], [], []>} : vector<16x128xbf16>, vector<128x128xbf16>, vector<16x128xf32> -> vector<16x128xf32>
    %c0_3 = arith.constant 0 : index
    %c0_4 = arith.constant 0 : index
    %3 = vector.load %arg4[%c0_3, %c0_4] : memref<1x128xf32, #tpu.memory_space<vmem>>, vector<1x128xf32>
    %4 = vector.broadcast %3 : vector<1x128xf32> to vector<16x128xf32>
    %5 = arith.addf %2, %4 : vector<16x128xf32>
    %c0_5 = arith.constant 0 : index
    %c0_6 = arith.constant 0 : index
    %6 = vector.load %arg5[%c0_5, %c0_6] : memref<16x128xf32, #tpu.memory_space<vmem>>, vector<16x128xf32>
    tpu.vector_store %arg5[%c0_5, %c0_6], %5 {strides = array<i32>} : memref<16x128xf32, #tpu.memory_space<vmem>>, vector<16x128xf32>,
    return
  }
  func.func @transform_0(%arg0: i32, %arg1: i32) -> (i32, i32) {
    %c0_i32 = arith.constant 0 : i32
    %c0_i32_0 = arith.constant 0 : i32
    return %arg0, %c0_i32 : i32, i32
  }
  func.func @transform_1(%arg0: i32, %arg1: i32) -> (i32, i32) {
    %c0_i32 = arith.constant 0 : i32
    %c0_i32_0 = arith.constant 0 : i32
    return %c0_i32, %arg1 : i32, i32
  }
  func.func @transform_2(%arg0: i32, %arg1: i32) -> (i32, i32) {
    %c0_i32 = arith.constant 0 : i32
    %c0_i32_0 = arith.constant 0 : i32
    return %c0_i32, %arg1 : i32, i32
  }
  func.func @transform_3(%arg0: i32, %arg1: i32) -> (i32, i32) {
    %c0_i32 = arith.constant 0 : i32
    return %arg0, %arg1 : i32, i32
  }
}

</mosaic_0001>

<bundles_post_ra>
// kernel: s2vt_forward.6
= control target key start
LH: loop header
LB: loop body
LE: loop exit
PB: predicated region body
PF: predicated region fallthrough
CT: control target
= control target key end

     0   :  { %8 = vsyncpa [#allocation3], 0  ;;  %s323_s12 = smov [#allocation2]   ;;  %s392_s0 = inlined_call_operand.vmem [shape: f32[16,64], index: 0, kind: input, shape index: {}]   ;;  %s393_s1 = inlined_call_operand.hbm [shape: bf16[64,512], index: 1, kind: input, shape index: {}]   ;;  %s394_s2 = inlined_call_operand.vmem [shape: f32[1,512], index: 2, kind: input, shape index: {}]   ;;  %s395_s3 = inlined_call_operand.vmem [shape: f32[16,512], index: 3, kind: output, shape index: {}]  }
   0x1   :  { %s16_s13 = sshll.u32 %s323_s12, 4  ;;  %s299_s16 = scalar_lea.hbm %s393_s1, 2048  ;;  %s17_s13 = int_to_ptr.vmem [resolvable:$true] %s16_s13 }
   0x2   :  { %p300_p0 = scmp.ne.s32.totalorder %s393_s1, %s299_s16  ;;  %p303_p1 = scmp.lt.u32.totalorder %s299_s16, %s393_s1 }
   0x4   :  { %p305_p2 = pnand %p303_p1, %p300_p0 }
   0x6   :  { %308 = shalt.err (!%p305_p2)
}
   0x7   :  { %s309_s21 = scalar_lea.vmem %s17_s13, 2048  ;;  %p314_p4 = scmp.lt.s32.totalorder %s17_s13, %s17_s13 }
   0x8   :  { %p310_p3 = scmp.ne.s32.totalorder %s17_s13, %s309_s21  ;;  %p315_p5 = scmp.lt.s32.totalorder %s309_s21, %s309_s21 }
   0xa   :  { %p316_p6 = por %p315_p5, %p314_p4 }
   0xc   :  { %p317_p7 = pnand %p316_p6, %p310_p3 }
   0xe   :  { %320 = shalt.err (!%p317_p7)
}
   0xf   :  { %s324_s22 = smov 256   ;;  %s325_s23 = smov 16  }
  0x10   :  { %22 = dma.hbm_to_vmem [thread:$0]  %s393_s1, 2048, %s17_s13, [#allocation3], %s324_s22, %s324_s22, %s325_s23  }
  0x11   :  { %321 = dma.done.wait [#allocation3], 2048  }
  0x12   :  { %322 = vsyncadd [#allocation3], 4294965248  ;;  %v326_v0 = vmov 0   ;;  %v275_v1 = vld [vmem:[#allocation2 + $0x4] ss:$16 sps:$4 sm:$0xff]   ;;  %v30_v18 = vld [vmem:[%s392_s0 + $0x8] sm:$0xff]  ;;  %v50_v20 = vlaneseq }
  0x13   :  { %186 = vmatprep.mubr.bf16.mxu0 %v326_v0  ;;  %229 = vmatprep.mubr.bf16.mxu1 %v326_v0  ;;  %v277_v2 = vld [vmem:[#allocation2 + $0xc] ss:$16 sps:$4 sm:$0xff]   ;;  %v279_v3 = vld [vmem:[#allocation2] ss:$16 sps:$4 sm:$0xff]   ;;  %v280_v4 = vld [vmem:[#allocation2 + $0x8] ss:$16 sps:$4 sm:$0xff]  }
  0x14   :  { %154 = vmatprep.subr.bf16.mxu0 %v275_v1  ;;  %197 = vmatprep.subr.bf16.mxu1 %v277_v2  ;;  %v281_v5 = vld [vmem:[#allocation2 + $0x24] ss:$16 sps:$4 sm:$0xff]   ;;  %v283_v6 = vld [vmem:[#allocation2 + $0x2c] ss:$16 sps:$4 sm:$0xff]   ;;  %v285_v7 = vld [vmem:[#allocation2 + $0x20] ss:$16 sps:$4 sm:$0xff]  }
  0x15   :  { %155 = vmatpush1.bf16.msra.mxu0 %v279_v3  ;;  %198 = vmatpush1.bf16.msra.mxu1 %v280_v4  ;;  %v286_v8 = vld [vmem:[#allocation2 + $0x28] ss:$16 sps:$4 sm:$0xff]   ;;  %v287_v9 = vld [vmem:[#allocation2 + $0x44] ss:$16 sps:$4 sm:$0xff]   ;;  %v289_v10 = vld [vmem:[#allocation2 + $0x4c] ss:$16 sps:$4 sm:$0xff]  }
  0x16   :  { %156 = vmatprep.subr.bf16.mxu0 %v281_v5  ;;  %199 = vmatprep.subr.bf16.mxu1 %v283_v6  ;;  %v291_v11 = vld [vmem:[#allocation2 + $0x40] ss:$16 sps:$4 sm:$0xff]   ;;  %v292_v12 = vld [vmem:[#allocation2 + $0x48] ss:$16 sps:$4 sm:$0xff]   ;;  %v293_v13 = vld [vmem:[#allocation2 + $0x64] ss:$16 sps:$4 sm:$0xff]  }
  0x17   :  { %v295_v14 = vld [vmem:[#allocation2 + $0x6c] ss:$16 sps:$4 sm:$0xff]   ;;  %v297_v15 = vld [vmem:[#allocation2 + $0x60] ss:$16 sps:$4 sm:$0xff]   ;;  %v298_v16 = vld [vmem:[#allocation2 + $0x68] ss:$16 sps:$4 sm:$0xff]  }
  0x18   :  { %v29_v17 = vld [vmem:[%s392_s0] sm:$0xff]  ;;  %vm150_vm0 = vcmask 523264   ;;  %v51_v21 = vshrl.u32 %v50_v20, 7 }
  0x19   :  { %157 = vmatpush1.bf16.msra.mxu0 %v285_v7  ;;  %200 = vmatpush1.bf16.msra.mxu1 %v286_v8  ;;  %v31_v19 = vpack.c.bf16 %v30_v18, %v29_v17  ;;  %v48_v24 = vld [vmem:[%s394_s2] sm:$0xf] }
  0x1a   :  { %158 = vmatprep.subr.bf16.mxu0 %v287_v9  ;;  %201 = vmatprep.subr.bf16.mxu1 %v289_v10  ;;  %v52_v22 = vsub.s32 0, %v51_v21  ;;  %v60_v23 = vsub.s32 2, %v51_v21  ;;  %v56_v25 = vsub.s32 1, %v51_v21  ;;  %v64_v26 = vsub.s32 3, %v51_v21 }
  0x1c   :  { %v53_v27 = vrot.slane %v48_v24, %v52_v22  ;;  %v61_v28 = vrot.slane %v48_v24, %v60_v23  ;;  %v57_v29 = vrot.slane %v48_v24, %v56_v25  ;;  %v65_v30 = vrot.slane %v48_v24, %v64_v26 }
  0x1d   :  { %159 = vmatpush1.bf16.msra.mxu0 %v291_v11  ;;  %202 = vmatpush1.bf16.msra.mxu1 %v292_v12 }
  0x1e   :  { %160 = vmatprep.subr.bf16.mxu0 %v293_v13  ;;  %203 = vmatprep.subr.bf16.mxu1 %v295_v14 }
  0x21   :  { %161 = vmatpush1.bf16.msra.mxu0 %v297_v15  ;;  %204 = vmatpush1.bf16.msra.mxu1 %v298_v16 }
  0x24   :  { %269 = vmatmul.mubr.msk.bf16.vlgmr.msra.gmra.mrb[0].mxu0 %vm150_vm0, %v31_v19  ;;  %270 = vmatmul.mubr.msk.bf16.vlgmr.msra.gmra.mrb[0].mxu1 %vm150_vm0, %v31_v19 }
  0xf7   :  { %v188_v31 = vpop.f32.mrb[0].mxu0  ;;  %v231_v32 = vpop.f32.mrb[0].mxu1 }
  0xf8   :  { %v189_v33 = vadd.f32 %v188_v31, %v53_v27  ;;  %v232_v34 = vadd.f32 %v231_v32, %v61_v28  ;;  %v190_v35 = vpop.f32.mrb[1].mxu0  ;;  %v233_v36 = vpop.f32.mrb[1].mxu1 }
  0xf9   :  { %v191_v37 = vadd.f32 %v190_v35, %v57_v29  ;;  %v234_v38 = vadd.f32 %v233_v36, %v65_v30  ;;  %v192_v39 = vpop.f32.mrb[2].mxu0  ;;  %v235_v40 = vpop.f32.mrb[2].mxu1 }
  0xfa   :  { %240 = vst [vmem:[%s395_s3] sm:$0xff] %v189_v33  ;;  %242 = vst [vmem:[%s395_s3 + $0x10] sm:$0xff] %v232_v34  ;;  %v193_v41 = vadd.f32 %v192_v39, %v53_v27  ;;  %v236_v42 = vadd.f32 %v235_v40, %v61_v28  ;;  %v194_v43 = vpop.f32.mrb[3].mxu0  ;;  %v237_v44 = vpop.f32.mrb[3].mxu1 }
  0xfb   :  { %241 = vst [vmem:[%s395_s3 + $0x8] sm:$0xff] %v191_v37  ;;  %243 = vst [vmem:[%s395_s3 + $0x18] sm:$0xff] %v234_v38  ;;  %v195_v45 = vadd.f32 %v194_v43, %v57_v29  ;;  %v238_v46 = vadd.f32 %v237_v44, %v65_v30 }
  0xfc   :  { %244 = vst [vmem:[%s395_s3 + $0x20] sm:$0xff] %v193_v41  ;;  %246 = vst [vmem:[%s395_s3 + $0x30] sm:$0xff] %v236_v42 }
  0xfd   :  { %245 = vst [vmem:[%s395_s3 + $0x28] sm:$0xff] %v195_v45  ;;  %247 = vst [vmem:[%s395_s3 + $0x38] sm:$0xff] %v238_v46 }
  0xfe   :  { %252 = vsyncpa [#allocation3], 1 }

// kernel: s2vt_forward.7
= control target key start
LH: loop header
LB: loop body
LE: loop exit
PB: predicated region body
PF: predicated region fallthrough
CT: control target
= control target key end

     0   :  { %s1819_s12 = smov 0   ;;  %s2421_s0 = inlined_call_operand.vmem [shape: f32[8,2,512], index: 0, kind: input, shape index: {}]   ;;  %s2422_s1 = inlined_call_operand.vmem [shape: f32[1,512], index: 1, kind: input, shape index: {}]   ;;  %s2423_s2 = inlined_call_operand.vmem [shape: bf16[128,512], index: 2, kind: input, shape index: {}]   ;;  %s2424_s3 = inlined_call_operand.vmem [shape: bf16[16,2,128], index: 3, kind: output, shape index: {}]  }
   0x1 LB: > { %s1565_s13 = sadd.s32 4294967295, %s1794_s12   ;;  %p1569_p0 = scmp.ge.s32.totalorder %s1794_s12, 1  ;;  %s1794_s12 = sphi %s1819_s12, %s13_s12  }
   0x2   : > { %p147_p1 = scmp.lt.s32.totalorder %s1794_s12, 3 }
   0x4   : > { %p148_p2 = pnand %p1569_p0, %p147_p1 }
   0x5   : > { %p173_p3 = scmp.lt.s32.totalorder (!%p148_p2), %s1565_s13, 0  ;;  %s1827_s14 = sshll.u32 (!%p148_p2), %s1565_s13, 3 }
   0x6   : > { %151 = sbr.rel (%p148_p2) target bundleno = 2201 (0x899), region = 32  ;;  %p185_p4 = scmp.lt.s32.totalorder (!%p148_p2), %s1827_s14, 15 }
   0x7   : > { %p1574_p6 = scmp.ne.s32.totalorder (!%p148_p2), %s1565_s13, 0 }
   0xd   : > { %s174_s15 = scalar_select %p173_p3, %s1565_s13, 0 }
   0xe   : > { %s186_s16 = scalar_select %p185_p4, %s1827_s14, 15 }
   0xf   : > { %s1570_s17 = sshll.u32 %s174_s15, 3  ;;  %193 = sbr.rel (%p1574_p6) target bundleno = 22 (0x16), region = 36  ;;  %v1796_v0 = vmov (!%p1574_p6), 0.0  }
  0x10   : > { %p176_p5 = scmp.lt.s32.totalorder %s1570_s17, 7  ;;  %s1834_s20 = scalar_lea.vmem %s2424_s3, %s186_s16  ;;  %194 = vst [vmem:[#allocation2] sm:$0x3] (!%p1574_p6), %v1796_v0  ;;  %195 = vst [vmem:[#allocation3] sm:$0x3] (!%p1574_p6), %v1796_v0 }
  0x12   : > { %s2426_s17 = smov (!%p176_p5, %s1570_s17), 7 }
  0x13   : > { %s1632_s21 = sshll.u32 %s2426_s17, 3 }
  0x14   : > { %s1839_s24 = scalar_lea.vmem %s2421_s0, %s1632_s21 }
  0x16 PF: > { %v1844_v1 = vld [vmem:[%s2423_s2 + $0x4] ss:$16 sps:$4 sm:$0xff]   ;;  %v1849_v2 = vld [vmem:[%s2423_s2 + $0xc] ss:$16 sps:$4 sm:$0xff]   ;;  %v1797_v3 = vmov 0   ;;  %v235_v36 = vlaneseq  ;;  %p232_p7 = scmp.lt.s32.totalorder %s1827_s14, 8 }
  0x17   : > { %466 = vmatprep.mubr.bf16.mxu0 %v1797_v3  ;;  %507 = vmatprep.mubr.bf16.mxu1 %v1797_v3  ;;  %v1857_v4 = vld [vmem:[%s2423_s2] ss:$16 sps:$4 sm:$0xff]   ;;  %v1862_v5 = vld [vmem:[%s2423_s2 + $0x8] ss:$16 sps:$4 sm:$0xff]   ;;  %v1868_v6 = vld [vmem:[%s2423_s2 + $0x24] ss:$16 sps:$4 sm:$0xff]  }
  0x18   : > { %434 = vmatprep.subr.bf16.mxu0 %v1844_v1  ;;  %475 = vmatprep.subr.bf16.mxu1 %v1849_v2  ;;  %v1875_v7 = vld [vmem:[%s2423_s2 + $0x2c] ss:$16 sps:$4 sm:$0xff]   ;;  %v1880_v8 = vld [vmem:[%s2423_s2 + $0x20] ss:$16 sps:$4 sm:$0xff]   ;;  %v1886_v9 = vld [vmem:[%s2423_s2 + $0x28] ss:$16 sps:$4 sm:$0xff]  }
  0x19   : > { %435 = vmatpush1.bf16.msra.mxu0 %v1857_v4  ;;  %476 = vmatpush1.bf16.msra.mxu1 %v1862_v5  ;;  %v1892_v10 = vld [vmem:[%s2423_s2 + $0x44] ss:$16 sps:$4 sm:$0xff]   ;;  %v1897_v11 = vld [vmem:[%s2423_s2 + $0x4c] ss:$16 sps:$4 sm:$0xff]   ;;  %v1902_v12 = vld [vmem:[%s2423_s2 + $0x40] ss:$16 sps:$4 sm:$0xff]  }
  0x1a   : > { %436 = vmatprep.subr.bf16.mxu0 %v1868_v6  ;;  %477 = vmatprep.subr.bf16.mxu1 %v1875_v7  ;;  %v1907_v13 = vld [vmem:[%s2423_s2 + $0x48] ss:$16 sps:$4 sm:$0xff]   ;;  %v1914_v14 = vld [vmem:[%s2423_s2 + $0x64] ss:$16 sps:$4 sm:$0xff]   ;;  %v1921_v15 = vld [vmem:[%s2423_s2 + $0x6c] ss:$16 sps:$4 sm:$0xff]  }
  0x1b   : > { %v1926_v16 = vld [vmem:[%s2423_s2 + $0x60] ss:$16 sps:$4 sm:$0xff]   ;;  %v1933_v17 = vld [vmem:[%s2423_s2 + $0x68] ss:$16 sps:$4 sm:$0xff]   ;;  %v1938_v18 = vld [vmem:[%s2423_s2 + $0x84] ss:$16 sps:$4 sm:$0xff]  }
  0x1c   : > { %v1945_v19 = vld [vmem:[%s2423_s2 + $0x8c] ss:$16 sps:$4 sm:$0xff]   ;;  %v1950_v20 = vld [vmem:[%s2423_s2 + $0x80] ss:$16 sps:$4 sm:$0xff]   ;;  %v1955_v21 = vld [vmem:[%s2423_s2 + $0x88] ss:$16 sps:$4 sm:$0xff]  }
  0x1d   : > { %437 = vmatpush1.bf16.msra.mxu0 %v1880_v8  ;;  %478 = vmatpush1.bf16.msra.mxu1 %v1886_v9  ;;  %v1962_v22 = vld [vmem:[%s2423_s2 + $0xa4] ss:$16 sps:$4 sm:$0xff]   ;;  %v1969_v23 = vld [vmem:[%s2423_s2 + $0xac] ss:$16 sps:$4 sm:$0xff]   ;;  %v1976_v24 = vld [vmem:[%s2423_s2 + $0xa0] ss:$16 sps:$4 sm:$0xff]  }
  0x1e   : > { %438 = vmatprep.subr.bf16.mxu0 %v1892_v10  ;;  %479 = vmatprep.subr.bf16.mxu1 %v1897_v11  ;;  %v1981_v25 = vld [vmem:[%s2423_s2 + $0xa8] ss:$16 sps:$4 sm:$0xff]   ;;  %v1988_v26 = vld [vmem:[%s2423_s2 + $0xc4] ss:$16 sps:$4 sm:$0xff]   ;;  %v1993_v27 = vld [vmem:[%s2423_s2 + $0xcc] ss:$16 sps:$4 sm:$0xff]  }
  0x1f   : > { %v2000_v28 = vld [vmem:[%s2423_s2 + $0xc0] ss:$16 sps:$4 sm:$0xff]   ;;  %v2005_v29 = vld [vmem:[%s2423_s2 + $0xc8] ss:$16 sps:$4 sm:$0xff]   ;;  %v2012_v30 = vld [vmem:[%s2423_s2 + $0xe4] ss:$16 sps:$4 sm:$0xff]  }
  0x20   : > { %v2017_v31 = vld [vmem:[%s2423_s2 + $0xec] ss:$16 sps:$4 sm:$0xff]   ;;  %v2024_v32 = vld [vmem:[%s2423_s2 + $0xe0] ss:$16 sps:$4 sm:$0xff]   ;;  %v2029_v33 = vld [vmem:[%s2423_s2 + $0xe8] ss:$16 sps:$4 sm:$0xff]  }
  0x21   : > { %439 = vmatpush1.bf16.msra.mxu0 %v1902_v12  ;;  %480 = vmatpush1.bf16.msra.mxu1 %v1907_v13  ;;  %v230_v34 = vld [vmem:[#allocation2] sm:$0x3]  ;;  %v236_v37 = vshrl.u32 %v235_v36, 7  ;;  %v1798_v38 = vmov 1983009808   ;;  %s561_s22 = sadd.s32 1, %s1827_s14 }
  0x22   : > { %440 = vmatprep.subr.bf16.mxu0 %v1914_v14  ;;  %481 = vmatprep.subr.bf16.mxu1 %v1921_v15  ;;  %v273_v35 = vpack.c.bf16 %v230_v34, %v230_v34  ;;  %v257_v39 = vunpack.c.l.s4 %v1798_v38  ;;  %v228_v44 = vld [vmem:[%s2422_s1] sm:$0xf]  ;;  %s251_s21 = scalar_select %p232_p7, 1, 0 }
  0x23   : > { %v237_v40 = vsub.s32 0, %v236_v37  ;;  %v241_v41 = vsub.s32 1, %v236_v37  ;;  %v245_v42 = vsub.s32 2, %v236_v37  ;;  %v249_v43 = vsub.s32 3, %v236_v37  ;;  %v233_v62 = vld [vmem:[%s1839_s24] sm:$0xff]  ;;  %p562_p8 = scmp.lt.s32.totalorder %s561_s22, 8 }
  0x24   : > { %v258_v45 = vunpack.c.0.s8 %v257_v39  ;;  %v252_v55 = vstv %s251_s21  ;;  %s697_s25 = sadd.s32 2, %s1827_s14  ;;  %s833_s27 = sadd.s32 3, %s1827_s14 }
  0x25   : > { %441 = vmatpush1.bf16.msra.mxu0 %v1926_v16  ;;  %482 = vmatpush1.bf16.msra.mxu1 %v1933_v17  ;;  %v238_v46 = vrot.slane %v228_v44, %v237_v40  ;;  %v242_v47 = vrot.slane %v228_v44, %v241_v41  ;;  %v246_v48 = vrot.slane %v228_v44, %v245_v42  ;;  %vm253_vm0 = vcmp.eq.s32.totalorder %v252_v55, 1  ;;  %s565_s23 = scalar_select %p562_p8, 1, 0 }
  0x26   : > { %442 = vmatprep.subr.bf16.mxu0 %v1938_v18  ;;  %483 = vmatprep.subr.bf16.mxu1 %v1945_v19  ;;  %v250_v49 = vrot.slane %v228_v44, %v249_v43  ;;  %v2075_v50 = vsub.s32 %v258_v45, %v236_v37  ;;  %p698_p9 = scmp.lt.s32.totalorder %s697_s25, 8  ;;  %p834_p10 = scmp.lt.s32.totalorder %s833_s27, 8 }
  0x27   : > { %v254_v51 = vcombine.low %v238_v46, %v242_v47  ;;  %v231_v47 = vld [vmem:[#allocation3] sm:$0x3]  ;;  %s969_s29 = sadd.s32 4, %s1827_s14  ;;  %s1105_s8 = sadd.s32 5, %s1827_s14 }
  0x28   : > { %v255_v52 = vcombine.low %v246_v48, %v250_v49  ;;  %s701_s26 = scalar_select %p698_p9, 1, 0 }
  0x29   : > { %443 = vmatpush1.bf16.msra.mxu0 %v1950_v20  ;;  %484 = vmatpush1.bf16.msra.mxu1 %v1955_v21  ;;  %v262_v53 = vrot.slane %v254_v51, %v2075_v50  ;;  %s837_s28 = scalar_select %p834_p10, 1, 0 }
  0x2a   : > { %444 = vmatprep.subr.bf16.mxu0 %v1962_v22  ;;  %485 = vmatprep.subr.bf16.mxu1 %v1969_v23  ;;  %v269_v54 = vrot.slane %v255_v52, %v2075_v50  ;;  %p970_p11 = scmp.lt.s32.totalorder %s969_s29, 8  ;;  %p1106_p12 = scmp.lt.s32.totalorder %s1105_s8, 8 }
  0x2c   : > { %v2079_v59 = vcombine.low %v262_v53, %v269_v54  ;;  %s973_s30 = scalar_select %p970_p11, 1, 0 }
  0x2d   : > { %445 = vmatpush1.bf16.msra.mxu0 %v1976_v24  ;;  %486 = vmatpush1.bf16.msra.mxu1 %v1981_v25  ;;  %s1109_s9 = scalar_select %p1106_p12, 1, 0 }
  0x2e   : > { %446 = vmatprep.subr.bf16.mxu0 %v1988_v26  ;;  %487 = vmatprep.subr.bf16.mxu1 %v1993_v27  ;;  %v272_v39 = vsel %vm253_vm0, %v233_v62, %v2079_v59 }
  0x31   : > { %447 = vmatpush1.bf16.msra.mxu0 %v2000_v28  ;;  %488 = vmatpush1.bf16.msra.mxu1 %v2005_v29 }
  0x32   : > { %448 = vmatprep.subr.bf16.mxu0 %v2012_v30  ;;  %489 = vmatprep.subr.bf16.mxu1 %v2017_v31 }
  0x35   : > { %449 = vmatpush1.bf16.msra.mxu0 %v2024_v32  ;;  %490 = vmatpush1.bf16.msra.mxu1 %v2029_v33 }
  0x36   : > { %569 = vmatprep.subr.bf16.mxu0 %v1844_v1  ;;  %610 = vmatprep.subr.bf16.mxu1 %v1849_v2 }
  0x38   : > { %467 = vmatmul.mubr.bf16.vlgmr.msra.gmra.mrb[0].mxu0 %v273_v35  ;;  %508 = vmatmul.mubr.bf16.vlgmr.msra.gmra.mrb[0].mxu1 %v273_v35 }
  0x39   : > { %570 = vmatpush1.bf16.msra.mxu0 %v1857_v4  ;;  %611 = vmatpush1.bf16.msra.mxu1 %v1862_v5 }
  0x3a   : > { %571 = vmatprep.subr.bf16.mxu0 %v1868_v6  ;;  %612 = vmatprep.subr.bf16.mxu1 %v1875_v7 }
  0x3b   : > { %601 = vmatprep.mubr.bf16.mxu0 %v1797_v3  ;;  %642 = vmatprep.mubr.bf16.mxu1 %v1797_v3 }
  0x3d   : > { %572 = vmatpush1.bf16.msra.mxu0 %v1880_v8  ;;  %613 = vmatpush1.bf16.msra.mxu1 %v1886_v9 }
  0x3e   : > { %573 = vmatprep.subr.bf16.mxu0 %v1892_v10  ;;  %614 = vmatprep.subr.bf16.mxu1 %v1897_v11 }
  0x41   : > { %574 = vmatpush1.bf16.msra.mxu0 %v1902_v12  ;;  %615 = vmatpush1.bf16.msra.mxu1 %v1907_v13 }
  0x42   : > { %575 = vmatprep.subr.bf16.mxu0 %v1914_v14  ;;  %616 = vmatprep.subr.bf16.mxu1 %v1921_v15 }
  0x45   : > { %576 = vmatpush1.bf16.msra.mxu0 %v1926_v16  ;;  %617 = vmatpush1.bf16.msra.mxu1 %v1933_v17 }
  0x46   : > { %577 = vmatprep.subr.bf16.mxu0 %v1938_v18  ;;  %618 = vmatprep.subr.bf16.mxu1 %v1945_v19 }
  0x49   : > { %578 = vmatpush1.bf16.msra.mxu0 %v1950_v20  ;;  %619 = vmatpush1.bf16.msra.mxu1 %v1955_v21 }
  0x4a   : > { %579 = vmatprep.subr.bf16.mxu0 %v1962_v22  ;;  %620 = vmatprep.subr.bf16.mxu1 %v1969_v23 }
  0x4d   : > { %580 = vmatpush1.bf16.msra.mxu0 %v1976_v24  ;;  %621 = vmatpush1.bf16.msra.mxu1 %v1981_v25 }
  0x4e   : > { %581 = vmatprep.subr.bf16.mxu0 %v1988_v26  ;;  %622 = vmatprep.subr.bf16.mxu1 %v1993_v27 }
  0x51   : > { %582 = vmatpush1.bf16.msra.mxu0 %v2000_v28  ;;  %623 = vmatpush1.bf16.msra.mxu1 %v2005_v29 }
  0x52   : > { %583 = vmatprep.subr.bf16.mxu0 %v2012_v30  ;;  %624 = vmatprep.subr.bf16.mxu1 %v2017_v31 }
  0x55   : > { %584 = vmatpush1.bf16.msra.mxu0 %v2024_v32  ;;  %625 = vmatpush1.bf16.msra.mxu1 %v2029_v33 }
  0x56   : > { %705 = vmatprep.subr.bf16.mxu0 %v1844_v1  ;;  %746 = vmatprep.subr.bf16.mxu1 %v1849_v2 }
 0x10b   : > { %v468_v56 = vpop.f32.mrb[0].mxu0  ;;  %v509_v57 = vpop.f32.mrb[0].mxu1 }
 0x10c   : > { %v470_v58 = vpop.f32.mrb[1].mxu0  ;;  %v511_v60 = vpop.f32.mrb[1].mxu1 }
 0x10d   : > { %v520_v61 = vcombine.low %v468_v56, %v470_v58  ;;  %v521_v63 = vcombine.low %v509_v57, %v511_v60  ;;  %v472_v0 = vpop.f32.mrb[2].mxu0  ;;  %v513_v34 = vpop.f32.mrb[2].mxu1  ;;  %v566_v58 = vstv %s565_s23 }
 0x10e   : > { %v473_v35 = vpop.f32.mrb[3].mxu0  ;;  %v514_v36 = vpop.f32.mrb[3].mxu1  ;;  %v1609_v34 = vld [vmem:[%s1839_s24 + $0x8] sm:$0xff]  ;;  %vm567_vm1 = vcmp.eq.s32.totalorder %v566_v58, 1 }
 0x10f   : > { %v528_v37 = vrot.slane %v520_v61, %v2075_v50  ;;  %v535_v38 = vrot.slane %v521_v63, %v2075_v50 }
 0x111   : > { %v536_v40 = vcombine.low %v528_v37, %v535_v38 }
 0x113   : > { %v538_v41 = vadd.f32 %v536_v40, %v272_v39 }
 0x115   : > { %v1608_v42 = vmul.f32 -1.442695, %v538_v41  ;;  %v546_v45 = vrot.slane %v538_v41, 6 }
 0x117   : > { %1692 = vpow2.f32 %v1608_v42  ;;  %v568_v42 = vsel %vm567_vm1, %v1609_v34, %v2079_v59 }
 0x121   : > { %v1693_v43 = vpop.eup %1692 }
 0x122   : > { %v542_v44 = vadd.f32 1.0, %v1693_v43 }
 0x124   : > { %1694 = vrcp.f32 %v542_v44 }
 0x125   : > { %1696 = vtanh.f32 %v546_v45 }
 0x12e   : > { %v1695_v46 = vpop.eup %1694 }
 0x12f   : > { %v550_v48 = vrot.slane %v1695_v46, 2  ;;  %v1697_v49 = vpop.eup %1696  ;;  %v556_v54 = vrot.slane %v1695_v46, 4 }
 0x130   : > { %v553_v51 = vmul.f32 %v1697_v49, %v1695_v46 }
 0x131   : > { %v552_v52 = vmul.f32 %v550_v48, %v231_v47 }
 0x133   : > { %v2085_v53 = vadd.f32 %v553_v51, %v552_v52 }
 0x135   : > { %1698 = vtanh.f32 %v2085_v53 }
 0x13f   : > { %v1699_v55 = vpop.eup %1698 }
 0x140   : > { %v558_v56 = vmul.f32 %v1699_v55, %v556_v54 }
 0x142   : > { %v559_v57 = vpack.c.bf16 %v558_v56, %v558_v56 }
 0x144   : > { %560 = vst [vmem:[%s1834_s20] sm:$0x1] %v559_v57  ;;  %602 = vmatmul.mubr.bf16.vlgmr.msra.gmra.mrb[4].mxu0 %v559_v57  ;;  %643 = vmatmul.mubr.bf16.vlgmr.msra.gmra.mrb[4].mxu1 %v559_v57 }
 0x145   : > { %706 = vmatpush1.bf16.msra.mxu0 %v1857_v4  ;;  %747 = vmatpush1.bf16.msra.mxu1 %v1862_v5 }
 0x146   : > { %707 = vmatprep.subr.bf16.mxu0 %v1868_v6  ;;  %748 = vmatprep.subr.bf16.mxu1 %v1875_v7 }
 0x147   : > { %737 = vmatprep.mubr.bf16.mxu0 %v1797_v3  ;;  %778 = vmatprep.mubr.bf16.mxu1 %v1797_v3 }
 0x149   : > { %708 = vmatpush1.bf16.msra.mxu0 %v1880_v8  ;;  %749 = vmatpush1.bf16.msra.mxu1 %v1886_v9 }
 0x14a   : > { %709 = vmatprep.subr.bf16.mxu0 %v1892_v10  ;;  %750 = vmatprep.subr.bf16.mxu1 %v1897_v11 }
 0x14d   : > { %710 = vmatpush1.bf16.msra.mxu0 %v1902_v12  ;;  %751 = vmatpush1.bf16.msra.mxu1 %v1907_v13 }
 0x14e   : > { %711 = vmatprep.subr.bf16.mxu0 %v1914_v14  ;;  %752 = vmatprep.subr.bf16.mxu1 %v1921_v15 }
 0x151   : > { %712 = vmatpush1.bf16.msra.mxu0 %v1926_v16  ;;  %753 = vmatpush1.bf16.msra.mxu1 %v1933_v17 }
 0x152   : > { %713 = vmatprep.subr.bf16.mxu0 %v1938_v18  ;;  %754 = vmatprep.subr.bf16.mxu1 %v1945_v19 }
 0x155   : > { %714 = vmatpush1.bf16.msra.mxu0 %v1950_v20  ;;  %755 = vmatpush1.bf16.msra.mxu1 %v1955_v21 }
 0x156   : > { %715 = vmatprep.subr.bf16.mxu0 %v1962_v22  ;;  %756 = vmatprep.subr.bf16.mxu1 %v1969_v23 }
 0x159   : > { %716 = vmatpush1.bf16.msra.mxu0 %v1976_v24  ;;  %757 = vmatpush1.bf16.msra.mxu1 %v1981_v25 }
 0x15a   : > { %717 = vmatprep.subr.bf16.mxu0 %v1988_v26  ;;  %758 = vmatprep.subr.bf16.mxu1 %v1993_v27 }
 0x15d   : > { %718 = vmatpush1.bf16.msra.mxu0 %v2000_v28  ;;  %759 = vmatpush1.bf16.msra.mxu1 %v2005_v29 }
 0x15e   : > { %719 = vmatprep.subr.bf16.mxu0 %v2012_v30  ;;  %760 = vmatprep.subr.bf16.mxu1 %v2017_v31 }
 0x161   : > { %720 = vmatpush1.bf16.msra.mxu0 %v2024_v32  ;;  %761 = vmatpush1.bf16.msra.mxu1 %v2029_v33 }
 0x162   : > { %841 = vmatprep.subr.bf16.mxu0 %v1844_v1  ;;  %882 = vmatprep.subr.bf16.mxu1 %v1849_v2 }
 0x217   : > { %v603_v60 = vpop.f32.mrb[4].mxu0  ;;  %v644_v61 = vpop.f32.mrb[4].mxu1 }
 0x218   : > { %v605_v62 = vpop.f32.mrb[5].mxu0  ;;  %v646_v63 = vpop.f32.mrb[5].mxu1 }
 0x219   : > { %v655_v0 = vcombine.low %v603_v60, %v605_v62  ;;  %v656_v35 = vcombine.low %v644_v61, %v646_v63  ;;  %v607_v36 = vpop.f32.mrb[6].mxu0  ;;  %v648_v37 = vpop.f32.mrb[6].mxu1 }
 0x21a   : > { %v608_v38 = vpop.f32.mrb[7].mxu0  ;;  %v649_v39 = vpop.f32.mrb[7].mxu1  ;;  %v1612_v36 = vld [vmem:[%s1839_s24 + $0x10] sm:$0xff] }
 0x21b   : > { %v663_v40 = vrot.slane %v655_v0, %v2075_v50  ;;  %v670_v41 = vrot.slane %v656_v35, %v2075_v50 }
 0x21d   : > { %v671_v43 = vcombine.low %v663_v40, %v670_v41 }
 0x21f   : > { %v673_v44 = vadd.f32 %v671_v43, %v568_v42 }
 0x221   : > { %v1610_v45 = vmul.f32 -1.442695, %v673_v44  ;;  %v681_v48 = vrot.slane %v673_v44, 6 }
 0x223   : > { %1700 = vpow2.f32 %v1610_v45 }
 0x22d   : > { %v1701_v46 = vpop.eup %1700 }
 0x22e   : > { %v677_v47 = vadd.f32 1.0, %v1701_v46 }
 0x230   : > { %1702 = vrcp.f32 %v677_v47 }
 0x231   : > { %1704 = vtanh.f32 %v681_v48 }
 0x23a   : > { %v1703_v49 = vpop.eup %1702 }
 0x23b   : > { %v685_v51 = vrot.slane %v1703_v49, 2  ;;  %v1705_v52 = vpop.eup %1704  ;;  %v691_v57 = vrot.slane %v1703_v49, 4 }
 0x23c   : > { %v688_v54 = vmul.f32 %v1705_v52, %v1703_v49 }
 0x23d   : > { %v687_v55 = vmul.f32 %v685_v51, %v2085_v53  ;;  %v702_v53 = vstv %s701_s26 }
 0x23e   : > { %vm703_vm2 = vcmp.eq.s32.totalorder %v702_v53, 1 }
 0x23f   : > { %v2129_v56 = vadd.f32 %v688_v54, %v687_v55  ;;  %v704_v44 = vsel %vm703_vm2, %v1612_v36, %v2079_v59 }
 0x241   : > { %1706 = vtanh.f32 %v2129_v56 }
 0x24b   : > { %v1707_v58 = vpop.eup %1706 }
 0x24c   : > { %v693_v60 = vmul.f32 %v1707_v58, %v691_v57 }
 0x24e   : > { %v694_v61 = vpack.c.bf16 %v693_v60, %v693_v60 }
 0x250   : > { %1611 = vst [vmem:[%s1834_s20 + $0x1] sm:$0x1] %v694_v61  ;;  %738 = vmatmul.mubr.bf16.vlgmr.msra.gmra.mrb[8].mxu0 %v694_v61  ;;  %779 = vmatmul.mubr.bf16.vlgmr.msra.gmra.mrb[8].mxu1 %v694_v61 }
 0x251   : > { %842 = vmatpush1.bf16.msra.mxu0 %v1857_v4  ;;  %883 = vmatpush1.bf16.msra.mxu1 %v1862_v5 }
 0x252   : > { %843 = vmatprep.subr.bf16.mxu0 %v1868_v6  ;;  %884 = vmatprep.subr.bf16.mxu1 %v1875_v7 }
 0x253   : > { %873 = vmatprep.mubr.bf16.mxu0 %v1797_v3  ;;  %914 = vmatprep.mubr.bf16.mxu1 %v1797_v3 }
 0x255   : > { %844 = vmatpush1.bf16.msra.mxu0 %v1880_v8  ;;  %885 = vmatpush1.bf16.msra.mxu1 %v1886_v9 }
 0x256   : > { %845 = vmatprep.subr.bf16.mxu0 %v1892_v10  ;;  %886 = vmatprep.subr.bf16.mxu1 %v1897_v11 }
 0x259   : > { %846 = vmatpush1.bf16.msra.mxu0 %v1902_v12  ;;  %887 = vmatpush1.bf16.msra.mxu1 %v1907_v13 }
 0x25a   : > { %847 = vmatprep.subr.bf16.mxu0 %v1914_v14  ;;  %888 = vmatprep.subr.bf16.mxu1 %v1921_v15 }
 0x25d   : > { %848 = vmatpush1.bf16.msra.mxu0 %v1926_v16  ;;  %889 = vmatpush1.bf16.msra.mxu1 %v1933_v17 }
 0x25e   : > { %849 = vmatprep.subr.bf16.mxu0 %v1938_v18  ;;  %890 = vmatprep.subr.bf16.mxu1 %v1945_v19 }
 0x261   : > { %850 = vmatpush1.bf16.msra.mxu0 %v1950_v20  ;;  %891 = vmatpush1.bf16.msra.mxu1 %v1955_v21 }
 0x262   : > { %851 = vmatprep.subr.bf16.mxu0 %v1962_v22  ;;  %892 = vmatprep.subr.bf16.mxu1 %v1969_v23 }
 0x265   : > { %852 = vmatpush1.bf16.msra.mxu0 %v1976_v24  ;;  %893 = vmatpush1.bf16.msra.mxu1 %v1981_v25 }
 0x266   : > { %853 = vmatprep.subr.bf16.mxu0 %v1988_v26  ;;  %894 = vmatprep.subr.bf16.mxu1 %v1993_v27 }
 0x269   : > { %854 = vmatpush1.bf16.msra.mxu0 %v2000_v28  ;;  %895 = vmatpush1.bf16.msra.mxu1 %v2005_v29 }
 0x26a   : > { %855 = vmatprep.subr.bf16.mxu0 %v2012_v30  ;;  %896 = vmatprep.subr.bf16.mxu1 %v2017_v31 }
 0x26d   : > { %856 = vmatpush1.bf16.msra.mxu0 %v2024_v32  ;;  %897 = vmatpush1.bf16.msra.mxu1 %v2029_v33 }
 0x26e   : > { %977 = vmatprep.subr.bf16.mxu0 %v1844_v1  ;;  %1018 = vmatprep.subr.bf16.mxu1 %v1849_v2 }
 0x323   : > { %v739_v62 = vpop.f32.mrb[8].mxu0  ;;  %v780_v63 = vpop.f32.mrb[8].mxu1 }
 0x324   : > { %v741_v0 = vpop.f32.mrb[9].mxu0  ;;  %v782_v34 = vpop.f32.mrb[9].mxu1 }
 0x325   : > { %v791_v35 = vcombine.low %v739_v62, %v741_v0  ;;  %v792_v37 = vcombine.low %v780_v63, %v782_v34  ;;  %v743_v38 = vpop.f32.mrb[10].mxu0  ;;  %v784_v39 = vpop.f32.mrb[10].mxu1 }
 0x326   : > { %v744_v40 = vpop.f32.mrb[11].mxu0  ;;  %v785_v41 = vpop.f32.mrb[11].mxu1  ;;  %v1615_v38 = vld [vmem:[%s1839_s24 + $0x18] sm:$0xff] }
 0x327   : > { %v799_v42 = vrot.slane %v791_v35, %v2075_v50  ;;  %v806_v43 = vrot.slane %v792_v37, %v2075_v50 }
 0x329   : > { %v807_v45 = vcombine.low %v799_v42, %v806_v43 }
 0x32b   : > { %v809_v46 = vadd.f32 %v807_v45, %v704_v44 }
 0x32d   : > { %v1613_v47 = vmul.f32 -1.442695, %v809_v46  ;;  %v817_v51 = vrot.slane %v809_v46, 6 }
 0x32f   : > { %1708 = vpow2.f32 %v1613_v47 }
 0x339   : > { %v1709_v48 = vpop.eup %1708 }
 0x33a   : > { %v813_v49 = vadd.f32 1.0, %v1709_v48 }
 0x33c   : > { %1710 = vrcp.f32 %v813_v49 }
 0x33d   : > { %1712 = vtanh.f32 %v817_v51 }
 0x346   : > { %v1711_v52 = vpop.eup %1710 }
 0x347   : > { %v821_v54 = vrot.slane %v1711_v52, 2  ;;  %v1713_v55 = vpop.eup %1712  ;;  %v827_v61 = vrot.slane %v1711_v52, 4 }
 0x348   : > { %v824_v57 = vmul.f32 %v1713_v55, %v1711_v52 }
 0x349   : > { %v823_v58 = vmul.f32 %v821_v54, %v2129_v56  ;;  %v838_v56 = vstv %s837_s28  ;;  %s1241_s28 = sadd.s32 6, %s1827_s14 }
 0x34a   : > { %vm839_vm3 = vcmp.eq.s32.totalorder %v838_v56, 1  ;;  %p1242_p13 = scmp.lt.s32.totalorder %s1241_s28, 8 }
 0x34b   : > { %v2173_v60 = vadd.f32 %v824_v57, %v823_v58  ;;  %v840_v46 = vsel %vm839_vm3, %v1615_v38, %v2079_v59 }
 0x34c   : > { %s1245_s29 = scalar_select %p1242_p13, 1, 0 }
 0x34d   : > { %1714 = vtanh.f32 %v2173_v60 }
 0x357   : > { %v1715_v53 = vpop.eup %1714 }
 0x358   : > { %v829_v62 = vmul.f32 %v1715_v53, %v827_v61 }
 0x35a   : > { %v830_v63 = vpack.c.bf16 %v829_v62, %v829_v62 }
 0x35c   : > { %1614 = vst [vmem:[%s1834_s20 + $0x2] sm:$0x1] %v830_v63  ;;  %874 = vmatmul.mubr.bf16.vlgmr.msra.gmra.mrb[12].mxu0 %v830_v63  ;;  %915 = vmatmul.mubr.bf16.vlgmr.msra.gmra.mrb[12].mxu1 %v830_v63 }
 0x35d   : > { %978 = vmatpush1.bf16.msra.mxu0 %v1857_v4  ;;  %1019 = vmatpush1.bf16.msra.mxu1 %v1862_v5 }
 0x35e   : > { %979 = vmatprep.subr.bf16.mxu0 %v1868_v6  ;;  %1020 = vmatprep.subr.bf16.mxu1 %v1875_v7 }
 0x35f   : > { %1009 = vmatprep.mubr.bf16.mxu0 %v1797_v3  ;;  %1050 = vmatprep.mubr.bf16.mxu1 %v1797_v3 }
 0x361   : > { %980 = vmatpush1.bf16.msra.mxu0 %v1880_v8  ;;  %1021 = vmatpush1.bf16.msra.mxu1 %v1886_v9 }
 0x362   : > { %981 = vmatprep.subr.bf16.mxu0 %v1892_v10  ;;  %1022 = vmatprep.subr.bf16.mxu1 %v1897_v11 }
 0x365   : > { %982 = vmatpush1.bf16.msra.mxu0 %v1902_v12  ;;  %1023 = vmatpush1.bf16.msra.mxu1 %v1907_v13 }
 0x366   : > { %983 = vmatprep.subr.bf16.mxu0 %v1914_v14  ;;  %1024 = vmatprep.subr.bf16.mxu1 %v1921_v15 }
 0x369   : > { %984 = vmatpush1.bf16.msra.mxu0 %v1926_v16  ;;  %1025 = vmatpush1.bf16.msra.mxu1 %v1933_v17 }
 0x36a   : > { %985 = vmatprep.subr.bf16.mxu0 %v1938_v18  ;;  %1026 = vmatprep.subr.bf16.mxu1 %v1945_v19 }
 0x36d   : > { %986 = vmatpush1.bf16.msra.mxu0 %v1950_v20  ;;  %1027 = vmatpush1.bf16.msra.mxu1 %v1955_v21 }
 0x36e   : > { %987 = vmatprep.subr.bf16.mxu0 %v1962_v22  ;;  %1028 = vmatprep.subr.bf16.mxu1 %v1969_v23 }
 0x371   : > { %988 = vmatpush1.bf16.msra.mxu0 %v1976_v24  ;;  %1029 = vmatpush1.bf16.msra.mxu1 %v1981_v25 }
 0x372   : > { %989 = vmatprep.subr.bf16.mxu0 %v1988_v26  ;;  %1030 = vmatprep.subr.bf16.mxu1 %v1993_v27 }
 0x375   : > { %990 = vmatpush1.bf16.msra.mxu0 %v2000_v28  ;;  %1031 = vmatpush1.bf16.msra.mxu1 %v2005_v29 }
 0x376   : > { %991 = vmatprep.subr.bf16.mxu0 %v2012_v30  ;;  %1032 = vmatprep.subr.bf16.mxu1 %v2017_v31 }
 0x379   : > { %992 = vmatpush1.bf16.msra.mxu0 %v2024_v32  ;;  %1033 = vmatpush1.bf16.msra.mxu1 %v2029_v33 }
 0x37a   : > { %1113 = vmatprep.subr.bf16.mxu0 %v1844_v1  ;;  %1154 = vmatprep.subr.bf16.mxu1 %v1849_v2 }
 0x42f   : > { %v875_v0 = vpop.f32.mrb[12].mxu0  ;;  %v916_v34 = vpop.f32.mrb[12].mxu1 }
 0x430   : > { %v877_v35 = vpop.f32.mrb[13].mxu0  ;;  %v918_v36 = vpop.f32.mrb[13].mxu1 }
 0x431   : > { %v927_v37 = vcombine.low %v875_v0, %v877_v35  ;;  %v928_v39 = vcombine.low %v916_v34, %v918_v36  ;;  %v879_v40 = vpop.f32.mrb[14].mxu0  ;;  %v920_v41 = vpop.f32.mrb[14].mxu1 }
 0x432   : > { %v880_v42 = vpop.f32.mrb[15].mxu0  ;;  %v921_v43 = vpop.f32.mrb[15].mxu1  ;;  %v1618_v40 = vld [vmem:[%s1839_s24 + $0x20] sm:$0xff] }
 0x433   : > { %v935_v44 = vrot.slane %v927_v37, %v2075_v50  ;;  %v942_v45 = vrot.slane %v928_v39, %v2075_v50 }
 0x435   : > { %v943_v47 = vcombine.low %v935_v44, %v942_v45 }
 0x437   : > { %v945_v48 = vadd.f32 %v943_v47, %v840_v46 }
 0x439   : > { %v1616_v49 = vmul.f32 -1.442695, %v945_v48  ;;  %v953_v54 = vrot.slane %v945_v48, 6 }
 0x43b   : > { %1716 = vpow2.f32 %v1616_v49 }
 0x445   : > { %v1717_v51 = vpop.eup %1716 }
 0x446   : > { %v949_v52 = vadd.f32 1.0, %v1717_v51 }
 0x448   : > { %1718 = vrcp.f32 %v949_v52 }
 0x449   : > { %1720 = vtanh.f32 %v953_v54 }
 0x452   : > { %v1719_v55 = vpop.eup %1718 }
 0x453   : > { %v957_v57 = vrot.slane %v1719_v55, 2  ;;  %v1721_v58 = vpop.eup %1720  ;;  %v963_v63 = vrot.slane %v1719_v55, 4 }
 0x454   : > { %v960_v61 = vmul.f32 %v1721_v58, %v1719_v55 }
 0x455   : > { %v959_v53 = vmul.f32 %v957_v57, %v2173_v60  ;;  %v974_v60 = vstv %s973_s30  ;;  %s1377_s30 = sadd.s32 7, %s1827_s14 }
 0x456   : > { %vm975_vm4 = vcmp.eq.s32.totalorder %v974_v60, 1  ;;  %p1378_p0 = scmp.lt.s32.totalorder %s1377_s30, 8 }
 0x457   : > { %v2217_v62 = vadd.f32 %v960_v61, %v959_v53  ;;  %v976_v46 = vsel %vm975_vm4, %v1618_v40, %v2079_v59  ;;  %v1761_v40 = vld [vmem:[%s2423_s2 + $0x2c] ss:$16 sps:$4 sm:$0xff]  }
 0x458   : > { %s1381_s4 = scalar_select %p1378_p0, 1, 0 }
 0x459   : > { %1722 = vtanh.f32 %v2217_v62 }
 0x463   : > { %v1723_v56 = vpop.eup %1722 }
 0x464   : > { %v965_v0 = vmul.f32 %v1723_v56, %v963_v63 }
 0x466   : > { %v966_v34 = vpack.c.bf16 %v965_v0, %v965_v0 }
 0x468   : > { %1617 = vst [vmem:[%s1834_s20 + $0x3] sm:$0x1] %v966_v34  ;;  %1010 = vmatmul.mubr.bf16.vlgmr.msra.gmra.mrb[16].mxu0 %v966_v34  ;;  %1051 = vmatmul.mubr.bf16.vlgmr.msra.gmra.mrb[16].mxu1 %v966_v34 }
 0x469   : > { %1114 = vmatpush1.bf16.msra.mxu0 %v1857_v4  ;;  %1155 = vmatpush1.bf16.msra.mxu1 %v1862_v5 }
 0x46a   : > { %1115 = vmatprep.subr.bf16.mxu0 %v1868_v6  ;;  %1156 = vmatprep.subr.bf16.mxu1 %v1875_v7 }
 0x46b   : > { %1145 = vmatprep.mubr.bf16.mxu0 %v1797_v3  ;;  %1186 = vmatprep.mubr.bf16.mxu1 %v1797_v3 }
 0x46d   : > { %1116 = vmatpush1.bf16.msra.mxu0 %v1880_v8  ;;  %1157 = vmatpush1.bf16.msra.mxu1 %v1886_v9 }
 0x46e   : > { %1117 = vmatprep.subr.bf16.mxu0 %v1892_v10  ;;  %1158 = vmatprep.subr.bf16.mxu1 %v1897_v11 }
 0x471   : > { %1118 = vmatpush1.bf16.msra.mxu0 %v1902_v12  ;;  %1159 = vmatpush1.bf16.msra.mxu1 %v1907_v13 }
 0x472   : > { %1119 = vmatprep.subr.bf16.mxu0 %v1914_v14  ;;  %1160 = vmatprep.subr.bf16.mxu1 %v1921_v15 }
 0x475   : > { %1120 = vmatpush1.bf16.msra.mxu0 %v1926_v16  ;;  %1161 = vmatpush1.bf16.msra.mxu1 %v1933_v17 }
 0x476   : > { %1121 = vmatprep.subr.bf16.mxu0 %v1938_v18  ;;  %1162 = vmatprep.subr.bf16.mxu1 %v1945_v19 }
 0x479   : > { %1122 = vmatpush1.bf16.msra.mxu0 %v1950_v20  ;;  %1163 = vmatpush1.bf16.msra.mxu1 %v1955_v21 }
 0x47a   : > { %1123 = vmatprep.subr.bf16.mxu0 %v1962_v22  ;;  %1164 = vmatprep.subr.bf16.mxu1 %v1969_v23 }
 0x47d   : > { %1124 = vmatpush1.bf16.msra.mxu0 %v1976_v24  ;;  %1165 = vmatpush1.bf16.msra.mxu1 %v1981_v25 }
 0x47e   : > { %1125 = vmatprep.subr.bf16.mxu0 %v1988_v26  ;;  %1166 = vmatprep.subr.bf16.mxu1 %v1993_v27 }
 0x481   : > { %1126 = vmatpush1.bf16.msra.mxu0 %v2000_v28  ;;  %1167 = vmatpush1.bf16.msra.mxu1 %v2005_v29 }
 0x482   : > { %1127 = vmatprep.subr.bf16.mxu0 %v2012_v30  ;;  %1168 = vmatprep.subr.bf16.mxu1 %v2017_v31 }
 0x485   : > { %1128 = vmatpush1.bf16.msra.mxu0 %v2024_v32  ;;  %1169 = vmatpush1.bf16.msra.mxu1 %v2029_v33 }
 0x486   : > { %1249 = vmatprep.subr.bf16.mxu0 %v1844_v1  ;;  %1290 = vmatprep.subr.bf16.mxu1 %v1849_v2 }
 0x53b   : > { %v1011_v35 = vpop.f32.mrb[16].mxu0  ;;  %v1052_v36 = vpop.f32.mrb[16].mxu1 }
 0x53c   : > { %v1013_v37 = vpop.f32.mrb[17].mxu0  ;;  %v1054_v38 = vpop.f32.mrb[17].mxu1 }
 0x53d   : > { %v1063_v39 = vcombine.low %v1011_v35, %v1013_v37  ;;  %v1064_v41 = vcombine.low %v1052_v36, %v1054_v38  ;;  %v1015_v42 = vpop.f32.mrb[18].mxu0  ;;  %v1056_v43 = vpop.f32.mrb[18].mxu1  ;;  %v1758_v37 = vld [vmem:[%s2423_s2] ss:$16 sps:$4 sm:$0xff]   ;;  %v1759_v38 = vld [vmem:[%s2423_s2 + $0x8] ss:$16 sps:$4 sm:$0xff]  }
 0x53e   : > { %v1016_v44 = vpop.f32.mrb[19].mxu0  ;;  %v1057_v45 = vpop.f32.mrb[19].mxu1  ;;  %v1763_v42 = vld [vmem:[%s2423_s2 + $0x28] ss:$16 sps:$4 sm:$0xff]   ;;  %v1764_v43 = vld [vmem:[%s2423_s2 + $0x44] ss:$16 sps:$4 sm:$0xff]  }
 0x53f   : > { %v1071_v1 = vrot.slane %v1063_v39, %v2075_v50  ;;  %v1078_v2 = vrot.slane %v1064_v41, %v2075_v50  ;;  %v1760_v39 = vld [vmem:[%s2423_s2 + $0x24] ss:$16 sps:$4 sm:$0xff]   ;;  %v1762_v41 = vld [vmem:[%s2423_s2 + $0x20] ss:$16 sps:$4 sm:$0xff]   ;;  %v1765_v44 = vld [vmem:[%s2423_s2 + $0x4c] ss:$16 sps:$4 sm:$0xff]  }
 0x540   : > { %v1767_v45 = vld [vmem:[%s2423_s2 + $0x48] ss:$16 sps:$4 sm:$0xff]  }
 0x541   : > { %v1079_v47 = vcombine.low %v1071_v1, %v1078_v2  ;;  %v1768_v1 = vld [vmem:[%s2423_s2 + $0x64] ss:$16 sps:$4 sm:$0xff]   ;;  %v1769_v2 = vld [vmem:[%s2423_s2 + $0x6c] ss:$16 sps:$4 sm:$0xff]  }
 0x543   : > { %v1081_v48 = vadd.f32 %v1079_v47, %v976_v46  ;;  %v1770_v46 = vld [vmem:[%s2423_s2 + $0x60] ss:$16 sps:$4 sm:$0xff]   ;;  %v1771_v47 = vld [vmem:[%s2423_s2 + $0x68] ss:$16 sps:$4 sm:$0xff]  }
 0x545   : > { %v1619_v49 = vmul.f32 -1.442695, %v1081_v48  ;;  %v1089_v54 = vrot.slane %v1081_v48, 6  ;;  %v1772_v48 = vld [vmem:[%s2423_s2 + $0x84] ss:$16 sps:$4 sm:$0xff]  }
 0x547   : > { %1724 = vpow2.f32 %v1619_v49  ;;  %v1773_v49 = vld [vmem:[%s2423_s2 + $0x8c] ss:$16 sps:$4 sm:$0xff]  }
 0x551   : > { %v1725_v51 = vpop.eup %1724 }
 0x552   : > { %v1085_v52 = vadd.f32 1.0, %v1725_v51  ;;  %v1774_v51 = vld [vmem:[%s2423_s2 + $0x80] ss:$16 sps:$4 sm:$0xff]  }
 0x554   : > { %1726 = vrcp.f32 %v1085_v52  ;;  %v1775_v52 = vld [vmem:[%s2423_s2 + $0x88] ss:$16 sps:$4 sm:$0xff]  }
 0x555   : > { %1728 = vtanh.f32 %v1089_v54  ;;  %v1776_v54 = vld [vmem:[%s2423_s2 + $0xa4] ss:$16 sps:$4 sm:$0xff]  }
 0x55e   : > { %v1727_v55 = vpop.eup %1726 }
 0x55f   : > { %v1093_v57 = vrot.slane %v1727_v55, 2  ;;  %v1729_v58 = vpop.eup %1728  ;;  %v1099_v56 = vrot.slane %v1727_v55, 4 }
 0x560   : > { %v1096_v61 = vmul.f32 %v1729_v58, %v1727_v55  ;;  %v1777_v55 = vld [vmem:[%s2423_s2 + $0xac] ss:$16 sps:$4 sm:$0xff]   ;;  %v1779_v58 = vld [vmem:[%s2423_s2 + $0xa8] ss:$16 sps:$4 sm:$0xff]  }
 0x561   : > { %v1095_v53 = vmul.f32 %v1093_v57, %v2217_v62  ;;  %v1778_v57 = vld [vmem:[%s2423_s2 + $0xa0] ss:$16 sps:$4 sm:$0xff]  }
 0x563   : > { %v2261_v63 = vadd.f32 %v1096_v61, %v1095_v53  ;;  %v1780_v61 = vld [vmem:[%s2423_s2 + $0xc4] ss:$16 sps:$4 sm:$0xff]   ;;  %v1781_v53 = vld [vmem:[%s2423_s2 + $0xcc] ss:$16 sps:$4 sm:$0xff]  }
 0x565   : > { %1730 = vtanh.f32 %v2261_v63 }
 0x56f   : > { %v1731_v0 = vpop.eup %1730 }
 0x570   : > { %v1101_v34 = vmul.f32 %v1731_v0, %v1099_v56  ;;  %v1783_v56 = vld [vmem:[%s2423_s2 + $0xc8] ss:$16 sps:$4 sm:$0xff]   ;;  %v1784_v0 = vld [vmem:[%s2423_s2 + $0xe4] ss:$16 sps:$4 sm:$0xff]  }
 0x572   : > { %v1102_v60 = vpack.c.bf16 %v1101_v34, %v1101_v34  ;;  %v1785_v34 = vld [vmem:[%s2423_s2 + $0xec] ss:$16 sps:$4 sm:$0xff]  }
 0x574   : > { %1620 = vst [vmem:[%s1834_s20 + $0x4] sm:$0x1] %v1102_v60  ;;  %1146 = vmatmul.mubr.bf16.vlgmr.msra.gmra.mrb[20].mxu0 %v1102_v60  ;;  %1187 = vmatmul.mubr.bf16.vlgmr.msra.gmra.mrb[20].mxu1 %v1102_v60  ;;  %v1786_v60 = vld [vmem:[%s2423_s2 + $0xe0] ss:$16 sps:$4 sm:$0xff]  }
 0x575   : > { %1250 = vmatpush1.bf16.msra.mxu0 %v1857_v4  ;;  %1291 = vmatpush1.bf16.msra.mxu1 %v1862_v5  ;;  %v1756_v4 = vld [vmem:[%s2423_s2 + $0x4] ss:$16 sps:$4 sm:$0xff]   ;;  %v1757_v5 = vld [vmem:[%s2423_s2 + $0xc] ss:$16 sps:$4 sm:$0xff]  }
 0x576   : > { %1251 = vmatprep.subr.bf16.mxu0 %v1868_v6  ;;  %1292 = vmatprep.subr.bf16.mxu1 %v1875_v7  ;;  %v1110_v6 = vstv %s1109_s9 }
 0x577   : > { %1281 = vmatprep.mubr.bf16.mxu0 %v1797_v3  ;;  %1322 = vmatprep.mubr.bf16.mxu1 %v1797_v3  ;;  %vm1111_vm5 = vcmp.eq.s32.totalorder %v1110_v6, 1 }
 0x579   : > { %1252 = vmatpush1.bf16.msra.mxu0 %v1880_v8  ;;  %1293 = vmatpush1.bf16.msra.mxu1 %v1886_v9 }
 0x57a   : > { %1253 = vmatprep.subr.bf16.mxu0 %v1892_v10  ;;  %1294 = vmatprep.subr.bf16.mxu1 %v1897_v11 }
 0x57d   : > { %1254 = vmatpush1.bf16.msra.mxu0 %v1902_v12  ;;  %1295 = vmatpush1.bf16.msra.mxu1 %v1907_v13  ;;  %v1621_v12 = vld [vmem:[%s1839_s24 + $0x28] sm:$0xff] }
 0x57e   : > { %1255 = vmatprep.subr.bf16.mxu0 %v1914_v14  ;;  %1296 = vmatprep.subr.bf16.mxu1 %v1921_v15 }
 0x581   : > { %1256 = vmatpush1.bf16.msra.mxu0 %v1926_v16  ;;  %1297 = vmatpush1.bf16.msra.mxu1 %v1933_v17 }
 0x582   : > { %1257 = vmatprep.subr.bf16.mxu0 %v1938_v18  ;;  %1298 = vmatprep.subr.bf16.mxu1 %v1945_v19 }
 0x585   : > { %1258 = vmatpush1.bf16.msra.mxu0 %v1950_v20  ;;  %1299 = vmatpush1.bf16.msra.mxu1 %v1955_v21  ;;  %v1112_v20 = vsel %vm1111_vm5, %v1621_v12, %v2079_v59 }
 0x586   : > { %1259 = vmatprep.subr.bf16.mxu0 %v1962_v22  ;;  %1300 = vmatprep.subr.bf16.mxu1 %v1969_v23 }
 0x589   : > { %1260 = vmatpush1.bf16.msra.mxu0 %v1976_v24  ;;  %1301 = vmatpush1.bf16.msra.mxu1 %v1981_v25 }
 0x58a   : > { %1261 = vmatprep.subr.bf16.mxu0 %v1988_v26  ;;  %1302 = vmatprep.subr.bf16.mxu1 %v1993_v27 }
 0x58d   : > { %1262 = vmatpush1.bf16.msra.mxu0 %v2000_v28  ;;  %1303 = vmatpush1.bf16.msra.mxu1 %v2005_v29 }
 0x58e   : > { %1263 = vmatprep.subr.bf16.mxu0 %v2012_v30  ;;  %1304 = vmatprep.subr.bf16.mxu1 %v2017_v31 }
 0x591   : > { %1264 = vmatpush1.bf16.msra.mxu0 %v2024_v32  ;;  %1305 = vmatpush1.bf16.msra.mxu1 %v2029_v33 }
 0x592   : > { %1385 = vmatprep.subr.bf16.mxu0 %v1756_v4  ;;  %1426 = vmatprep.subr.bf16.mxu1 %v1757_v5  ;;  %v1787_v4 = vld [vmem:[%s2423_s2 + $0xe8] ss:$16 sps:$4 sm:$0xff]   ;;  %v1246_v5 = vstv %s1245_s29 }
 0x593   : > { %vm1247_vm6 = vcmp.eq.s32.totalorder %v1246_v5, 1 }
 0x647   : > { %v1147_v7 = vpop.f32.mrb[20].mxu0  ;;  %v1188_v8 = vpop.f32.mrb[20].mxu1 }
 0x648   : > { %v1149_v9 = vpop.f32.mrb[21].mxu0  ;;  %v1190_v10 = vpop.f32.mrb[21].mxu1 }
 0x649   : > { %v1199_v11 = vcombine.low %v1147_v7, %v1149_v9  ;;  %v1200_v13 = vcombine.low %v1188_v8, %v1190_v10  ;;  %v1151_v14 = vpop.f32.mrb[22].mxu0  ;;  %v1192_v15 = vpop.f32.mrb[22].mxu1 }
 0x64a   : > { %v1152_v16 = vpop.f32.mrb[23].mxu0  ;;  %v1193_v17 = vpop.f32.mrb[23].mxu1 }
 0x64b   : > { %v1207_v18 = vrot.slane %v1199_v11, %v2075_v50  ;;  %v1214_v19 = vrot.slane %v1200_v13, %v2075_v50  ;;  %v1624_v11 = vld [vmem:[%s1839_s24 + $0x30] sm:$0xff] }
 0x64d   : > { %v1215_v21 = vcombine.low %v1207_v18, %v1214_v19  ;;  %v1248_v19 = vsel %vm1247_vm6, %v1624_v11, %v2079_v59 }
 0x64f   : > { %v1217_v22 = vadd.f32 %v1215_v21, %v1112_v20 }
 0x651   : > { %v1622_v23 = vmul.f32 -1.442695, %v1217_v22  ;;  %v1225_v26 = vrot.slane %v1217_v22, 6 }
 0x653   : > { %1732 = vpow2.f32 %v1622_v23 }
 0x65d   : > { %v1733_v24 = vpop.eup %1732 }
 0x65e   : > { %v1221_v25 = vadd.f32 1.0, %v1733_v24 }
 0x660   : > { %1734 = vrcp.f32 %v1221_v25 }
 0x661   : > { %1736 = vtanh.f32 %v1225_v26 }
 0x66a   : > { %v1735_v27 = vpop.eup %1734 }
 0x66b   : > { %v1229_v28 = vrot.slane %v1735_v27, 2  ;;  %v1737_v29 = vpop.eup %1736  ;;  %v1235_v33 = vrot.slane %v1735_v27, 4 }
 0x66c   : > { %v1232_v30 = vmul.f32 %v1737_v29, %v1735_v27 }
 0x66d   : > { %v1231_v31 = vmul.f32 %v1229_v28, %v2261_v63  ;;  %v1782_v63 = vld [vmem:[%s2423_s2 + $0xc0] ss:$16 sps:$4 sm:$0xff]  }
 0x66f   : > { %v2309_v32 = vadd.f32 %v1232_v30, %v1231_v31 }
 0x671   : > { %1738 = vtanh.f32 %v2309_v32 }
 0x67b   : > { %v1739_v62 = vpop.eup %1738 }
 0x67c   : > { %v1237_v35 = vmul.f32 %v1739_v62, %v1235_v33 }
 0x67e   : > { %v1238_v36 = vpack.c.bf16 %v1237_v35, %v1237_v35 }
 0x680   : > { %1623 = vst [vmem:[%s1834_s20 + $0x5] sm:$0x1] %v1238_v36  ;;  %1282 = vmatmul.mubr.bf16.vlgmr.msra.gmra.mrb[24].mxu0 %v1238_v36  ;;  %1323 = vmatmul.mubr.bf16.vlgmr.msra.gmra.mrb[24].mxu1 %v1238_v36 }
 0x681   : > { %1386 = vmatpush1.bf16.msra.mxu0 %v1758_v37  ;;  %1427 = vmatpush1.bf16.msra.mxu1 %v1759_v38  ;;  %v1382_v37 = vstv %s1381_s4 }
 0x682   : > { %1387 = vmatprep.subr.bf16.mxu0 %v1760_v39  ;;  %1428 = vmatprep.subr.bf16.mxu1 %v1761_v40  ;;  %vm1383_vm7 = vcmp.eq.s32.totalorder %v1382_v37, 1 }
 0x683   : > { %1417 = vmatprep.mubr.bf16.mxu0 %v1797_v3  ;;  %1458 = vmatprep.mubr.bf16.mxu1 %v1797_v3  ;;  %v1766_v3 = vld [vmem:[%s2423_s2 + $0x40] ss:$16 sps:$4 sm:$0xff]  }
 0x685   : > { %1388 = vmatpush1.bf16.msra.mxu0 %v1762_v41  ;;  %1429 = vmatpush1.bf16.msra.mxu1 %v1763_v42 }
 0x686   : > { %1389 = vmatprep.subr.bf16.mxu0 %v1764_v43  ;;  %1430 = vmatprep.subr.bf16.mxu1 %v1765_v44 }
 0x689   : > { %1390 = vmatpush1.bf16.msra.mxu0 %v1766_v3  ;;  %1431 = vmatpush1.bf16.msra.mxu1 %v1767_v45 }
 0x68a   : > { %1391 = vmatprep.subr.bf16.mxu0 %v1768_v1  ;;  %1432 = vmatprep.subr.bf16.mxu1 %v1769_v2 }
 0x68d   : > { %1392 = vmatpush1.bf16.msra.mxu0 %v1770_v46  ;;  %1433 = vmatpush1.bf16.msra.mxu1 %v1771_v47 }
 0x68e   : > { %1393 = vmatprep.subr.bf16.mxu0 %v1772_v48  ;;  %1434 = vmatprep.subr.bf16.mxu1 %v1773_v49 }
 0x691   : > { %1394 = vmatpush1.bf16.msra.mxu0 %v1774_v51  ;;  %1435 = vmatpush1.bf16.msra.mxu1 %v1775_v52 }
 0x692   : > { %1395 = vmatprep.subr.bf16.mxu0 %v1776_v54  ;;  %1436 = vmatprep.subr.bf16.mxu1 %v1777_v55 }
 0x695   : > { %1396 = vmatpush1.bf16.msra.mxu0 %v1778_v57  ;;  %1437 = vmatpush1.bf16.msra.mxu1 %v1779_v58 }
 0x696   : > { %1397 = vmatprep.subr.bf16.mxu0 %v1780_v61  ;;  %1438 = vmatprep.subr.bf16.mxu1 %v1781_v53 }
 0x699   : > { %1398 = vmatpush1.bf16.msra.mxu0 %v1782_v63  ;;  %1439 = vmatpush1.bf16.msra.mxu1 %v1783_v56 }
 0x69a   : > { %1399 = vmatprep.subr.bf16.mxu0 %v1784_v0  ;;  %1440 = vmatprep.subr.bf16.mxu1 %v1785_v34 }
 0x69d   : > { %1400 = vmatpush1.bf16.msra.mxu0 %v1786_v60  ;;  %1441 = vmatpush1.bf16.msra.mxu1 %v1787_v4 }
 0x753   : > { %v1283_v6 = vpop.f32.mrb[24].mxu0  ;;  %v1324_v7 = vpop.f32.mrb[24].mxu1 }
 0x754   : > { %v1285_v8 = vpop.f32.mrb[25].mxu0  ;;  %v1326_v9 = vpop.f32.mrb[25].mxu1 }
 0x755   : > { %v1335_v10 = vcombine.low %v1283_v6, %v1285_v8  ;;  %v1336_v12 = vcombine.low %v1324_v7, %v1326_v9  ;;  %v1287_v13 = vpop.f32.mrb[26].mxu0  ;;  %v1328_v14 = vpop.f32.mrb[26].mxu1 }
 0x756   : > { %v1288_v15 = vpop.f32.mrb[27].mxu0  ;;  %v1329_v16 = vpop.f32.mrb[27].mxu1 }
 0x757   : > { %v1343_v17 = vrot.slane %v1335_v10, %v2075_v50  ;;  %v1350_v18 = vrot.slane %v1336_v12, %v2075_v50 }
 0x759   : > { %v1351_v20 = vcombine.low %v1343_v17, %v1350_v18 }
 0x75b   : > { %v1353_v21 = vadd.f32 %v1351_v20, %v1248_v19 }
 0x75d   : > { %v1625_v22 = vmul.f32 -1.442695, %v1353_v21  ;;  %v1361_v25 = vrot.slane %v1353_v21, 6 }
 0x75f   : > { %1740 = vpow2.f32 %v1625_v22 }
 0x769   : > { %v1741_v23 = vpop.eup %1740 }
 0x76a   : > { %v1357_v24 = vadd.f32 1.0, %v1741_v23 }
 0x76c   : > { %1742 = vrcp.f32 %v1357_v24 }
 0x76d   : > { %1744 = vtanh.f32 %v1361_v25 }
 0x776   : > { %v1743_v26 = vpop.eup %1742 }
 0x777   : > { %v1365_v27 = vrot.slane %v1743_v26, 2  ;;  %v1745_v28 = vpop.eup %1744  ;;  %v1371_v33 = vrot.slane %v1743_v26, 4 }
 0x778   : > { %v1368_v29 = vmul.f32 %v1745_v28, %v1743_v26 }
 0x779   : > { %v1367_v30 = vmul.f32 %v1365_v27, %v2309_v32  ;;  %v1627_v32 = vld [vmem:[%s1839_s24 + $0x38] sm:$0xff] }
 0x77a   : > { %v1384_v47 = vsel %vm1383_vm7, %v1627_v32, %v2079_v59 }
 0x77b   : > { %v1369_v31 = vadd.f32 %v1368_v29, %v1367_v30 }
 0x77d   : > { %1746 = vtanh.f32 %v1369_v31 }
 0x787   : > { %v1747_v62 = vpop.eup %1746 }
 0x788   : > { %v1373_v35 = vmul.f32 %v1747_v62, %v1371_v33 }
 0x78a   : > { %v1374_v36 = vpack.c.bf16 %v1373_v35, %v1373_v35 }
 0x78c   : > { %1626 = vst [vmem:[%s1834_s20 + $0x6] sm:$0x1] %v1374_v36  ;;  %1418 = vmatmul.mubr.bf16.vlgmr.msra.gmra.mrb[28].mxu0 %v1374_v36  ;;  %1459 = vmatmul.mubr.bf16.vlgmr.msra.gmra.mrb[28].mxu1 %v1374_v36 }
 0x85f   : > { %v1419_v38 = vpop.f32.mrb[28].mxu0  ;;  %v1460_v39 = vpop.f32.mrb[28].mxu1 }
 0x860   : > { %v1421_v40 = vpop.f32.mrb[29].mxu0  ;;  %v1462_v41 = vpop.f32.mrb[29].mxu1 }
 0x861   : > { %v1471_v42 = vcombine.low %v1419_v38, %v1421_v40  ;;  %v1472_v43 = vcombine.low %v1460_v39, %v1462_v41  ;;  %v1423_v44 = vpop.f32.mrb[30].mxu0  ;;  %v1464_v3 = vpop.f32.mrb[30].mxu1 }
 0x862   : > { %v1424_v45 = vpop.f32.mrb[31].mxu0  ;;  %v1465_v1 = vpop.f32.mrb[31].mxu1 }
 0x863   : > { %v1479_v2 = vrot.slane %v1471_v42, %v2075_v50  ;;  %v1486_v46 = vrot.slane %v1472_v43, %v2075_v50 }
 0x865   : > { %v1487_v48 = vcombine.low %v1479_v2, %v1486_v46 }
 0x867   : > { %v1489_v49 = vadd.f32 %v1487_v48, %v1384_v47 }
 0x869   : > { %v1628_v51 = vmul.f32 -1.442695, %v1489_v49  ;;  %v1497_v55 = vrot.slane %v1489_v49, 6 }
 0x86b   : > { %1748 = vpow2.f32 %v1628_v51 }
 0x875   : > { %v1749_v52 = vpop.eup %1748 }
 0x876   : > { %v1493_v54 = vadd.f32 1.0, %v1749_v52 }
 0x878   : > { %1750 = vrcp.f32 %v1493_v54 }
 0x879   : > { %1752 = vtanh.f32 %v1497_v55 }
 0x882   : > { %v1751_v57 = vpop.eup %1750 }
 0x883   : > { %v1501_v58 = vrot.slane %v1751_v57, 2  ;;  %v1753_v61 = vpop.eup %1752  ;;  %v1507_v50 = vrot.slane %v1751_v57, 4 }
 0x884   : > { %v1504_v63 = vmul.f32 %v1753_v61, %v1751_v57 }
 0x885   : > { %v1503_v53 = vmul.f32 %v1501_v58, %v1369_v31 }
 0x887   : > { %v1505_v56 = vadd.f32 %v1504_v63, %v1503_v53 }
 0x889   : > { %1754 = vtanh.f32 %v1505_v56  ;;  %1514 = vst [vmem:[#allocation3] sm:$0x3] %v1505_v56 }
 0x893   : > { %v1755_v59 = vpop.eup %1754 }
 0x894   : > { %v1509_v0 = vmul.f32 %v1755_v59, %v1507_v50 }
 0x896   : > { %v1510_v34 = vpack.c.bf16 %v1509_v0, %v1509_v0  ;;  %1513 = vst [vmem:[#allocation2] sm:$0x3] %v1509_v0 }
 0x898   : > { %1629 = vst [vmem:[%s1834_s20 + $0x7] sm:$0x1] %v1510_v34 }
 0x899 PF: > { %s13_s12 = sadd.s32 1, %s1794_s12  }
 0x89a   : > { %p10_p1 = scmp.ge.s32.totalorder %s13_s12, 4  }
 0x89c   :  { %12 = sbr.rel (!%p10_p1) target bundleno = 1 (0x1), region = 80 }

// kernel: s2vt_forward.9
= control target key start
LH: loop header
LB: loop body
LE: loop exit
PB: predicated region body
PF: predicated region fallthrough
CT: control target
= control target key end

     0   :  { %v213_v1 = vmov 0   ;;  %vm88_vm0 = vcmask 261120   ;;  %v28_v12 = vlaneseq  ;;  %s291_s1 = inlined_call_operand.vmem [shape: bf16[32,512], index: 1, kind: input, shape index: {}]   ;;  %s292_s0 = inlined_call_operand.vmem [shape: f32[16,32], index: 0, kind: input, shape index: {}]   ;;  %s293_s2 = inlined_call_operand.vmem [shape: f32[1,512], index: 2, kind: input, shape index: {}]   ;;  %s294_s3 = inlined_call_operand.vmem [shape: f32[16,512], index: 3, kind: output, shape index: {}]  }
   0x1   :  { %v201_v0 = vld [vmem:[%s291_s1 + $0x4] ss:$16 sps:$4 sm:$0xff]   ;;  %124 = vmatprep.mubr.bf16.mxu0 %v213_v1  ;;  %167 = vmatprep.mubr.bf16.mxu1 %v213_v1  ;;  %v203_v2 = vld [vmem:[%s291_s1 + $0xc] ss:$16 sps:$4 sm:$0xff]   ;;  %v205_v3 = vld [vmem:[%s291_s1] ss:$16 sps:$4 sm:$0xff]  }
   0x2   :  { %92 = vmatprep.subr.bf16.mxu0 %v201_v0  ;;  %v206_v4 = vld [vmem:[%s291_s1 + $0x8] ss:$16 sps:$4 sm:$0xff]   ;;  %135 = vmatprep.subr.bf16.mxu1 %v203_v2  ;;  %v207_v5 = vld [vmem:[%s291_s1 + $0x24] ss:$16 sps:$4 sm:$0xff]   ;;  %v209_v6 = vld [vmem:[%s291_s1 + $0x2c] ss:$16 sps:$4 sm:$0xff]  }
   0x3   :  { %93 = vmatpush1.bf16.msra.mxu0 %v205_v3  ;;  %136 = vmatpush1.bf16.msra.mxu1 %v206_v4  ;;  %v211_v7 = vld [vmem:[%s291_s1 + $0x20] ss:$16 sps:$4 sm:$0xff]   ;;  %v212_v8 = vld [vmem:[%s291_s1 + $0x28] ss:$16 sps:$4 sm:$0xff]   ;;  %v29_v13 = vshrl.u32 %v28_v12, 7 }
   0x4   :  { %94 = vmatprep.subr.bf16.mxu0 %v207_v5  ;;  %v15_v9 = vld [vmem:[%s292_s0] sm:$0xff]  ;;  %v16_v10 = vld [vmem:[%s292_s0 + $0x8] sm:$0xff]  ;;  %137 = vmatprep.subr.bf16.mxu1 %v209_v6 }
   0x5   :  { %v17_v11 = vpack.c.bf16 %v16_v10, %v15_v9  ;;  %v30_v14 = vsub.s32 0, %v29_v13  ;;  %v38_v15 = vsub.s32 2, %v29_v13  ;;  %v26_v16 = vld [vmem:[%s293_s2] sm:$0xf]  ;;  %v34_v17 = vsub.s32 1, %v29_v13 }
   0x6   :  { %v42_v18 = vsub.s32 3, %v29_v13 }
   0x7   :  { %95 = vmatpush1.bf16.msra.mxu0 %v211_v7  ;;  %138 = vmatpush1.bf16.msra.mxu1 %v212_v8  ;;  %v31_v19 = vrot.slane %v26_v16, %v30_v14  ;;  %v39_v20 = vrot.slane %v26_v16, %v38_v15  ;;  %v35_v21 = vrot.slane %v26_v16, %v34_v17 }
   0x8   :  { %v43_v22 = vrot.slane %v26_v16, %v42_v18 }
   0xa   :  { %198 = vmatmul.mubr.msk.bf16.vlgmr.msra.gmra.mrb[0].mxu0 %vm88_vm0, %v17_v11  ;;  %199 = vmatmul.mubr.msk.bf16.vlgmr.msra.gmra.mrb[0].mxu1 %vm88_vm0, %v17_v11 }
  0xdd   :  { %v126_v23 = vpop.f32.mrb[0].mxu0  ;;  %v169_v24 = vpop.f32.mrb[0].mxu1 }
  0xde   :  { %v127_v25 = vadd.f32 %v126_v23, %v31_v19  ;;  %v170_v26 = vadd.f32 %v169_v24, %v39_v20  ;;  %v128_v27 = vpop.f32.mrb[1].mxu0  ;;  %v171_v28 = vpop.f32.mrb[1].mxu1 }
  0xdf   :  { %v129_v29 = vadd.f32 %v128_v27, %v35_v21  ;;  %v172_v30 = vadd.f32 %v171_v28, %v43_v22  ;;  %v130_v31 = vpop.f32.mrb[2].mxu0  ;;  %v173_v32 = vpop.f32.mrb[2].mxu1 }
  0xe0   :  { %178 = vst [vmem:[%s294_s3] sm:$0xff] %v127_v25  ;;  %180 = vst [vmem:[%s294_s3 + $0x10] sm:$0xff] %v170_v26  ;;  %v131_v33 = vadd.f32 %v130_v31, %v31_v19  ;;  %v174_v34 = vadd.f32 %v173_v32, %v39_v20  ;;  %v132_v35 = vpop.f32.mrb[3].mxu0  ;;  %v175_v36 = vpop.f32.mrb[3].mxu1 }
  0xe1   :  { %179 = vst [vmem:[%s294_s3 + $0x8] sm:$0xff] %v129_v29  ;;  %181 = vst [vmem:[%s294_s3 + $0x18] sm:$0xff] %v172_v30  ;;  %v133_v37 = vadd.f32 %v132_v35, %v35_v21  ;;  %v176_v38 = vadd.f32 %v175_v36, %v43_v22 }
  0xe2   :  { %182 = vst [vmem:[%s294_s3 + $0x20] sm:$0xff] %v131_v33  ;;  %184 = vst [vmem:[%s294_s3 + $0x30] sm:$0xff] %v174_v34 }
  0xe3   :  { %183 = vst [vmem:[%s294_s3 + $0x28] sm:$0xff] %v133_v37  ;;  %185 = vst [vmem:[%s294_s3 + $0x38] sm:$0xff] %v176_v38 }

// kernel: s2vt_forward.8
= control target key start
LH: loop header
LB: loop body
LE: loop exit
PB: predicated region body
PF: predicated region fallthrough
CT: control target
= control target key end

     0   :  { %v456_v1 = vmov 0   ;;  %v53_v35 = vlaneseq  ;;  %s634_s1 = inlined_call_operand.vmem [shape: bf16[128,512], index: 1, kind: input, shape index: {}]   ;;  %s635_s0 = inlined_call_operand.vmem [shape: bf16[32,128], index: 0, kind: input, shape index: {}]   ;;  %s636_s2 = inlined_call_operand.vmem [shape: f32[1,512], index: 2, kind: input, shape index: {}]   ;;  %s637_s3 = inlined_call_operand.vmem [shape: f32[32,512], index: 3, kind: output, shape index: {}]  }
   0x1   :  { %v406_v0 = vld [vmem:[%s634_s1 + $0x4] ss:$16 sps:$4 sm:$0xff]   ;;  %277 = vmatprep.mubr.bf16.mxu0 %v456_v1  ;;  %330 = vmatprep.mubr.bf16.mxu1 %v456_v1  ;;  %v408_v2 = vld [vmem:[%s634_s1 + $0xc] ss:$16 sps:$4 sm:$0xff]   ;;  %v410_v3 = vld [vmem:[%s634_s1] ss:$16 sps:$4 sm:$0xff]  }
   0x2   :  { %245 = vmatprep.subr.bf16.mxu0 %v406_v0  ;;  %v411_v4 = vld [vmem:[%s634_s1 + $0x8] ss:$16 sps:$4 sm:$0xff]   ;;  %298 = vmatprep.subr.bf16.mxu1 %v408_v2  ;;  %v412_v5 = vld [vmem:[%s634_s1 + $0x24] ss:$16 sps:$4 sm:$0xff]   ;;  %v414_v6 = vld [vmem:[%s634_s1 + $0x2c] ss:$16 sps:$4 sm:$0xff]  }
   0x3   :  { %246 = vmatpush1.bf16.msra.mxu0 %v410_v3  ;;  %299 = vmatpush1.bf16.msra.mxu1 %v411_v4  ;;  %v416_v7 = vld [vmem:[%s634_s1 + $0x20] ss:$16 sps:$4 sm:$0xff]   ;;  %v417_v8 = vld [vmem:[%s634_s1 + $0x28] ss:$16 sps:$4 sm:$0xff]   ;;  %v418_v9 = vld [vmem:[%s634_s1 + $0x44] ss:$16 sps:$4 sm:$0xff]  }
   0x4   :  { %247 = vmatprep.subr.bf16.mxu0 %v412_v5  ;;  %300 = vmatprep.subr.bf16.mxu1 %v414_v6  ;;  %v420_v10 = vld [vmem:[%s634_s1 + $0x4c] ss:$16 sps:$4 sm:$0xff]   ;;  %v422_v11 = vld [vmem:[%s634_s1 + $0x40] ss:$16 sps:$4 sm:$0xff]   ;;  %v423_v12 = vld [vmem:[%s634_s1 + $0x48] ss:$16 sps:$4 sm:$0xff]  }
   0x5   :  { %v424_v13 = vld [vmem:[%s634_s1 + $0x64] ss:$16 sps:$4 sm:$0xff]   ;;  %v426_v14 = vld [vmem:[%s634_s1 + $0x6c] ss:$16 sps:$4 sm:$0xff]   ;;  %v428_v15 = vld [vmem:[%s634_s1 + $0x60] ss:$16 sps:$4 sm:$0xff]  }
   0x6   :  { %v429_v16 = vld [vmem:[%s634_s1 + $0x68] ss:$16 sps:$4 sm:$0xff]   ;;  %v430_v17 = vld [vmem:[%s634_s1 + $0x84] ss:$16 sps:$4 sm:$0xff]   ;;  %v432_v18 = vld [vmem:[%s634_s1 + $0x8c] ss:$16 sps:$4 sm:$0xff]  }
   0x7   :  { %248 = vmatpush1.bf16.msra.mxu0 %v416_v7  ;;  %301 = vmatpush1.bf16.msra.mxu1 %v417_v8  ;;  %v434_v19 = vld [vmem:[%s634_s1 + $0x80] ss:$16 sps:$4 sm:$0xff]   ;;  %v435_v20 = vld [vmem:[%s634_s1 + $0x88] ss:$16 sps:$4 sm:$0xff]   ;;  %v436_v21 = vld [vmem:[%s634_s1 + $0xa4] ss:$16 sps:$4 sm:$0xff]  }
   0x8   :  { %249 = vmatprep.subr.bf16.mxu0 %v418_v9  ;;  %302 = vmatprep.subr.bf16.mxu1 %v420_v10  ;;  %v438_v22 = vld [vmem:[%s634_s1 + $0xac] ss:$16 sps:$4 sm:$0xff]   ;;  %v440_v23 = vld [vmem:[%s634_s1 + $0xa0] ss:$16 sps:$4 sm:$0xff]   ;;  %v441_v24 = vld [vmem:[%s634_s1 + $0xa8] ss:$16 sps:$4 sm:$0xff]  }
   0x9   :  { %v442_v25 = vld [vmem:[%s634_s1 + $0xc4] ss:$16 sps:$4 sm:$0xff]   ;;  %v444_v26 = vld [vmem:[%s634_s1 + $0xcc] ss:$16 sps:$4 sm:$0xff]   ;;  %v446_v27 = vld [vmem:[%s634_s1 + $0xc0] ss:$16 sps:$4 sm:$0xff]  }
   0xa   :  { %v447_v28 = vld [vmem:[%s634_s1 + $0xc8] ss:$16 sps:$4 sm:$0xff]   ;;  %v448_v29 = vld [vmem:[%s634_s1 + $0xe4] ss:$16 sps:$4 sm:$0xff]   ;;  %v450_v30 = vld [vmem:[%s634_s1 + $0xec] ss:$16 sps:$4 sm:$0xff]  }
   0xb   :  { %250 = vmatpush1.bf16.msra.mxu0 %v422_v11  ;;  %303 = vmatpush1.bf16.msra.mxu1 %v423_v12  ;;  %v452_v31 = vld [vmem:[%s634_s1 + $0xe0] ss:$16 sps:$4 sm:$0xff]   ;;  %v453_v32 = vld [vmem:[%s634_s1 + $0xe8] ss:$16 sps:$4 sm:$0xff]   ;;  %v54_v36 = vshrl.u32 %v53_v35, 7 }
   0xc   :  { %251 = vmatprep.subr.bf16.mxu0 %v424_v13  ;;  %304 = vmatprep.subr.bf16.mxu1 %v426_v14  ;;  %v454_v33 = vld [vmem:[%s635_s0] sm:$0xff]   ;;  %v455_v34 = vld [vmem:[%s635_s0 + $0x8] sm:$0xff]  }
   0xd   :  { %v55_v37 = vsub.s32 0, %v54_v36  ;;  %v63_v38 = vsub.s32 2, %v54_v36  ;;  %v51_v39 = vld [vmem:[%s636_s2] sm:$0xf]  ;;  %v59_v40 = vsub.s32 1, %v54_v36  ;;  %v67_v41 = vsub.s32 3, %v54_v36 }
   0xf   :  { %252 = vmatpush1.bf16.msra.mxu0 %v428_v15  ;;  %305 = vmatpush1.bf16.msra.mxu1 %v429_v16  ;;  %v56_v42 = vrot.slane %v51_v39, %v55_v37  ;;  %v64_v43 = vrot.slane %v51_v39, %v63_v38  ;;  %v60_v44 = vrot.slane %v51_v39, %v59_v40 }
  0x10   :  { %253 = vmatprep.subr.bf16.mxu0 %v430_v17  ;;  %306 = vmatprep.subr.bf16.mxu1 %v432_v18  ;;  %v68_v45 = vrot.slane %v51_v39, %v67_v41 }
  0x13   :  { %254 = vmatpush1.bf16.msra.mxu0 %v434_v19  ;;  %307 = vmatpush1.bf16.msra.mxu1 %v435_v20 }
  0x14   :  { %255 = vmatprep.subr.bf16.mxu0 %v436_v21  ;;  %308 = vmatprep.subr.bf16.mxu1 %v438_v22 }
  0x17   :  { %256 = vmatpush1.bf16.msra.mxu0 %v440_v23  ;;  %309 = vmatpush1.bf16.msra.mxu1 %v441_v24 }
  0x18   :  { %257 = vmatprep.subr.bf16.mxu0 %v442_v25  ;;  %310 = vmatprep.subr.bf16.mxu1 %v444_v26 }
  0x1b   :  { %258 = vmatpush1.bf16.msra.mxu0 %v446_v27  ;;  %311 = vmatpush1.bf16.msra.mxu1 %v447_v28 }
  0x1c   :  { %259 = vmatprep.subr.bf16.mxu0 %v448_v29  ;;  %312 = vmatprep.subr.bf16.mxu1 %v450_v30 }
  0x1f   :  { %260 = vmatpush1.bf16.msra.mxu0 %v452_v31  ;;  %313 = vmatpush1.bf16.msra.mxu1 %v453_v32 }
  0x22   :  { %278 = vmatmul.mubr.bf16.vlgmr.msra.gmra.mrb[0].mxu0 %v454_v33  ;;  %331 = vmatmul.mubr.bf16.vlgmr.msra.gmra.mrb[0].mxu1 %v454_v33 }
  0x23   :  { %287 = vmatprep.mubr.bf16.mxu0 %v456_v1  ;;  %340 = vmatprep.mubr.bf16.mxu1 %v456_v1 }
  0x2a   :  { %288 = vmatmul.mubr.bf16.gmra.mrb[4].mxu0 %v455_v34  ;;  %341 = vmatmul.mubr.bf16.gmra.mrb[4].mxu1 %v455_v34 }
  0xf5   :  { %v279_v46 = vpop.f32.mrb[0].mxu0  ;;  %v332_v47 = vpop.f32.mrb[0].mxu1 }
  0xf6   :  { %v280_v48 = vadd.f32 %v279_v46, %v56_v42  ;;  %v333_v49 = vadd.f32 %v332_v47, %v64_v43  ;;  %v281_v50 = vpop.f32.mrb[1].mxu0  ;;  %v334_v51 = vpop.f32.mrb[1].mxu1 }
  0xf7   :  { %v282_v52 = vadd.f32 %v281_v50, %v60_v44  ;;  %v335_v53 = vadd.f32 %v334_v51, %v68_v45  ;;  %v283_v54 = vpop.f32.mrb[2].mxu0  ;;  %v336_v55 = vpop.f32.mrb[2].mxu1 }
  0xf8   :  { %351 = vst [vmem:[%s637_s3] sm:$0xff] %v280_v48  ;;  %353 = vst [vmem:[%s637_s3 + $0x10] sm:$0xff] %v333_v49  ;;  %v284_v56 = vadd.f32 %v283_v54, %v56_v42  ;;  %v337_v57 = vadd.f32 %v336_v55, %v64_v43  ;;  %v285_v58 = vpop.f32.mrb[3].mxu0  ;;  %v338_v59 = vpop.f32.mrb[3].mxu1 }
  0xf9   :  { %352 = vst [vmem:[%s637_s3 + $0x8] sm:$0xff] %v282_v52  ;;  %354 = vst [vmem:[%s637_s3 + $0x18] sm:$0xff] %v335_v53  ;;  %v286_v60 = vadd.f32 %v285_v58, %v60_v44  ;;  %v339_v61 = vadd.f32 %v338_v59, %v68_v45 }
  0xfa   :  { %355 = vst [vmem:[%s637_s3 + $0x20] sm:$0xff] %v284_v56  ;;  %357 = vst [vmem:[%s637_s3 + $0x30] sm:$0xff] %v337_v57 }
  0xfb   :  { %356 = vst [vmem:[%s637_s3 + $0x28] sm:$0xff] %v286_v60  ;;  %358 = vst [vmem:[%s637_s3 + $0x38] sm:$0xff] %v339_v61 }
  0xfd   :  { %v289_v62 = vpop.f32.mrb[4].mxu0  ;;  %v342_v63 = vpop.f32.mrb[4].mxu1 }
  0xfe   :  { %v290_v0 = vadd.f32 %v289_v62, %v56_v42  ;;  %v343_v1 = vadd.f32 %v342_v63, %v64_v43  ;;  %v291_v2 = vpop.f32.mrb[5].mxu0  ;;  %v344_v3 = vpop.f32.mrb[5].mxu1 }
  0xff   :  { %v292_v4 = vadd.f32 %v291_v2, %v60_v44  ;;  %v345_v5 = vadd.f32 %v344_v3, %v68_v45  ;;  %v293_v6 = vpop.f32.mrb[6].mxu0  ;;  %v346_v7 = vpop.f32.mrb[6].mxu1 }
 0x100   :  { %359 = vst [vmem:[%s637_s3 + $0x40] sm:$0xff] %v290_v0  ;;  %361 = vst [vmem:[%s637_s3 + $0x50] sm:$0xff] %v343_v1  ;;  %v294_v8 = vadd.f32 %v293_v6, %v56_v42  ;;  %v347_v9 = vadd.f32 %v346_v7, %v64_v43  ;;  %v295_v10 = vpop.f32.mrb[7].mxu0  ;;  %v348_v11 = vpop.f32.mrb[7].mxu1 }
 0x101   :  { %360 = vst [vmem:[%s637_s3 + $0x48] sm:$0xff] %v292_v4  ;;  %362 = vst [vmem:[%s637_s3 + $0x58] sm:$0xff] %v345_v5  ;;  %v296_v12 = vadd.f32 %v295_v10, %v60_v44  ;;  %v349_v13 = vadd.f32 %v348_v11, %v68_v45 }
 0x102   :  { %363 = vst [vmem:[%s637_s3 + $0x60] sm:$0xff] %v294_v8  ;;  %365 = vst [vmem:[%s637_s3 + $0x70] sm:$0xff] %v347_v9 }
 0x103   :  { %364 = vst [vmem:[%s637_s3 + $0x68] sm:$0xff] %v296_v12  ;;  %366 = vst [vmem:[%s637_s3 + $0x78] sm:$0xff] %v349_v13 }

// kernel: s2vt_forward.11
= control target key start
LH: loop header
LB: loop body
LE: loop exit
PB: predicated region body
PF: predicated region fallthrough
CT: control target
= control target key end

     0   :  { %v191_v0 = vmov 0.0   ;;  %vm192_vm0 = vmmov 0   ;;  %s249_s1 = inlined_call_operand.vmem [shape: bf16[128,128], index: 1, kind: input, shape index: {}]   ;;  %s250_s0 = inlined_call_operand.vmem [shape: bf16[16,128], index: 0, kind: input, shape index: {}]   ;;  %s251_s2 = inlined_call_operand.vmem [shape: f32[1,128], index: 2, kind: input, shape index: {}]   ;;  %s252_s3 = inlined_call_operand.vmem [shape: f32[16,128], index: 3, kind: output, shape index: {}]  }
   0x1   :  { %160 = vmatprep.subr.bf16.mxu0 %v191_v0  ;;  %v182_v1 = vld [vmem:[%s249_s1] sm:$0xff]   ;;  %176 = vmatprep.mubr.msk.bf16.mxu0 %vm192_vm0, %v191_v0  ;;  %v183_v2 = vld [vmem:[%s249_s1 + $0x8] sm:$0xff]   ;;  %v184_v3 = vld [vmem:[%s249_s1 + $0x10] sm:$0xff]  }
   0x2   :  { %161 = vmatpush3.bf16.msra.mxu0 %v182_v1  ;;  %v185_v4 = vld [vmem:[%s249_s1 + $0x18] sm:$0xff]   ;;  %v186_v5 = vld [vmem:[%s249_s1 + $0x20] sm:$0xff]   ;;  %v187_v6 = vld [vmem:[%s249_s1 + $0x28] sm:$0xff]  }
   0x3   :  { %162 = vmatprep.subr.bf16.mxu0 %v191_v0  ;;  %v188_v7 = vld [vmem:[%s249_s1 + $0x30] sm:$0xff]   ;;  %v189_v8 = vld [vmem:[%s249_s1 + $0x38] sm:$0xff]   ;;  %v190_v9 = vld [vmem:[%s250_s0] sm:$0xff]  }
   0x4   :  { %v141_v10 = vld [vmem:[%s251_s2] ss:$0 sm:$0xff] }
   0x6   :  { %163 = vmatpush3.bf16.msra.mxu0 %v183_v2 }
   0x7   :  { %164 = vmatprep.subr.bf16.mxu0 %v191_v0 }
   0xa   :  { %165 = vmatpush3.bf16.msra.mxu0 %v184_v3 }
   0xb   :  { %166 = vmatprep.subr.bf16.mxu0 %v191_v0 }
   0xe   :  { %167 = vmatpush3.bf16.msra.mxu0 %v185_v4 }
   0xf   :  { %168 = vmatprep.subr.bf16.mxu0 %v191_v0 }
  0x12   :  { %169 = vmatpush3.bf16.msra.mxu0 %v186_v5 }
  0x13   :  { %170 = vmatprep.subr.bf16.mxu0 %v191_v0 }
  0x16   :  { %171 = vmatpush3.bf16.msra.mxu0 %v187_v6 }
  0x17   :  { %172 = vmatprep.subr.bf16.mxu0 %v191_v0 }
  0x1a   :  { %173 = vmatpush3.bf16.msra.mxu0 %v188_v7 }
  0x1b   :  { %174 = vmatprep.subr.bf16.mxu0 %v191_v0 }
  0x1e   :  { %175 = vmatpush3.bf16.msra.mxu0 %v189_v8 }
  0x21   :  { %177 = vmatmul.mubr.bf16.vlgmr.msra.gmra.mrb[0].mxu0 %v190_v9 }
  0xf4   :  { %v128_v11 = vpop.f32.mrb[0].mxu0 }
  0xf5   :  { %v129_v12 = vadd.f32 %v141_v10, %v128_v11  ;;  %v178_v13 = vpop.f32.mrb[1].mxu0 }
  0xf6   :  { %v131_v14 = vpop.f32.mrb[2].mxu0 }
  0xf7   :  { %135 = vst [vmem:[%s252_s3] sm:$0xff] %v129_v12  ;;  %v132_v15 = vadd.f32 %v141_v10, %v131_v14  ;;  %v179_v16 = vpop.f32.mrb[3].mxu0 }
  0xf9   :  { %136 = vst [vmem:[%s252_s3 + $0x8] sm:$0xff] %v132_v15 }

// kernel: s2vt_forward.10
= control target key start
LH: loop header
LB: loop body
LE: loop exit
PB: predicated region body
PF: predicated region fallthrough
CT: control target
= control target key end

     0   :  { %s1888_s12 = smov 0   ;;  %s2488_s0 = inlined_call_operand.vmem [shape: f32[16,2,512], index: 0, kind: input, shape index: {}]   ;;  %s2489_s1 = inlined_call_operand.vmem [shape: f32[8,2,512], index: 1, kind: input, shape index: {}]   ;;  %s2490_s2 = inlined_call_operand.vmem [shape: bf16[128,512], index: 2, kind: input, shape index: {}]   ;;  %s2491_s3 = inlined_call_operand.vmem [shape: bf16[16,2,128], index: 3, kind: output, shape index: {}]  }
   0x1 LB: > { %s1596_s13 = sadd.s32 4294967295, %s1863_s12   ;;  %p1602_p0 = scmp.ge.s32.totalorder %s1863_s12, 1  ;;  %s1863_s12 = sphi %s1888_s12, %s13_s12  }
   0x2   : > { %p163_p1 = scmp.lt.s32.totalorder %s1863_s12, 3 }
   0x4   : > { %p164_p2 = pnand %p1602_p0, %p163_p1 }
   0x5   : > { %s1896_s14 = sshll.u32 (!%p164_p2), %s1596_s13, 3  ;;  %s1606_s15 = sadd.s32 (!%p164_p2), 4294967295, %s1596_s13 }
   0x6   : > { %167 = sbr.rel (%p164_p2) target bundleno = 2203 (0x89b), region = 32  ;;  %p197_p3 = scmp.lt.s32.totalorder (!%p164_p2), %s1896_s14, 15 }
   0x7   : > { %p204_p4 = scmp.gt.s32.totalorder (!%p164_p2), %s1606_s15, 0  ;;  %p1611_p6 = scmp.ne.s32.totalorder (!%p164_p2), %s1596_s13, 0 }
   0xd   : > { %s198_s16 = scalar_select %p197_p3, %s1896_s14, 15 }
   0xe   : > { %s2493_s15 = smov (!%p204_p4, %s1606_s15), 0  ;;  %v1865_v0 = vmov (!%p1611_p6), 0.0  }
   0xf   : > { %s1676_s17 = sshll.u32 %s198_s16, 3  ;;  %s1903_s20 = scalar_lea.vmem %s2491_s3, %s198_s16  ;;  %226 = vst [vmem:[#allocation2] sm:$0x3] (!%p1611_p6), %v1865_v0  ;;  %227 = vst [vmem:[#allocation3] sm:$0x3] (!%p1611_p6), %v1865_v0 }
  0x10   : > { %s1908_s23 = scalar_lea.vmem %s2488_s0, %s1676_s17  ;;  %s1607_s24 = sshll.u32 %s2493_s15, 3 }
  0x11   : > { %p207_p5 = scmp.lt.s32.totalorder %s1607_s24, 7  ;;  %225 = sbr.rel (%p1611_p6) target bundleno = 24 (0x18), region = 36 }
  0x13   : > { %s2495_s24 = smov (!%p207_p5, %s1607_s24), 7 }
  0x14   : > { %s1677_s25 = sshll.u32 %s2495_s24, 3 }
  0x15   : > { %s1913_s28 = scalar_lea.vmem %s2489_s1, %s1677_s25 }
  0x18 PF: > { %v1918_v1 = vld [vmem:[%s2490_s2 + $0x4] ss:$16 sps:$4 sm:$0xff]   ;;  %v1923_v2 = vld [vmem:[%s2490_s2 + $0xc] ss:$16 sps:$4 sm:$0xff]   ;;  %v1866_v3 = vmov 0   ;;  %p264_p7 = scmp.ge.s32.totalorder %s1896_s14, 8  ;;  %v523_v38 = vlaneseq }
  0x19   : > { %464 = vmatprep.mubr.bf16.mxu0 %v1866_v3  ;;  %505 = vmatprep.mubr.bf16.mxu1 %v1866_v3  ;;  %v1931_v4 = vld [vmem:[%s2490_s2] ss:$16 sps:$4 sm:$0xff]   ;;  %v1936_v5 = vld [vmem:[%s2490_s2 + $0x8] ss:$16 sps:$4 sm:$0xff]   ;;  %v1942_v6 = vld [vmem:[%s2490_s2 + $0x24] ss:$16 sps:$4 sm:$0xff]  }
  0x1a   : > { %432 = vmatprep.subr.bf16.mxu0 %v1918_v1  ;;  %473 = vmatprep.subr.bf16.mxu1 %v1923_v2  ;;  %v1949_v7 = vld [vmem:[%s2490_s2 + $0x2c] ss:$16 sps:$4 sm:$0xff]   ;;  %v1954_v8 = vld [vmem:[%s2490_s2 + $0x20] ss:$16 sps:$4 sm:$0xff]   ;;  %v1960_v9 = vld [vmem:[%s2490_s2 + $0x28] ss:$16 sps:$4 sm:$0xff]  }
  0x1b   : > { %433 = vmatpush1.bf16.msra.mxu0 %v1931_v4  ;;  %474 = vmatpush1.bf16.msra.mxu1 %v1936_v5  ;;  %v1966_v10 = vld [vmem:[%s2490_s2 + $0x44] ss:$16 sps:$4 sm:$0xff]   ;;  %v1971_v11 = vld [vmem:[%s2490_s2 + $0x4c] ss:$16 sps:$4 sm:$0xff]   ;;  %v1976_v12 = vld [vmem:[%s2490_s2 + $0x40] ss:$16 sps:$4 sm:$0xff]  }
  0x1c   : > { %434 = vmatprep.subr.bf16.mxu0 %v1942_v6  ;;  %475 = vmatprep.subr.bf16.mxu1 %v1949_v7  ;;  %v1981_v13 = vld [vmem:[%s2490_s2 + $0x48] ss:$16 sps:$4 sm:$0xff]   ;;  %v1988_v14 = vld [vmem:[%s2490_s2 + $0x64] ss:$16 sps:$4 sm:$0xff]   ;;  %v1995_v15 = vld [vmem:[%s2490_s2 + $0x6c] ss:$16 sps:$4 sm:$0xff]  }
  0x1d   : > { %v2000_v16 = vld [vmem:[%s2490_s2 + $0x60] ss:$16 sps:$4 sm:$0xff]   ;;  %v2007_v17 = vld [vmem:[%s2490_s2 + $0x68] ss:$16 sps:$4 sm:$0xff]   ;;  %v2012_v18 = vld [vmem:[%s2490_s2 + $0x84] ss:$16 sps:$4 sm:$0xff]  }
  0x1e   : > { %v2019_v19 = vld [vmem:[%s2490_s2 + $0x8c] ss:$16 sps:$4 sm:$0xff]   ;;  %v2024_v20 = vld [vmem:[%s2490_s2 + $0x80] ss:$16 sps:$4 sm:$0xff]   ;;  %v2029_v21 = vld [vmem:[%s2490_s2 + $0x88] ss:$16 sps:$4 sm:$0xff]  }
  0x1f   : > { %435 = vmatpush1.bf16.msra.mxu0 %v1954_v8  ;;  %476 = vmatpush1.bf16.msra.mxu1 %v1960_v9  ;;  %v2036_v22 = vld [vmem:[%s2490_s2 + $0xa4] ss:$16 sps:$4 sm:$0xff]   ;;  %v2043_v23 = vld [vmem:[%s2490_s2 + $0xac] ss:$16 sps:$4 sm:$0xff]   ;;  %v2050_v24 = vld [vmem:[%s2490_s2 + $0xa0] ss:$16 sps:$4 sm:$0xff]  }
  0x20   : > { %436 = vmatprep.subr.bf16.mxu0 %v1966_v10  ;;  %477 = vmatprep.subr.bf16.mxu1 %v1971_v11  ;;  %v2055_v25 = vld [vmem:[%s2490_s2 + $0xa8] ss:$16 sps:$4 sm:$0xff]   ;;  %v2062_v26 = vld [vmem:[%s2490_s2 + $0xc4] ss:$16 sps:$4 sm:$0xff]   ;;  %v2067_v27 = vld [vmem:[%s2490_s2 + $0xcc] ss:$16 sps:$4 sm:$0xff]  }
  0x21   : > { %v2074_v28 = vld [vmem:[%s2490_s2 + $0xc0] ss:$16 sps:$4 sm:$0xff]   ;;  %v2079_v29 = vld [vmem:[%s2490_s2 + $0xc8] ss:$16 sps:$4 sm:$0xff]   ;;  %v2086_v30 = vld [vmem:[%s2490_s2 + $0xe4] ss:$16 sps:$4 sm:$0xff]  }
  0x22   : > { %v2091_v31 = vld [vmem:[%s2490_s2 + $0xec] ss:$16 sps:$4 sm:$0xff]   ;;  %v2098_v32 = vld [vmem:[%s2490_s2 + $0xe0] ss:$16 sps:$4 sm:$0xff]   ;;  %v2103_v33 = vld [vmem:[%s2490_s2 + $0xe8] ss:$16 sps:$4 sm:$0xff]  }
  0x23   : > { %437 = vmatpush1.bf16.msra.mxu0 %v1976_v12  ;;  %478 = vmatpush1.bf16.msra.mxu1 %v1981_v13  ;;  %v261_v34 = vld [vmem:[#allocation2] sm:$0x3]  ;;  %v1867_v36 = vmov 1983009808   ;;  %v524_v40 = vshrl.u32 %v523_v38, 7  ;;  %s559_s27 = sadd.s32 1, %s1896_s14 }
  0x24   : > { %438 = vmatprep.subr.bf16.mxu0 %v1988_v14  ;;  %479 = vmatprep.subr.bf16.mxu1 %v1995_v15  ;;  %v271_v35 = vpack.c.bf16 %v261_v34, %v261_v34  ;;  %v521_v37 = vunpack.c.l.s4 %v1867_v36  ;;  %s1738_s26 = scalar_select %p264_p7, 255, 0  ;;  %v263_v45 = vld [vmem:[%s1908_s23] sm:$0xff] }
  0x25   : > { %v262_v0 = vld [vmem:[#allocation3] sm:$0x3]  ;;  %p562_p8 = scmp.ge.s32.totalorder %s559_s27, 8  ;;  %s698_s30 = sadd.s32 2, %s1896_s14 }
  0x26   : > { %v522_v39 = vunpack.c.0.s8 %v521_v37  ;;  %v1739_v46 = vld [vmem:[%s1913_s28] sm:%s1738_s26]  ;;  %p701_p9 = scmp.ge.s32.totalorder %s698_s30, 8  ;;  %s837_s5 = sadd.s32 3, %s1896_s14 }
  0x27   : > { %439 = vmatpush1.bf16.msra.mxu0 %v2000_v16  ;;  %480 = vmatpush1.bf16.msra.mxu1 %v2007_v17  ;;  %v270_v55 = vadd.f32 %v1739_v46, %v263_v45  ;;  %s1741_s29 = scalar_select %p562_p8, 255, 0 }
  0x28   : > { %440 = vmatprep.subr.bf16.mxu0 %v2012_v18  ;;  %481 = vmatprep.subr.bf16.mxu1 %v2019_v19  ;;  %v2146_v43 = vsub.s32 %v522_v39, %v524_v40  ;;  %s1744_s4 = scalar_select %p701_p9, 255, 0 }
  0x29   : > { %p840_p10 = scmp.ge.s32.totalorder %s837_s5, 8  ;;  %s976_s7 = sadd.s32 4, %s1896_s14 }
  0x2a   : > { %p979_p11 = scmp.ge.s32.totalorder %s976_s7, 8  ;;  %s1115_s15 = sadd.s32 5, %s1896_s14 }
  0x2b   : > { %441 = vmatpush1.bf16.msra.mxu0 %v2024_v20  ;;  %482 = vmatpush1.bf16.msra.mxu1 %v2029_v21  ;;  %s1747_s6 = scalar_select %p840_p10, 255, 0 }
  0x2c   : > { %442 = vmatprep.subr.bf16.mxu0 %v2036_v22  ;;  %483 = vmatprep.subr.bf16.mxu1 %v2043_v23  ;;  %s1750_s8 = scalar_select %p979_p11, 255, 0 }
  0x2d   : > { %p1118_p12 = scmp.ge.s32.totalorder %s1115_s15, 8  ;;  %s1254_s9 = sadd.s32 6, %s1896_s14 }
  0x2e   : > { %p1257_p13 = scmp.ge.s32.totalorder %s1254_s9, 8  ;;  %s1393_s11 = sadd.s32 7, %s1896_s14 }
  0x2f   : > { %443 = vmatpush1.bf16.msra.mxu0 %v2050_v24  ;;  %484 = vmatpush1.bf16.msra.mxu1 %v2055_v25  ;;  %s1753_s16 = scalar_select %p1118_p12, 255, 0 }
  0x30   : > { %444 = vmatprep.subr.bf16.mxu0 %v2062_v26  ;;  %485 = vmatprep.subr.bf16.mxu1 %v2067_v27  ;;  %s1756_s10 = scalar_select %p1257_p13, 255, 0 }
  0x31   : > { %p1396_p0 = scmp.ge.s32.totalorder %s1393_s11, 8 }
  0x33   : > { %445 = vmatpush1.bf16.msra.mxu0 %v2074_v28  ;;  %486 = vmatpush1.bf16.msra.mxu1 %v2079_v29  ;;  %s1759_s13 = scalar_select %p1396_p0, 255, 0 }
  0x34   : > { %446 = vmatprep.subr.bf16.mxu0 %v2086_v30  ;;  %487 = vmatprep.subr.bf16.mxu1 %v2091_v31 }
  0x37   : > { %447 = vmatpush1.bf16.msra.mxu0 %v2098_v32  ;;  %488 = vmatpush1.bf16.msra.mxu1 %v2103_v33 }
  0x38   : > { %570 = vmatprep.subr.bf16.mxu0 %v1918_v1  ;;  %611 = vmatprep.subr.bf16.mxu1 %v1923_v2 }
  0x3a   : > { %465 = vmatmul.mubr.bf16.vlgmr.msra.gmra.mrb[0].mxu0 %v271_v35  ;;  %506 = vmatmul.mubr.bf16.vlgmr.msra.gmra.mrb[0].mxu1 %v271_v35 }
  0x3b   : > { %571 = vmatpush1.bf16.msra.mxu0 %v1931_v4  ;;  %612 = vmatpush1.bf16.msra.mxu1 %v1936_v5 }
  0x3c   : > { %572 = vmatprep.subr.bf16.mxu0 %v1942_v6  ;;  %613 = vmatprep.subr.bf16.mxu1 %v1949_v7 }
  0x3d   : > { %602 = vmatprep.mubr.bf16.mxu0 %v1866_v3  ;;  %643 = vmatprep.mubr.bf16.mxu1 %v1866_v3 }
  0x3f   : > { %573 = vmatpush1.bf16.msra.mxu0 %v1954_v8  ;;  %614 = vmatpush1.bf16.msra.mxu1 %v1960_v9 }
  0x40   : > { %574 = vmatprep.subr.bf16.mxu0 %v1966_v10  ;;  %615 = vmatprep.subr.bf16.mxu1 %v1971_v11 }
  0x43   : > { %575 = vmatpush1.bf16.msra.mxu0 %v1976_v12  ;;  %616 = vmatpush1.bf16.msra.mxu1 %v1981_v13 }
  0x44   : > { %576 = vmatprep.subr.bf16.mxu0 %v1988_v14  ;;  %617 = vmatprep.subr.bf16.mxu1 %v1995_v15 }
  0x47   : > { %577 = vmatpush1.bf16.msra.mxu0 %v2000_v16  ;;  %618 = vmatpush1.bf16.msra.mxu1 %v2007_v17 }
  0x48   : > { %578 = vmatprep.subr.bf16.mxu0 %v2012_v18  ;;  %619 = vmatprep.subr.bf16.mxu1 %v2019_v19 }
  0x4b   : > { %579 = vmatpush1.bf16.msra.mxu0 %v2024_v20  ;;  %620 = vmatpush1.bf16.msra.mxu1 %v2029_v21 }
  0x4c   : > { %580 = vmatprep.subr.bf16.mxu0 %v2036_v22  ;;  %621 = vmatprep.subr.bf16.mxu1 %v2043_v23 }
  0x4f   : > { %581 = vmatpush1.bf16.msra.mxu0 %v2050_v24  ;;  %622 = vmatpush1.bf16.msra.mxu1 %v2055_v25 }
  0x50   : > { %582 = vmatprep.subr.bf16.mxu0 %v2062_v26  ;;  %623 = vmatprep.subr.bf16.mxu1 %v2067_v27 }
  0x53   : > { %583 = vmatpush1.bf16.msra.mxu0 %v2074_v28  ;;  %624 = vmatpush1.bf16.msra.mxu1 %v2079_v29 }
  0x54   : > { %584 = vmatprep.subr.bf16.mxu0 %v2086_v30  ;;  %625 = vmatprep.subr.bf16.mxu1 %v2091_v31 }
  0x57   : > { %585 = vmatpush1.bf16.msra.mxu0 %v2098_v32  ;;  %626 = vmatpush1.bf16.msra.mxu1 %v2103_v33 }
  0x58   : > { %709 = vmatprep.subr.bf16.mxu0 %v1918_v1  ;;  %750 = vmatprep.subr.bf16.mxu1 %v1923_v2 }
 0x10d   : > { %v466_v41 = vpop.f32.mrb[0].mxu0  ;;  %v507_v42 = vpop.f32.mrb[0].mxu1 }
 0x10e   : > { %v468_v44 = vpop.f32.mrb[1].mxu0  ;;  %v509_v47 = vpop.f32.mrb[1].mxu1 }
 0x10f   : > { %v518_v48 = vcombine.low %v466_v41, %v468_v44  ;;  %v519_v49 = vcombine.low %v507_v42, %v509_v47  ;;  %v470_v50 = vpop.f32.mrb[2].mxu0  ;;  %v511_v51 = vpop.f32.mrb[2].mxu1  ;;  %v1646_v47 = vld [vmem:[%s1908_s23 + $0x8] sm:$0xff] }
 0x110   : > { %v471_v52 = vpop.f32.mrb[3].mxu0  ;;  %v512_v53 = vpop.f32.mrb[3].mxu1 }
 0x111   : > { %v526_v54 = vrot.slane %v518_v48, %v2146_v43  ;;  %v533_v56 = vrot.slane %v519_v49, %v2146_v43  ;;  %v1742_v48 = vld [vmem:[%s1913_s28 + $0x8] sm:%s1741_s29] }
 0x113   : > { %v534_v57 = vcombine.low %v526_v54, %v533_v56 }
 0x115   : > { %v536_v58 = vadd.f32 %v534_v57, %v270_v55  ;;  %v569_v57 = vadd.f32 %v1742_v48, %v1646_v47  ;;  %v1650_v48 = vld [vmem:[%s1908_s23 + $0x10] sm:$0xff] }
 0x117   : > { %v1645_v59 = vmul.f32 -1.442695, %v536_v58  ;;  %v544_v62 = vrot.slane %v536_v58, 6 }
 0x119   : > { %1761 = vpow2.f32 %v1645_v59 }
 0x123   : > { %v1762_v60 = vpop.eup %1761 }
 0x124   : > { %v540_v61 = vadd.f32 1.0, %v1762_v60 }
 0x126   : > { %1763 = vrcp.f32 %v540_v61 }
 0x127   : > { %1765 = vtanh.f32 %v544_v62 }
 0x130   : > { %v1764_v63 = vpop.eup %1763 }
 0x131   : > { %v548_v34 = vrot.slane %v1764_v63, 2  ;;  %v1766_v35 = vpop.eup %1765  ;;  %v554_v39 = vrot.slane %v1764_v63, 4 }
 0x132   : > { %v551_v36 = vmul.f32 %v1766_v35, %v1764_v63 }
 0x133   : > { %v550_v37 = vmul.f32 %v548_v34, %v262_v0 }
 0x135   : > { %v2152_v38 = vadd.f32 %v551_v36, %v550_v37 }
 0x137   : > { %1767 = vtanh.f32 %v2152_v38 }
 0x141   : > { %v1768_v40 = vpop.eup %1767 }
 0x142   : > { %v556_v41 = vmul.f32 %v1768_v40, %v554_v39 }
 0x144   : > { %v557_v42 = vpack.c.bf16 %v556_v41, %v556_v41 }
 0x146   : > { %558 = vst [vmem:[%s1903_s20] sm:$0x1] %v557_v42  ;;  %603 = vmatmul.mubr.bf16.vlgmr.msra.gmra.mrb[4].mxu0 %v557_v42  ;;  %644 = vmatmul.mubr.bf16.vlgmr.msra.gmra.mrb[4].mxu1 %v557_v42 }
 0x147   : > { %710 = vmatpush1.bf16.msra.mxu0 %v1931_v4  ;;  %751 = vmatpush1.bf16.msra.mxu1 %v1936_v5 }
 0x148   : > { %711 = vmatprep.subr.bf16.mxu0 %v1942_v6  ;;  %752 = vmatprep.subr.bf16.mxu1 %v1949_v7 }
 0x149   : > { %741 = vmatprep.mubr.bf16.mxu0 %v1866_v3  ;;  %782 = vmatprep.mubr.bf16.mxu1 %v1866_v3 }
 0x14b   : > { %712 = vmatpush1.bf16.msra.mxu0 %v1954_v8  ;;  %753 = vmatpush1.bf16.msra.mxu1 %v1960_v9 }
 0x14c   : > { %713 = vmatprep.subr.bf16.mxu0 %v1966_v10  ;;  %754 = vmatprep.subr.bf16.mxu1 %v1971_v11 }
 0x14f   : > { %714 = vmatpush1.bf16.msra.mxu0 %v1976_v12  ;;  %755 = vmatpush1.bf16.msra.mxu1 %v1981_v13 }
 0x150   : > { %715 = vmatprep.subr.bf16.mxu0 %v1988_v14  ;;  %756 = vmatprep.subr.bf16.mxu1 %v1995_v15 }
 0x153   : > { %716 = vmatpush1.bf16.msra.mxu0 %v2000_v16  ;;  %757 = vmatpush1.bf16.msra.mxu1 %v2007_v17 }
 0x154   : > { %717 = vmatprep.subr.bf16.mxu0 %v2012_v18  ;;  %758 = vmatprep.subr.bf16.mxu1 %v2019_v19 }
 0x157   : > { %718 = vmatpush1.bf16.msra.mxu0 %v2024_v20  ;;  %759 = vmatpush1.bf16.msra.mxu1 %v2029_v21 }
 0x158   : > { %719 = vmatprep.subr.bf16.mxu0 %v2036_v22  ;;  %760 = vmatprep.subr.bf16.mxu1 %v2043_v23 }
 0x15b   : > { %720 = vmatpush1.bf16.msra.mxu0 %v2050_v24  ;;  %761 = vmatpush1.bf16.msra.mxu1 %v2055_v25 }
 0x15c   : > { %721 = vmatprep.subr.bf16.mxu0 %v2062_v26  ;;  %762 = vmatprep.subr.bf16.mxu1 %v2067_v27 }
 0x15f   : > { %722 = vmatpush1.bf16.msra.mxu0 %v2074_v28  ;;  %763 = vmatpush1.bf16.msra.mxu1 %v2079_v29 }
 0x160   : > { %723 = vmatprep.subr.bf16.mxu0 %v2086_v30  ;;  %764 = vmatprep.subr.bf16.mxu1 %v2091_v31 }
 0x163   : > { %724 = vmatpush1.bf16.msra.mxu0 %v2098_v32  ;;  %765 = vmatpush1.bf16.msra.mxu1 %v2103_v33 }
 0x164   : > { %848 = vmatprep.subr.bf16.mxu0 %v1918_v1  ;;  %889 = vmatprep.subr.bf16.mxu1 %v1923_v2 }
 0x219   : > { %v604_v44 = vpop.f32.mrb[4].mxu0  ;;  %v645_v45 = vpop.f32.mrb[4].mxu1 }
 0x21a   : > { %v606_v46 = vpop.f32.mrb[5].mxu0  ;;  %v647_v49 = vpop.f32.mrb[5].mxu1 }
 0x21b   : > { %v656_v50 = vcombine.low %v604_v44, %v606_v46  ;;  %v657_v51 = vcombine.low %v645_v45, %v647_v49  ;;  %v608_v52 = vpop.f32.mrb[6].mxu0  ;;  %v649_v53 = vpop.f32.mrb[6].mxu1  ;;  %v1745_v49 = vld [vmem:[%s1913_s28 + $0x10] sm:%s1744_s4] }
 0x21c   : > { %v609_v54 = vpop.f32.mrb[7].mxu0  ;;  %v650_v55 = vpop.f32.mrb[7].mxu1 }
 0x21d   : > { %v664_v56 = vrot.slane %v656_v50, %v2146_v43  ;;  %v671_v58 = vrot.slane %v657_v51, %v2146_v43 }
 0x21f   : > { %v672_v59 = vcombine.low %v664_v56, %v671_v58  ;;  %v708_v58 = vadd.f32 %v1745_v49, %v1650_v48  ;;  %v1654_v49 = vld [vmem:[%s1908_s23 + $0x18] sm:$0xff] }
 0x221   : > { %v674_v60 = vadd.f32 %v672_v59, %v569_v57 }
 0x223   : > { %v1648_v61 = vmul.f32 -1.442695, %v674_v60  ;;  %v682_v0 = vrot.slane %v674_v60, 6 }
 0x225   : > { %1769 = vpow2.f32 %v1648_v61 }
 0x22f   : > { %v1770_v62 = vpop.eup %1769 }
 0x230   : > { %v678_v63 = vadd.f32 1.0, %v1770_v62 }
 0x232   : > { %1771 = vrcp.f32 %v678_v63 }
 0x233   : > { %1773 = vtanh.f32 %v682_v0 }
 0x23c   : > { %v1772_v34 = vpop.eup %1771 }
 0x23d   : > { %v686_v35 = vrot.slane %v1772_v34, 2  ;;  %v1774_v36 = vpop.eup %1773  ;;  %v692_v41 = vrot.slane %v1772_v34, 4 }
 0x23e   : > { %v689_v37 = vmul.f32 %v1774_v36, %v1772_v34 }
 0x23f   : > { %v688_v39 = vmul.f32 %v686_v35, %v2152_v38 }
 0x241   : > { %v2196_v40 = vadd.f32 %v689_v37, %v688_v39 }
 0x243   : > { %1775 = vtanh.f32 %v2196_v40 }
 0x24d   : > { %v1776_v42 = vpop.eup %1775 }
 0x24e   : > { %v694_v44 = vmul.f32 %v1776_v42, %v692_v41 }
 0x250   : > { %v695_v45 = vpack.c.bf16 %v694_v44, %v694_v44 }
 0x252   : > { %1649 = vst [vmem:[%s1903_s20 + $0x1] sm:$0x1] %v695_v45  ;;  %742 = vmatmul.mubr.bf16.vlgmr.msra.gmra.mrb[8].mxu0 %v695_v45  ;;  %783 = vmatmul.mubr.bf16.vlgmr.msra.gmra.mrb[8].mxu1 %v695_v45 }
 0x253   : > { %849 = vmatpush1.bf16.msra.mxu0 %v1931_v4  ;;  %890 = vmatpush1.bf16.msra.mxu1 %v1936_v5 }
 0x254   : > { %850 = vmatprep.subr.bf16.mxu0 %v1942_v6  ;;  %891 = vmatprep.subr.bf16.mxu1 %v1949_v7 }
 0x255   : > { %880 = vmatprep.mubr.bf16.mxu0 %v1866_v3  ;;  %921 = vmatprep.mubr.bf16.mxu1 %v1866_v3 }
 0x257   : > { %851 = vmatpush1.bf16.msra.mxu0 %v1954_v8  ;;  %892 = vmatpush1.bf16.msra.mxu1 %v1960_v9 }
 0x258   : > { %852 = vmatprep.subr.bf16.mxu0 %v1966_v10  ;;  %893 = vmatprep.subr.bf16.mxu1 %v1971_v11 }
 0x25b   : > { %853 = vmatpush1.bf16.msra.mxu0 %v1976_v12  ;;  %894 = vmatpush1.bf16.msra.mxu1 %v1981_v13 }
 0x25c   : > { %854 = vmatprep.subr.bf16.mxu0 %v1988_v14  ;;  %895 = vmatprep.subr.bf16.mxu1 %v1995_v15 }
 0x25f   : > { %855 = vmatpush1.bf16.msra.mxu0 %v2000_v16  ;;  %896 = vmatpush1.bf16.msra.mxu1 %v2007_v17 }
 0x260   : > { %856 = vmatprep.subr.bf16.mxu0 %v2012_v18  ;;  %897 = vmatprep.subr.bf16.mxu1 %v2019_v19 }
 0x263   : > { %857 = vmatpush1.bf16.msra.mxu0 %v2024_v20  ;;  %898 = vmatpush1.bf16.msra.mxu1 %v2029_v21 }
 0x264   : > { %858 = vmatprep.subr.bf16.mxu0 %v2036_v22  ;;  %899 = vmatprep.subr.bf16.mxu1 %v2043_v23 }
 0x267   : > { %859 = vmatpush1.bf16.msra.mxu0 %v2050_v24  ;;  %900 = vmatpush1.bf16.msra.mxu1 %v2055_v25 }
 0x268   : > { %860 = vmatprep.subr.bf16.mxu0 %v2062_v26  ;;  %901 = vmatprep.subr.bf16.mxu1 %v2067_v27 }
 0x26b   : > { %861 = vmatpush1.bf16.msra.mxu0 %v2074_v28  ;;  %902 = vmatpush1.bf16.msra.mxu1 %v2079_v29 }
 0x26c   : > { %862 = vmatprep.subr.bf16.mxu0 %v2086_v30  ;;  %903 = vmatprep.subr.bf16.mxu1 %v2091_v31 }
 0x26f   : > { %863 = vmatpush1.bf16.msra.mxu0 %v2098_v32  ;;  %904 = vmatpush1.bf16.msra.mxu1 %v2103_v33 }
 0x270   : > { %987 = vmatprep.subr.bf16.mxu0 %v1918_v1  ;;  %1028 = vmatprep.subr.bf16.mxu1 %v1923_v2 }
 0x325   : > { %v743_v38 = vpop.f32.mrb[8].mxu0  ;;  %v784_v46 = vpop.f32.mrb[8].mxu1 }
 0x326   : > { %v745_v47 = vpop.f32.mrb[9].mxu0  ;;  %v786_v50 = vpop.f32.mrb[9].mxu1 }
 0x327   : > { %v795_v51 = vcombine.low %v743_v38, %v745_v47  ;;  %v796_v52 = vcombine.low %v784_v46, %v786_v50  ;;  %v747_v53 = vpop.f32.mrb[10].mxu0  ;;  %v788_v54 = vpop.f32.mrb[10].mxu1  ;;  %v1748_v50 = vld [vmem:[%s1913_s28 + $0x18] sm:%s1747_s6] }
 0x328   : > { %v748_v55 = vpop.f32.mrb[11].mxu0  ;;  %v789_v56 = vpop.f32.mrb[11].mxu1 }
 0x329   : > { %v803_v57 = vrot.slane %v795_v51, %v2146_v43  ;;  %v810_v59 = vrot.slane %v796_v52, %v2146_v43 }
 0x32b   : > { %v811_v60 = vcombine.low %v803_v57, %v810_v59  ;;  %v847_v59 = vadd.f32 %v1748_v50, %v1654_v49  ;;  %v1658_v50 = vld [vmem:[%s1908_s23 + $0x20] sm:$0xff] }
 0x32d   : > { %v813_v61 = vadd.f32 %v811_v60, %v708_v58 }
 0x32f   : > { %v1652_v62 = vmul.f32 -1.442695, %v813_v61  ;;  %v821_v34 = vrot.slane %v813_v61, 6 }
 0x331   : > { %1777 = vpow2.f32 %v1652_v62 }
 0x33b   : > { %v1778_v63 = vpop.eup %1777 }
 0x33c   : > { %v817_v0 = vadd.f32 1.0, %v1778_v63 }
 0x33e   : > { %1779 = vrcp.f32 %v817_v0 }
 0x33f   : > { %1781 = vtanh.f32 %v821_v34 }
 0x348   : > { %v1780_v35 = vpop.eup %1779 }
 0x349   : > { %v825_v36 = vrot.slane %v1780_v35, 2  ;;  %v1782_v37 = vpop.eup %1781  ;;  %v831_v44 = vrot.slane %v1780_v35, 4 }
 0x34a   : > { %v828_v39 = vmul.f32 %v1782_v37, %v1780_v35 }
 0x34b   : > { %v827_v41 = vmul.f32 %v825_v36, %v2196_v40 }
 0x34d   : > { %v2240_v42 = vadd.f32 %v828_v39, %v827_v41 }
 0x34f   : > { %1783 = vtanh.f32 %v2240_v42 }
 0x359   : > { %v1784_v45 = vpop.eup %1783 }
 0x35a   : > { %v833_v38 = vmul.f32 %v1784_v45, %v831_v44 }
 0x35c   : > { %v834_v46 = vpack.c.bf16 %v833_v38, %v833_v38 }
 0x35e   : > { %1653 = vst [vmem:[%s1903_s20 + $0x2] sm:$0x1] %v834_v46  ;;  %881 = vmatmul.mubr.bf16.vlgmr.msra.gmra.mrb[12].mxu0 %v834_v46  ;;  %922 = vmatmul.mubr.bf16.vlgmr.msra.gmra.mrb[12].mxu1 %v834_v46 }
 0x35f   : > { %988 = vmatpush1.bf16.msra.mxu0 %v1931_v4  ;;  %1029 = vmatpush1.bf16.msra.mxu1 %v1936_v5 }
 0x360   : > { %989 = vmatprep.subr.bf16.mxu0 %v1942_v6  ;;  %1030 = vmatprep.subr.bf16.mxu1 %v1949_v7 }
 0x361   : > { %1019 = vmatprep.mubr.bf16.mxu0 %v1866_v3  ;;  %1060 = vmatprep.mubr.bf16.mxu1 %v1866_v3 }
 0x363   : > { %990 = vmatpush1.bf16.msra.mxu0 %v1954_v8  ;;  %1031 = vmatpush1.bf16.msra.mxu1 %v1960_v9 }
 0x364   : > { %991 = vmatprep.subr.bf16.mxu0 %v1966_v10  ;;  %1032 = vmatprep.subr.bf16.mxu1 %v1971_v11 }
 0x367   : > { %992 = vmatpush1.bf16.msra.mxu0 %v1976_v12  ;;  %1033 = vmatpush1.bf16.msra.mxu1 %v1981_v13 }
 0x368   : > { %993 = vmatprep.subr.bf16.mxu0 %v1988_v14  ;;  %1034 = vmatprep.subr.bf16.mxu1 %v1995_v15 }
 0x36b   : > { %994 = vmatpush1.bf16.msra.mxu0 %v2000_v16  ;;  %1035 = vmatpush1.bf16.msra.mxu1 %v2007_v17 }
 0x36c   : > { %995 = vmatprep.subr.bf16.mxu0 %v2012_v18  ;;  %1036 = vmatprep.subr.bf16.mxu1 %v2019_v19 }
 0x36f   : > { %996 = vmatpush1.bf16.msra.mxu0 %v2024_v20  ;;  %1037 = vmatpush1.bf16.msra.mxu1 %v2029_v21 }
 0x370   : > { %997 = vmatprep.subr.bf16.mxu0 %v2036_v22  ;;  %1038 = vmatprep.subr.bf16.mxu1 %v2043_v23 }
 0x373   : > { %998 = vmatpush1.bf16.msra.mxu0 %v2050_v24  ;;  %1039 = vmatpush1.bf16.msra.mxu1 %v2055_v25 }
 0x374   : > { %999 = vmatprep.subr.bf16.mxu0 %v2062_v26  ;;  %1040 = vmatprep.subr.bf16.mxu1 %v2067_v27 }
 0x377   : > { %1000 = vmatpush1.bf16.msra.mxu0 %v2074_v28  ;;  %1041 = vmatpush1.bf16.msra.mxu1 %v2079_v29 }
 0x378   : > { %1001 = vmatprep.subr.bf16.mxu0 %v2086_v30  ;;  %1042 = vmatprep.subr.bf16.mxu1 %v2091_v31 }
 0x37b   : > { %1002 = vmatpush1.bf16.msra.mxu0 %v2098_v32  ;;  %1043 = vmatpush1.bf16.msra.mxu1 %v2103_v33 }
 0x37c   : > { %1126 = vmatprep.subr.bf16.mxu0 %v1918_v1  ;;  %1167 = vmatprep.subr.bf16.mxu1 %v1923_v2 }
 0x431   : > { %v882_v40 = vpop.f32.mrb[12].mxu0  ;;  %v923_v47 = vpop.f32.mrb[12].mxu1 }
 0x432   : > { %v884_v48 = vpop.f32.mrb[13].mxu0  ;;  %v925_v51 = vpop.f32.mrb[13].mxu1 }
 0x433   : > { %v934_v52 = vcombine.low %v882_v40, %v884_v48  ;;  %v935_v53 = vcombine.low %v923_v47, %v925_v51  ;;  %v886_v54 = vpop.f32.mrb[14].mxu0  ;;  %v927_v55 = vpop.f32.mrb[14].mxu1  ;;  %v1751_v51 = vld [vmem:[%s1913_s28 + $0x20] sm:%s1750_s8] }
 0x434   : > { %v887_v56 = vpop.f32.mrb[15].mxu0  ;;  %v928_v57 = vpop.f32.mrb[15].mxu1 }
 0x435   : > { %v942_v58 = vrot.slane %v934_v52, %v2146_v43  ;;  %v949_v60 = vrot.slane %v935_v53, %v2146_v43 }
 0x437   : > { %v950_v61 = vcombine.low %v942_v58, %v949_v60 }
 0x439   : > { %v952_v62 = vadd.f32 %v950_v61, %v847_v59 }
 0x43b   : > { %v1656_v63 = vmul.f32 -1.442695, %v952_v62  ;;  %v960_v35 = vrot.slane %v952_v62, 6 }
 0x43d   : > { %1785 = vpow2.f32 %v1656_v63 }
 0x447   : > { %v1786_v0 = vpop.eup %1785 }
 0x448   : > { %v956_v34 = vadd.f32 1.0, %v1786_v0 }
 0x44a   : > { %1787 = vrcp.f32 %v956_v34 }
 0x44b   : > { %1789 = vtanh.f32 %v960_v35 }
 0x454   : > { %v1788_v36 = vpop.eup %1787 }
 0x455   : > { %v964_v37 = vrot.slane %v1788_v36, 2  ;;  %v1790_v39 = vpop.eup %1789  ;;  %v970_v38 = vrot.slane %v1788_v36, 4 }
 0x456   : > { %v967_v41 = vmul.f32 %v1790_v39, %v1788_v36 }
 0x457   : > { %v966_v44 = vmul.f32 %v964_v37, %v2240_v42 }
 0x459   : > { %v2284_v45 = vadd.f32 %v967_v41, %v966_v44 }
 0x45b   : > { %1791 = vtanh.f32 %v2284_v45 }
 0x465   : > { %v1792_v46 = vpop.eup %1791 }
 0x466   : > { %v972_v40 = vmul.f32 %v1792_v46, %v970_v38 }
 0x468   : > { %v973_v47 = vpack.c.bf16 %v972_v40, %v972_v40 }
 0x46a   : > { %1657 = vst [vmem:[%s1903_s20 + $0x3] sm:$0x1] %v973_v47  ;;  %1020 = vmatmul.mubr.bf16.vlgmr.msra.gmra.mrb[16].mxu0 %v973_v47  ;;  %1061 = vmatmul.mubr.bf16.vlgmr.msra.gmra.mrb[16].mxu1 %v973_v47 }
 0x46b   : > { %1127 = vmatpush1.bf16.msra.mxu0 %v1931_v4  ;;  %1168 = vmatpush1.bf16.msra.mxu1 %v1936_v5 }
 0x46c   : > { %1128 = vmatprep.subr.bf16.mxu0 %v1942_v6  ;;  %1169 = vmatprep.subr.bf16.mxu1 %v1949_v7 }
 0x46d   : > { %1158 = vmatprep.mubr.bf16.mxu0 %v1866_v3  ;;  %1199 = vmatprep.mubr.bf16.mxu1 %v1866_v3 }
 0x46f   : > { %1129 = vmatpush1.bf16.msra.mxu0 %v1954_v8  ;;  %1170 = vmatpush1.bf16.msra.mxu1 %v1960_v9 }
 0x470   : > { %1130 = vmatprep.subr.bf16.mxu0 %v1966_v10  ;;  %1171 = vmatprep.subr.bf16.mxu1 %v1971_v11 }
 0x473   : > { %1131 = vmatpush1.bf16.msra.mxu0 %v1976_v12  ;;  %1172 = vmatpush1.bf16.msra.mxu1 %v1981_v13 }
 0x474   : > { %1132 = vmatprep.subr.bf16.mxu0 %v1988_v14  ;;  %1173 = vmatprep.subr.bf16.mxu1 %v1995_v15 }
 0x477   : > { %1133 = vmatpush1.bf16.msra.mxu0 %v2000_v16  ;;  %1174 = vmatpush1.bf16.msra.mxu1 %v2007_v17 }
 0x478   : > { %1134 = vmatprep.subr.bf16.mxu0 %v2012_v18  ;;  %1175 = vmatprep.subr.bf16.mxu1 %v2019_v19 }
 0x47b   : > { %1135 = vmatpush1.bf16.msra.mxu0 %v2024_v20  ;;  %1176 = vmatpush1.bf16.msra.mxu1 %v2029_v21 }
 0x47c   : > { %1136 = vmatprep.subr.bf16.mxu0 %v2036_v22  ;;  %1177 = vmatprep.subr.bf16.mxu1 %v2043_v23 }
 0x47f   : > { %1137 = vmatpush1.bf16.msra.mxu0 %v2050_v24  ;;  %1178 = vmatpush1.bf16.msra.mxu1 %v2055_v25 }
 0x480   : > { %1138 = vmatprep.subr.bf16.mxu0 %v2062_v26  ;;  %1179 = vmatprep.subr.bf16.mxu1 %v2067_v27 }
 0x483   : > { %1139 = vmatpush1.bf16.msra.mxu0 %v2074_v28  ;;  %1180 = vmatpush1.bf16.msra.mxu1 %v2079_v29 }
 0x484   : > { %1140 = vmatprep.subr.bf16.mxu0 %v2086_v30  ;;  %1181 = vmatprep.subr.bf16.mxu1 %v2091_v31 }
 0x487   : > { %1141 = vmatpush1.bf16.msra.mxu0 %v2098_v32  ;;  %1182 = vmatpush1.bf16.msra.mxu1 %v2103_v33 }
 0x488   : > { %1265 = vmatprep.subr.bf16.mxu0 %v1918_v1  ;;  %1306 = vmatprep.subr.bf16.mxu1 %v1923_v2  ;;  %v986_v1 = vadd.f32 %v1751_v51, %v1658_v50  ;;  %v1828_v50 = vld [vmem:[%s2490_s2 + $0x8] ss:$16 sps:$4 sm:$0xff]   ;;  %v1829_v51 = vld [vmem:[%s2490_s2 + $0x24] ss:$16 sps:$4 sm:$0xff]  }
 0x53d   : > { %v1021_v42 = vpop.f32.mrb[16].mxu0  ;;  %v1062_v48 = vpop.f32.mrb[16].mxu1 }
 0x53e   : > { %v1023_v49 = vpop.f32.mrb[17].mxu0  ;;  %v1064_v52 = vpop.f32.mrb[17].mxu1 }
 0x53f   : > { %v1073_v53 = vcombine.low %v1021_v42, %v1023_v49  ;;  %v1074_v54 = vcombine.low %v1062_v48, %v1064_v52  ;;  %v1025_v55 = vpop.f32.mrb[18].mxu0  ;;  %v1066_v56 = vpop.f32.mrb[18].mxu1  ;;  %v1827_v49 = vld [vmem:[%s2490_s2] ss:$16 sps:$4 sm:$0xff]   ;;  %v1830_v52 = vld [vmem:[%s2490_s2 + $0x2c] ss:$16 sps:$4 sm:$0xff]  }
 0x540   : > { %v1026_v57 = vpop.f32.mrb[19].mxu0  ;;  %v1067_v58 = vpop.f32.mrb[19].mxu1  ;;  %v1833_v55 = vld [vmem:[%s2490_s2 + $0x44] ss:$16 sps:$4 sm:$0xff]   ;;  %v1834_v56 = vld [vmem:[%s2490_s2 + $0x4c] ss:$16 sps:$4 sm:$0xff]  }
 0x541   : > { %v1081_v59 = vrot.slane %v1073_v53, %v2146_v43  ;;  %v1088_v2 = vrot.slane %v1074_v54, %v2146_v43  ;;  %v1831_v53 = vld [vmem:[%s2490_s2 + $0x20] ss:$16 sps:$4 sm:$0xff]   ;;  %v1832_v54 = vld [vmem:[%s2490_s2 + $0x28] ss:$16 sps:$4 sm:$0xff]   ;;  %v1837_v58 = vld [vmem:[%s2490_s2 + $0x64] ss:$16 sps:$4 sm:$0xff]  }
 0x542   : > { %v1836_v57 = vld [vmem:[%s2490_s2 + $0x48] ss:$16 sps:$4 sm:$0xff]  }
 0x543   : > { %v1089_v60 = vcombine.low %v1081_v59, %v1088_v2  ;;  %v1838_v59 = vld [vmem:[%s2490_s2 + $0x6c] ss:$16 sps:$4 sm:$0xff]   ;;  %v1840_v2 = vld [vmem:[%s2490_s2 + $0x68] ss:$16 sps:$4 sm:$0xff]  }
 0x545   : > { %v1091_v61 = vadd.f32 %v1089_v60, %v986_v1  ;;  %v1839_v1 = vld [vmem:[%s2490_s2 + $0x60] ss:$16 sps:$4 sm:$0xff]   ;;  %v1841_v60 = vld [vmem:[%s2490_s2 + $0x84] ss:$16 sps:$4 sm:$0xff]  }
 0x547   : > { %v1660_v62 = vmul.f32 -1.442695, %v1091_v61  ;;  %v1099_v34 = vrot.slane %v1091_v61, 6  ;;  %v1842_v61 = vld [vmem:[%s2490_s2 + $0x8c] ss:$16 sps:$4 sm:$0xff]  }
 0x549   : > { %1793 = vpow2.f32 %v1660_v62  ;;  %v1843_v62 = vld [vmem:[%s2490_s2 + $0x80] ss:$16 sps:$4 sm:$0xff]  }
 0x553   : > { %v1794_v63 = vpop.eup %1793 }
 0x554   : > { %v1095_v0 = vadd.f32 1.0, %v1794_v63  ;;  %v1844_v63 = vld [vmem:[%s2490_s2 + $0x88] ss:$16 sps:$4 sm:$0xff]  }
 0x556   : > { %1795 = vrcp.f32 %v1095_v0  ;;  %v1845_v0 = vld [vmem:[%s2490_s2 + $0xa4] ss:$16 sps:$4 sm:$0xff]  }
 0x557   : > { %1797 = vtanh.f32 %v1099_v34  ;;  %v1846_v34 = vld [vmem:[%s2490_s2 + $0xac] ss:$16 sps:$4 sm:$0xff]  }
 0x560   : > { %v1796_v35 = vpop.eup %1795 }
 0x561   : > { %v1103_v36 = vrot.slane %v1796_v35, 2  ;;  %v1798_v37 = vpop.eup %1797  ;;  %v1109_v38 = vrot.slane %v1796_v35, 4 }
 0x562   : > { %v1106_v39 = vmul.f32 %v1798_v37, %v1796_v35  ;;  %v1847_v35 = vld [vmem:[%s2490_s2 + $0xa0] ss:$16 sps:$4 sm:$0xff]   ;;  %v1849_v37 = vld [vmem:[%s2490_s2 + $0xc4] ss:$16 sps:$4 sm:$0xff]  }
 0x563   : > { %v1105_v41 = vmul.f32 %v1103_v36, %v2284_v45  ;;  %v1848_v36 = vld [vmem:[%s2490_s2 + $0xa8] ss:$16 sps:$4 sm:$0xff]  }
 0x565   : > { %v2328_v44 = vadd.f32 %v1106_v39, %v1105_v41  ;;  %v1850_v39 = vld [vmem:[%s2490_s2 + $0xcc] ss:$16 sps:$4 sm:$0xff]   ;;  %v1851_v41 = vld [vmem:[%s2490_s2 + $0xc0] ss:$16 sps:$4 sm:$0xff]  }
 0x567   : > { %1799 = vtanh.f32 %v2328_v44 }
 0x571   : > { %v1800_v46 = vpop.eup %1799 }
 0x572   : > { %v1111_v40 = vmul.f32 %v1800_v46, %v1109_v38  ;;  %v1853_v38 = vld [vmem:[%s2490_s2 + $0xe4] ss:$16 sps:$4 sm:$0xff]   ;;  %v1854_v46 = vld [vmem:[%s2490_s2 + $0xec] ss:$16 sps:$4 sm:$0xff]  }
 0x574   : > { %v1112_v47 = vpack.c.bf16 %v1111_v40, %v1111_v40  ;;  %v1855_v40 = vld [vmem:[%s2490_s2 + $0xe0] ss:$16 sps:$4 sm:$0xff]  }
 0x576   : > { %1661 = vst [vmem:[%s1903_s20 + $0x4] sm:$0x1] %v1112_v47  ;;  %1159 = vmatmul.mubr.bf16.vlgmr.msra.gmra.mrb[20].mxu0 %v1112_v47  ;;  %1200 = vmatmul.mubr.bf16.vlgmr.msra.gmra.mrb[20].mxu1 %v1112_v47  ;;  %v1856_v47 = vld [vmem:[%s2490_s2 + $0xe8] ss:$16 sps:$4 sm:$0xff]  }
 0x577   : > { %1266 = vmatpush1.bf16.msra.mxu0 %v1931_v4  ;;  %1307 = vmatpush1.bf16.msra.mxu1 %v1936_v5  ;;  %v1825_v4 = vld [vmem:[%s2490_s2 + $0x4] ss:$16 sps:$4 sm:$0xff]   ;;  %v1826_v5 = vld [vmem:[%s2490_s2 + $0xc] ss:$16 sps:$4 sm:$0xff]  }
 0x578   : > { %1267 = vmatprep.subr.bf16.mxu0 %v1942_v6  ;;  %1308 = vmatprep.subr.bf16.mxu1 %v1949_v7 }
 0x579   : > { %1297 = vmatprep.mubr.bf16.mxu0 %v1866_v3  ;;  %1338 = vmatprep.mubr.bf16.mxu1 %v1866_v3 }
 0x57b   : > { %1268 = vmatpush1.bf16.msra.mxu0 %v1954_v8  ;;  %1309 = vmatpush1.bf16.msra.mxu1 %v1960_v9  ;;  %v1662_v9 = vld [vmem:[%s1908_s23 + $0x28] sm:$0xff] }
 0x57c   : > { %1269 = vmatprep.subr.bf16.mxu0 %v1966_v10  ;;  %1310 = vmatprep.subr.bf16.mxu1 %v1971_v11  ;;  %v1754_v10 = vld [vmem:[%s1913_s28 + $0x28] sm:%s1753_s16] }
 0x57f   : > { %1270 = vmatpush1.bf16.msra.mxu0 %v1976_v12  ;;  %1311 = vmatpush1.bf16.msra.mxu1 %v1981_v13 }
 0x580   : > { %1271 = vmatprep.subr.bf16.mxu0 %v1988_v14  ;;  %1312 = vmatprep.subr.bf16.mxu1 %v1995_v15 }
 0x583   : > { %1272 = vmatpush1.bf16.msra.mxu0 %v2000_v16  ;;  %1313 = vmatpush1.bf16.msra.mxu1 %v2007_v17 }
 0x584   : > { %1273 = vmatprep.subr.bf16.mxu0 %v2012_v18  ;;  %1314 = vmatprep.subr.bf16.mxu1 %v2019_v19  ;;  %v1125_v19 = vadd.f32 %v1754_v10, %v1662_v9 }
 0x587   : > { %1274 = vmatpush1.bf16.msra.mxu0 %v2024_v20  ;;  %1315 = vmatpush1.bf16.msra.mxu1 %v2029_v21 }
 0x588   : > { %1275 = vmatprep.subr.bf16.mxu0 %v2036_v22  ;;  %1316 = vmatprep.subr.bf16.mxu1 %v2043_v23 }
 0x58b   : > { %1276 = vmatpush1.bf16.msra.mxu0 %v2050_v24  ;;  %1317 = vmatpush1.bf16.msra.mxu1 %v2055_v25 }
 0x58c   : > { %1277 = vmatprep.subr.bf16.mxu0 %v2062_v26  ;;  %1318 = vmatprep.subr.bf16.mxu1 %v2067_v27 }
 0x58f   : > { %1278 = vmatpush1.bf16.msra.mxu0 %v2074_v28  ;;  %1319 = vmatpush1.bf16.msra.mxu1 %v2079_v29 }
 0x590   : > { %1279 = vmatprep.subr.bf16.mxu0 %v2086_v30  ;;  %1320 = vmatprep.subr.bf16.mxu1 %v2091_v31 }
 0x593   : > { %1280 = vmatpush1.bf16.msra.mxu0 %v2098_v32  ;;  %1321 = vmatpush1.bf16.msra.mxu1 %v2103_v33 }
 0x594   : > { %1404 = vmatprep.subr.bf16.mxu0 %v1825_v4  ;;  %1445 = vmatprep.subr.bf16.mxu1 %v1826_v5 }
 0x649   : > { %v1160_v6 = vpop.f32.mrb[20].mxu0  ;;  %v1201_v7 = vpop.f32.mrb[20].mxu1 }
 0x64a   : > { %v1162_v8 = vpop.f32.mrb[21].mxu0  ;;  %v1203_v11 = vpop.f32.mrb[21].mxu1 }
 0x64b   : > { %v1212_v12 = vcombine.low %v1160_v6, %v1162_v8  ;;  %v1213_v13 = vcombine.low %v1201_v7, %v1203_v11  ;;  %v1164_v14 = vpop.f32.mrb[22].mxu0  ;;  %v1205_v15 = vpop.f32.mrb[22].mxu1  ;;  %v1666_v7 = vld [vmem:[%s1908_s23 + $0x30] sm:$0xff] }
 0x64c   : > { %v1165_v16 = vpop.f32.mrb[23].mxu0  ;;  %v1206_v17 = vpop.f32.mrb[23].mxu1  ;;  %v1757_v8 = vld [vmem:[%s1913_s28 + $0x30] sm:%s1756_s10] }
 0x64d   : > { %v1220_v18 = vrot.slane %v1212_v12, %v2146_v43  ;;  %v1227_v20 = vrot.slane %v1213_v13, %v2146_v43  ;;  %v1264_v17 = vadd.f32 %v1757_v8, %v1666_v7 }
 0x64f   : > { %v1228_v21 = vcombine.low %v1220_v18, %v1227_v20 }
 0x651   : > { %v1230_v22 = vadd.f32 %v1228_v21, %v1125_v19 }
 0x653   : > { %v1664_v23 = vmul.f32 -1.442695, %v1230_v22  ;;  %v1238_v26 = vrot.slane %v1230_v22, 6 }
 0x655   : > { %1801 = vpow2.f32 %v1664_v23 }
 0x65f   : > { %v1802_v24 = vpop.eup %1801 }
 0x660   : > { %v1234_v25 = vadd.f32 1.0, %v1802_v24 }
 0x662   : > { %1803 = vrcp.f32 %v1234_v25 }
 0x663   : > { %1805 = vtanh.f32 %v1238_v26 }
 0x66c   : > { %v1804_v27 = vpop.eup %1803 }
 0x66d   : > { %v1242_v28 = vrot.slane %v1804_v27, 2  ;;  %v1806_v29 = vpop.eup %1805  ;;  %v1248_v33 = vrot.slane %v1804_v27, 4 }
 0x66e   : > { %v1245_v30 = vmul.f32 %v1806_v29, %v1804_v27 }
 0x66f   : > { %v1244_v31 = vmul.f32 %v1242_v28, %v2328_v44  ;;  %v1852_v44 = vld [vmem:[%s2490_s2 + $0xc8] ss:$16 sps:$4 sm:$0xff]  }
 0x671   : > { %v2376_v32 = vadd.f32 %v1245_v30, %v1244_v31 }
 0x673   : > { %1807 = vtanh.f32 %v2376_v32 }
 0x67d   : > { %v1808_v45 = vpop.eup %1807 }
 0x67e   : > { %v1250_v42 = vmul.f32 %v1808_v45, %v1248_v33 }
 0x680   : > { %v1251_v48 = vpack.c.bf16 %v1250_v42, %v1250_v42 }
 0x682   : > { %1665 = vst [vmem:[%s1903_s20 + $0x5] sm:$0x1] %v1251_v48  ;;  %1298 = vmatmul.mubr.bf16.vlgmr.msra.gmra.mrb[24].mxu0 %v1251_v48  ;;  %1339 = vmatmul.mubr.bf16.vlgmr.msra.gmra.mrb[24].mxu1 %v1251_v48 }
 0x683   : > { %1405 = vmatpush1.bf16.msra.mxu0 %v1827_v49  ;;  %1446 = vmatpush1.bf16.msra.mxu1 %v1828_v50 }
 0x684   : > { %1406 = vmatprep.subr.bf16.mxu0 %v1829_v51  ;;  %1447 = vmatprep.subr.bf16.mxu1 %v1830_v52  ;;  %v1670_v51 = vld [vmem:[%s1908_s23 + $0x38] sm:$0xff] }
 0x685   : > { %1436 = vmatprep.mubr.bf16.mxu0 %v1866_v3  ;;  %1477 = vmatprep.mubr.bf16.mxu1 %v1866_v3  ;;  %v1835_v3 = vld [vmem:[%s2490_s2 + $0x40] ss:$16 sps:$4 sm:$0xff]   ;;  %v1760_v52 = vld [vmem:[%s1913_s28 + $0x38] sm:%s1759_s13] }
 0x687   : > { %1407 = vmatpush1.bf16.msra.mxu0 %v1831_v53  ;;  %1448 = vmatpush1.bf16.msra.mxu1 %v1832_v54 }
 0x688   : > { %1408 = vmatprep.subr.bf16.mxu0 %v1833_v55  ;;  %1449 = vmatprep.subr.bf16.mxu1 %v1834_v56 }
 0x68b   : > { %1409 = vmatpush1.bf16.msra.mxu0 %v1835_v3  ;;  %1450 = vmatpush1.bf16.msra.mxu1 %v1836_v57 }
 0x68c   : > { %1410 = vmatprep.subr.bf16.mxu0 %v1837_v58  ;;  %1451 = vmatprep.subr.bf16.mxu1 %v1838_v59  ;;  %v1403_v59 = vadd.f32 %v1760_v52, %v1670_v51 }
 0x68f   : > { %1411 = vmatpush1.bf16.msra.mxu0 %v1839_v1  ;;  %1452 = vmatpush1.bf16.msra.mxu1 %v1840_v2 }
 0x690   : > { %1412 = vmatprep.subr.bf16.mxu0 %v1841_v60  ;;  %1453 = vmatprep.subr.bf16.mxu1 %v1842_v61 }
 0x693   : > { %1413 = vmatpush1.bf16.msra.mxu0 %v1843_v62  ;;  %1454 = vmatpush1.bf16.msra.mxu1 %v1844_v63 }
 0x694   : > { %1414 = vmatprep.subr.bf16.mxu0 %v1845_v0  ;;  %1455 = vmatprep.subr.bf16.mxu1 %v1846_v34 }
 0x697   : > { %1415 = vmatpush1.bf16.msra.mxu0 %v1847_v35  ;;  %1456 = vmatpush1.bf16.msra.mxu1 %v1848_v36 }
 0x698   : > { %1416 = vmatprep.subr.bf16.mxu0 %v1849_v37  ;;  %1457 = vmatprep.subr.bf16.mxu1 %v1850_v39 }
 0x69b   : > { %1417 = vmatpush1.bf16.msra.mxu0 %v1851_v41  ;;  %1458 = vmatpush1.bf16.msra.mxu1 %v1852_v44 }
 0x69c   : > { %1418 = vmatprep.subr.bf16.mxu0 %v1853_v38  ;;  %1459 = vmatprep.subr.bf16.mxu1 %v1854_v46 }
 0x69f   : > { %1419 = vmatpush1.bf16.msra.mxu0 %v1855_v40  ;;  %1460 = vmatpush1.bf16.msra.mxu1 %v1856_v47 }
 0x755   : > { %v1299_v4 = vpop.f32.mrb[24].mxu0  ;;  %v1340_v5 = vpop.f32.mrb[24].mxu1 }
 0x756   : > { %v1301_v6 = vpop.f32.mrb[25].mxu0  ;;  %v1342_v9 = vpop.f32.mrb[25].mxu1 }
 0x757   : > { %v1351_v10 = vcombine.low %v1299_v4, %v1301_v6  ;;  %v1352_v11 = vcombine.low %v1340_v5, %v1342_v9  ;;  %v1303_v12 = vpop.f32.mrb[26].mxu0  ;;  %v1344_v13 = vpop.f32.mrb[26].mxu1 }
 0x758   : > { %v1304_v14 = vpop.f32.mrb[27].mxu0  ;;  %v1345_v15 = vpop.f32.mrb[27].mxu1 }
 0x759   : > { %v1359_v16 = vrot.slane %v1351_v10, %v2146_v43  ;;  %v1366_v18 = vrot.slane %v1352_v11, %v2146_v43 }
 0x75b   : > { %v1367_v19 = vcombine.low %v1359_v16, %v1366_v18 }
 0x75d   : > { %v1369_v20 = vadd.f32 %v1367_v19, %v1264_v17 }
 0x75f   : > { %v1668_v21 = vmul.f32 -1.442695, %v1369_v20  ;;  %v1377_v24 = vrot.slane %v1369_v20, 6 }
 0x761   : > { %1809 = vpow2.f32 %v1668_v21 }
 0x76b   : > { %v1810_v22 = vpop.eup %1809 }
 0x76c   : > { %v1373_v23 = vadd.f32 1.0, %v1810_v22 }
 0x76e   : > { %1811 = vrcp.f32 %v1373_v23 }
 0x76f   : > { %1813 = vtanh.f32 %v1377_v24 }
 0x778   : > { %v1812_v25 = vpop.eup %1811 }
 0x779   : > { %v1381_v26 = vrot.slane %v1812_v25, 2  ;;  %v1814_v27 = vpop.eup %1813  ;;  %v1387_v31 = vrot.slane %v1812_v25, 4 }
 0x77a   : > { %v1384_v28 = vmul.f32 %v1814_v27, %v1812_v25 }
 0x77b   : > { %v1383_v29 = vmul.f32 %v1381_v26, %v2376_v32 }
 0x77d   : > { %v1385_v30 = vadd.f32 %v1384_v28, %v1383_v29 }
 0x77f   : > { %1815 = vtanh.f32 %v1385_v30 }
 0x789   : > { %v1816_v33 = vpop.eup %1815 }
 0x78a   : > { %v1389_v45 = vmul.f32 %v1816_v33, %v1387_v31 }
 0x78c   : > { %v1390_v42 = vpack.c.bf16 %v1389_v45, %v1389_v45 }
 0x78e   : > { %1669 = vst [vmem:[%s1903_s20 + $0x6] sm:$0x1] %v1390_v42  ;;  %1437 = vmatmul.mubr.bf16.vlgmr.msra.gmra.mrb[28].mxu0 %v1390_v42  ;;  %1478 = vmatmul.mubr.bf16.vlgmr.msra.gmra.mrb[28].mxu1 %v1390_v42 }
 0x861   : > { %v1438_v48 = vpop.f32.mrb[28].mxu0  ;;  %v1479_v49 = vpop.f32.mrb[28].mxu1 }
 0x862   : > { %v1440_v50 = vpop.f32.mrb[29].mxu0  ;;  %v1481_v32 = vpop.f32.mrb[29].mxu1 }
 0x863   : > { %v1490_v53 = vcombine.low %v1438_v48, %v1440_v50  ;;  %v1491_v54 = vcombine.low %v1479_v49, %v1481_v32  ;;  %v1442_v55 = vpop.f32.mrb[30].mxu0  ;;  %v1483_v56 = vpop.f32.mrb[30].mxu1 }
 0x864   : > { %v1443_v3 = vpop.f32.mrb[31].mxu0  ;;  %v1484_v57 = vpop.f32.mrb[31].mxu1 }
 0x865   : > { %v1498_v58 = vrot.slane %v1490_v53, %v2146_v43  ;;  %v1505_v1 = vrot.slane %v1491_v54, %v2146_v43 }
 0x867   : > { %v1506_v2 = vcombine.low %v1498_v58, %v1505_v1 }
 0x869   : > { %v1508_v60 = vadd.f32 %v1506_v2, %v1403_v59 }
 0x86b   : > { %v1672_v61 = vmul.f32 -1.442695, %v1508_v60  ;;  %v1516_v0 = vrot.slane %v1508_v60, 6 }
 0x86d   : > { %1817 = vpow2.f32 %v1672_v61 }
 0x877   : > { %v1818_v62 = vpop.eup %1817 }
 0x878   : > { %v1512_v63 = vadd.f32 1.0, %v1818_v62 }
 0x87a   : > { %1819 = vrcp.f32 %v1512_v63 }
 0x87b   : > { %1821 = vtanh.f32 %v1516_v0 }
 0x884   : > { %v1820_v34 = vpop.eup %1819 }
 0x885   : > { %v1520_v35 = vrot.slane %v1820_v34, 2  ;;  %v1822_v36 = vpop.eup %1821  ;;  %v1526_v44 = vrot.slane %v1820_v34, 4 }
 0x886   : > { %v1523_v39 = vmul.f32 %v1822_v36, %v1820_v34 }
 0x887   : > { %v1522_v37 = vmul.f32 %v1520_v35, %v1385_v30 }
 0x889   : > { %v1524_v41 = vadd.f32 %v1523_v39, %v1522_v37 }
 0x88b   : > { %1823 = vtanh.f32 %v1524_v41  ;;  %1533 = vst [vmem:[#allocation3] sm:$0x3] %v1524_v41 }
 0x895   : > { %v1824_v43 = vpop.eup %1823 }
 0x896   : > { %v1528_v38 = vmul.f32 %v1824_v43, %v1526_v44 }
 0x898   : > { %v1529_v46 = vpack.c.bf16 %v1528_v38, %v1528_v38  ;;  %1532 = vst [vmem:[#allocation2] sm:$0x3] %v1528_v38 }
 0x89a   : > { %1673 = vst [vmem:[%s1903_s20 + $0x7] sm:$0x1] %v1529_v46 }
 0x89b PF: > { %s13_s12 = sadd.s32 1, %s1863_s12  }
 0x89c   : > { %p10_p1 = scmp.ge.s32.totalorder %s13_s12, 4  }
 0x89e   :  { %12 = sbr.rel (!%p10_p1) target bundleno = 1 (0x1), region = 90 }

</bundles_post_ra>
